<compile_context>
chip_gen: v7x
topology: tpu7x:2x2x1
jax: 0.10.0
libtpu: 0.0.40
codegen_flags: <defaults>
</compile_context>

<pallas_src>
import jax
import jax.numpy as jnp
import numpy as np
from jax import lax
from jax.experimental import pallas as pl
from jax.experimental.pallas import tpu as pltpu

CP = 8                                   # channel padding (one sublane tile)
SIZES = [[12, 11], [24, 21], [48, 42]]   # hard-coded crop sizes from the module


# ---------------------------------------------------------------------------
# Pallas kernel: out = ReLU(bias + sum_t W_t @ X[:, d_t : d_t + L])
# X is the single VMEM-resident flattened activation; d_t are static lane
# offsets implementing the stride-1 conv taps (no im2col, no HBM patch matrix).
# ---------------------------------------------------------------------------
def _make_tap_kernel(offsets, lout):
    def kernel(x_ref, w_ref, b_ref, o_ref):
        d0 = offsets[0]                                   # always 0
        acc = jnp.dot(w_ref[0], x_ref[:, d0:d0 + lout],
                      preferred_element_type=jnp.float32)
        for t in range(1, len(offsets)):
            d = offsets[t]
            acc = acc + jnp.dot(w_ref[t], x_ref[:, d:d + lout],
                                preferred_element_type=jnp.float32)
        o_ref[...] = jnp.maximum(acc + b_ref[...], 0.0)
    return kernel


def _tap_conv(xf, wtap, bias, lout, wrow, a_taps):
    """xf: [Ceff, L+pad] flat activation; wtap: [A*A, R, Ceff]; bias: [R, 1].
    Returns [R, L] = ReLU(bias + sum over A*A taps of W_t @ shifted window)."""
    ceff, lpad = xf.shape
    nt, rows, _ = wtap.shape
    offsets = tuple(al * wrow + be for al in range(a_taps) for be in range(a_taps))
    kernel = _make_tap_kernel(offsets, lout)
    return pl.pallas_call(
        kernel,
        out_shape=jax.ShapeDtypeStruct((rows, lout), jnp.float32),
        grid_spec=pltpu.PrefetchScalarGridSpec(
            num_scalar_prefetch=0,
            grid=(1,),                                     # single full block
            in_specs=[
                pl.BlockSpec((ceff, lpad), lambda i: (0, 0)),
                pl.BlockSpec((nt, rows, ceff), lambda i: (0, 0, 0)),
                pl.BlockSpec((rows, 1), lambda i: (0, 0)),
            ],
            out_specs=pl.BlockSpec((rows, lout), lambda i: (0, 0)),
        ),
        compiler_params=pltpu.CompilerParams(
            dimension_semantics=("arbitrary",)),
    )(xf, wtap, bias)


# ---------------------------------------------------------------------------
# Encoder layer: Conv2dSamePad(k,2) + Conv2d(stride=2) + ReLU
# Stride-2 conv == stride-1 tap conv over the 4-phase (space-to-depth) input.
# ---------------------------------------------------------------------------
def _enc_layer(x, wtap, bias, k):
    cpin, B, H, W = x.shape
    A = (k + 1) // 2
    oh, ow = -(-H // 2), -(-W // 2)
    ph = (oh - 1) * 2 + k - H                 # TF-style SAME padding amounts
    pw = (ow - 1) * 2 + k - W
    hph, wph = oh + A - 1, ow + A - 1         # phase-plane spatial dims
    # SAME pad + extend to exactly (2*hph, 2*wph) with zeros (extra zeros only
    # ever meet zero phase-weights).
    xp = jnp.pad(x, ((0, 0), (0, 0),
                     (ph // 2, 2 * hph - H - ph // 2),
                     (pw // 2, 2 * wph - W - pw // 2)))
    # space-to-depth: phase-expanded channel index e = c*4 + p*2 + q
    xp = xp.reshape(cpin, B, hph, 2, wph, 2)
    xp = jnp.transpose(xp, (0, 3, 5, 1, 2, 4)).reshape(4 * cpin, B * hph * wph)
    lin = B * hph * wph
    ceff = wtap.shape[2]
    dmax = (A - 1) * (wph + 1)                # largest tap lane shift
    xf = jnp.pad(xp, ((0, ceff - 4 * cpin), (0, dmax)))
    y = _tap_conv(xf, wtap, bias, lin, wph, A)           # [8, lin]
    return y.reshape(CP, B, hph, wph)[:, :, :oh, :ow]    # [8, B, oh, ow]


# ---------------------------------------------------------------------------
# Decoder layer: ConvTranspose2d(stride=2) + ConvTranspose2dSamePad + ReLU
# Sub-pixel decomposition: one stride-1 tap conv with 4*Cout output rows, then
# host-side phase interleave and center crop (ReLU commutes with both).
# ---------------------------------------------------------------------------
def _dec_layer(x, wtap, bias, k, co_p, out_hw):
    cpin, B, h, w = x.shape
    T = (k - 1) // 2
    A = T + 1
    hin, win = h + 2 * T, w + 2 * T
    mh, mw = h + T, w + T                     # per-phase output grid
    lin = B * hin * win
    dmax = (A - 1) * (win + 1)
    xf = jnp.pad(x, ((0, 0), (0, 0), (T, T), (T, T))).reshape(cpin, lin)
    xf = jnp.pad(xf, ((0, 0), (0, dmax)))
    rows = 4 * co_p
    y = _tap_conv(xf, wtap, bias, lin, win, A)           # [4*co_p, lin]
    y = y.reshape(rows, B, hin, win)[:, :, :mh, :mw]     # valid positions only
    # interleave phases: Y[r, 2m+p, 2n+q] = Yhat[(p,q,r), m, n]
    y = y.reshape(2, 2, co_p, B, mh, mw)
    y = jnp.transpose(y, (2, 3, 4, 0, 5, 1)).reshape(co_p, B, 2 * mh, 2 * mw)
    th, tw = 2 * h + k - 2, 2 * w + k - 2     # true ConvTranspose2d output size
    ch, cw = th - out_hw[0], tw - out_hw[1]
    return y[:, :, ch // 2:th - (ch - ch // 2), cw // 2:tw - (cw - cw // 2)]


# ---------------------------------------------------------------------------
# Host-side weight preparation (runs once, outside jit; numpy loops are tiny).
# ---------------------------------------------------------------------------
def _prep_enc(w, b, cp_in):
    """nn.Conv2d weight [co, ci, k, k] -> phase-expanded tap weights
    [A*A, 8, Ceff], column index e = c*4 + p*2 + q."""
    co, ci, k, _ = w.shape
    A = (k + 1) // 2
    ceff = max(CP, -(-(4 * cp_in) // 8) * 8)
    wn = np.asarray(w, np.float32)
    wt = np.zeros((A * A, CP, ceff), np.float32)
    for al in range(A):
        for be in range(A):
            for p in range(2):
                for q in range(2):
                    a, bb = 2 * al + p, 2 * be + q
                    if a < k and bb < k:
                        for c in range(ci):
                            wt[al * A + be, :co, c * 4 + p * 2 + q] = wn[:, c, a, bb]
    b8 = np.zeros((CP, 1), np.float32)
    b8[:co, 0] = np.asarray(b, np.float32)
    return jnp.asarray(wt), jnp.asarray(b8), int(k), int(co)


def _prep_dec(w, b, co_p):
    """nn.ConvTranspose2d weight [ci, co, k, k] -> sub-pixel phase tap weights
    [A*A, 4*co_p, 8], row index = (p*2 + q)*co_p + r."""
    ci, co, k, _ = w.shape
    T = (k - 1) // 2
    A = T + 1
    rows = 4 * co_p
    wn = np.asarray(w, np.float32)
    bn = np.asarray(b, np.float32)
    wt = np.zeros((A * A, rows, CP), np.float32)
    br = np.zeros((rows, 1), np.float32)
    for p in range(2):
        for q in range(2):
            r0 = (p * 2 + q) * co_p
            br[r0:r0 + co, 0] = bn
            for al in range(A):
                for be in range(A):
                    a, bb = 2 * (T - al) + p, 2 * (T - be) + q
                    if a < k and bb < k:
                        wt[al * A + be, r0:r0 + co, :ci] = wn[:, :, a, bb].T
    return jnp.asarray(wt), jnp.asarray(br), int(k), int(co_p), int(co)


# ---------------------------------------------------------------------------
# ConvAE forward (NCHW in / NCHW out, like the PyTorch module)
# ---------------------------------------------------------------------------
def conv_ae_forward(x_nchw, enc_layers, dec_layers):
    x = jnp.transpose(x_nchw, (1, 0, 2, 3))              # NCHW -> [C, B, H, W]
    for (wt, b8, k, _) in enc_layers:                    # pad->conv(s2)->relu
        x = _enc_layer(x, wt, b8, k)
    z = x[:enc_layers[-1][3]]                            # real latent channels
    y = x                                                # decoder uses padded 8-ch
    for i, (wt, br, k, co_p, _) in enumerate(dec_layers):  # deconv->crop->relu
        y = _dec_layer(y, wt, br, k, co_p, SIZES[i])
    y = y[:dec_layers[-1][4]]                            # real output channels
    return (jnp.transpose(y, (1, 0, 2, 3)),              # [C,B,H,W] -> NCHW
            jnp.transpose(z, (1, 0, 2, 3)))


def init_params(key, channels, kernels):
    """Deterministic synthetic weights (shapes match nn.Conv2d/ConvTranspose2d)."""
    enc, dec = [], []
    rc, rk = list(reversed(channels)), list(reversed(kernels))
    for i in range(1, len(channels)):
        key, k1, k2 = jax.random.split(key, 3)
        ci, co, k = channels[i - 1], channels[i], kernels[i - 1]
        w = jax.random.normal(k1, (co, ci, k, k), jnp.float32) / jnp.sqrt(ci * k * k)
        b = jax.random.normal(k2, (co,), jnp.float32) * 0.01
        enc.append((w, b, k))
    for i in range(len(rc) - 1):
        key, k1, k2 = jax.random.split(key, 3)
        ci, co, k = rc[i], rc[i + 1], rk[i]
        w = jax.random.normal(k1, (ci, co, k, k), jnp.float32) / jnp.sqrt(ci * k * k)
        b = jax.random.normal(k2, (co,), jnp.float32) * 0.01
        dec.append((w, b, k))
    return enc, dec


# Pure-JAX reference (lax convs, NCHW) used only as a correctness oracle.
def _ref_forward(x, enc_params, dec_params):
    dn = ('NCHW', 'OIHW', 'NCHW')
    y = x
    for (w, b, k) in enc_params:
        H, W = y.shape[2], y.shape[3]
        oh, ow = -(-H // 2), -(-W // 2)
        ph, pw = (oh - 1) * 2 + k - H, (ow - 1) * 2 + k - W
        y = jnp.pad(y, ((0, 0), (0, 0), (ph // 2, ph - ph // 2),
                        (pw // 2, pw - pw // 2)))
        y = lax.conv_general_dilated(y, w, (2, 2), 'VALID', dimension_numbers=dn)
        y = jax.nn.relu(y + b[None, :, None, None])
    z = y
    for i, (w, b, k) in enumerate(dec_params):
        w_conv = jnp.transpose(w[:, :, ::-1, ::-1], (1, 0, 2, 3))
        y = lax.conv_general_dilated(y, w_conv, (1, 1),
                                     [(k - 1, k - 1), (k - 1, k - 1)],
                                     lhs_dilation=(2, 2), dimension_numbers=dn)
        y = y + b[None, :, None, None]
        H2, W2 = y.shape[2], y.shape[3]
        ph, pw = H2 - SIZES[i][0], W2 - SIZES[i][1]
        y = jax.nn.relu(y[:, :, ph // 2:H2 - (ph - ph // 2),
                          pw // 2:W2 - (pw - pw // 2)])
    return y, z


if __name__ == "__main__":
    channels = [1, 4, 8, 8]   # grayscale input; 3 encoder / 3 decoder layers
    kernels = [5, 3, 3]       # len(kernels) == len(channels) - 1
    key = jax.random.PRNGKey(0)
    kx, kp = jax.random.split(key)
    # sizes=[[12,11],[24,21],[48,42]] in the module imply a 48x42 input image.
    x = jax.random.normal(kx, (2, 1, 48, 42), jnp.float32)
    enc_params, dec_params = init_params(kp, channels, kernels)

    # Prepare kernel-ready weights (constant-folded under jit).
    cp_in = [channels[0]] + [CP] * (len(channels) - 2)   # padded input chans/layer
    enc_layers = [_prep_enc(w, b, cp) for (w, b, _), cp in zip(enc_params, cp_in)]
    dec_layers = []
    for i, (w, b, _) in enumerate(dec_params):
        co = int(w.shape[1])
        # keep 8 padded channels between layers; last layer only needs even rows
        co_p = CP if i < len(dec_params) - 1 else max(2, -(-co // 2) * 2)
        dec_layers.append(_prep_dec(w, b, co_p))

    fwd = jax.jit(lambda xx: conv_ae_forward(xx, enc_layers, dec_layers))
    y, z = fwd(x)
    jax.block_until_ready((y, z))

    assert y.shape == (2, 1, 48, 42) and z.shape == (2, 8, 6, 6)
    y_ref, z_ref = _ref_forward(x, enc_params, dec_params)
    np.testing.assert_allclose(np.asarray(z), np.asarray(z_ref), atol=1e-4, rtol=1e-4)
    np.testing.assert_allclose(np.asarray(y), np.asarray(y_ref), atol=1e-4, rtol=1e-4)
    print("KERNEL_OK")
</pallas_src>

<mosaic_0001>
module attributes {stable_mosaic.version = 11 : i64} {
  func.func @kernel(%arg0: i32, %arg1: memref<8x1244xf32, #tpu.memory_space<vmem>>, %arg2: memref<9x8x8xf32, #tpu.memory_space<vmem>>, %arg3: memref<8x1xf32, #tpu.memory_space<vmem>>, %arg4: memref<8x1196xf32, #tpu.memory_space<vmem>>) attributes {dimension_semantics = [#tpu.dimension_semantics<arbitrary>], iteration_bounds = array<i64: 1>, scalar_prefetch = 0 : i64, scratch_operands = 0 : i64, tpu.core_type = #tpu.core_type<tc>, window_params = [{pipeline_mode = #tpu.pipeline_mode<synchronous>, transform_indices = @transform_0, window_bounds = array<i64: 8, 1244>}, {pipeline_mode = #tpu.pipeline_mode<synchronous>, transform_indices = @transform_1, window_bounds = array<i64: 9, 8, 8>}, {pipeline_mode = #tpu.pipeline_mode<synchronous>, transform_indices = @transform_2, window_bounds = array<i64: 8, 1>}, {pipeline_mode = #tpu.pipeline_mode<synchronous>, transform_indices = @transform_3, window_bounds = array<i64: 8, 1196>}]} {
    %c0 = arith.constant 0 : index
    %c0_0 = arith.constant 0 : index
    %c0_1 = arith.constant 0 : index
    %0 = vector.load %arg2[%c0, %c0_0, %c0_1] : memref<9x8x8xf32, #tpu.memory_space<vmem>>, vector<1x8x8xf32>
    %1 = vector.shape_cast %0 : vector<1x8x8xf32> to vector<8x8xf32>
    %c0_2 = arith.constant 0 : index
    %c0_3 = arith.constant 0 : index
    %2 = vector.load %arg1[%c0_2, %c0_3] : memref<8x1244xf32, #tpu.memory_space<vmem>>, vector<8x1196xf32>
    %cst = arith.constant dense<0.000000e+00> : vector<8x1196xf32>
    %3 = tpu.matmul %1, %2, %cst {dimension_numbers = #tpu.dot_dimension_numbers<[1], [0], [0], [1], [0, 0, 1, 1], [], []>} : vector<8x8xf32>, vector<8x1196xf32>, vector<8x1196xf32> -> vector<8x1196xf32>
    %c1 = arith.constant 1 : index
    %c0_4 = arith.constant 0 : index
    %c0_5 = arith.constant 0 : index
    %4 = vector.load %arg2[%c1, %c0_4, %c0_5] : memref<9x8x8xf32, #tpu.memory_space<vmem>>, vector<1x8x8xf32>
    %5 = vector.shape_cast %4 : vector<1x8x8xf32> to vector<8x8xf32>
    %c0_6 = arith.constant 0 : index
    %c1_7 = arith.constant 1 : index
    %6 = vector.load %arg1[%c0_6, %c1_7] : memref<8x1244xf32, #tpu.memory_space<vmem>>, vector<8x1196xf32>
    %cst_8 = arith.constant dense<0.000000e+00> : vector<8x1196xf32>
    %7 = tpu.matmul %5, %6, %cst_8 {dimension_numbers = #tpu.dot_dimension_numbers<[1], [0], [0], [1], [0, 0, 1, 1], [], []>} : vector<8x8xf32>, vector<8x1196xf32>, vector<8x1196xf32> -> vector<8x1196xf32>
    %8 = arith.addf %3, %7 : vector<8x1196xf32>
    %c2 = arith.constant 2 : index
    %c0_9 = arith.constant 0 : index
    %c0_10 = arith.constant 0 : index
    %9 = vector.load %arg2[%c2, %c0_9, %c0_10] : memref<9x8x8xf32, #tpu.memory_space<vmem>>, vector<1x8x8xf32>
    %10 = vector.shape_cast %9 : vector<1x8x8xf32> to vector<8x8xf32>
    %c0_11 = arith.constant 0 : index
    %c2_12 = arith.constant 2 : index
    %11 = vector.load %arg1[%c0_11, %c2_12] : memref<8x1244xf32, #tpu.memory_space<vmem>>, vector<8x1196xf32>
    %cst_13 = arith.constant dense<0.000000e+00> : vector<8x1196xf32>
    %12 = tpu.matmul %10, %11, %cst_13 {dimension_numbers = #tpu.dot_dimension_numbers<[1], [0], [0], [1], [0, 0, 1, 1], [], []>} : vector<8x8xf32>, vector<8x1196xf32>, vector<8x1196xf32> -> vector<8x1196xf32>
    %13 = arith.addf %8, %12 : vector<8x1196xf32>
    %c3 = arith.constant 3 : index
    %c0_14 = arith.constant 0 : index
    %c0_15 = arith.constant 0 : index
    %14 = vector.load %arg2[%c3, %c0_14, %c0_15] : memref<9x8x8xf32, #tpu.memory_space<vmem>>, vector<1x8x8xf32>
    %15 = vector.shape_cast %14 : vector<1x8x8xf32> to vector<8x8xf32>
    %c0_16 = arith.constant 0 : index
    %c23 = arith.constant 23 : index
    %16 = vector.load %arg1[%c0_16, %c23] : memref<8x1244xf32, #tpu.memory_space<vmem>>, vector<8x1196xf32>
    %cst_17 = arith.constant dense<0.000000e+00> : vector<8x1196xf32>
    %17 = tpu.matmul %15, %16, %cst_17 {dimension_numbers = #tpu.dot_dimension_numbers<[1], [0], [0], [1], [0, 0, 1, 1], [], []>} : vector<8x8xf32>, vector<8x1196xf32>, vector<8x1196xf32> -> vector<8x1196xf32>
    %18 = arith.addf %13, %17 : vector<8x1196xf32>
    %c4 = arith.constant 4 : index
    %c0_18 = arith.constant 0 : index
    %c0_19 = arith.constant 0 : index
    %19 = vector.load %arg2[%c4, %c0_18, %c0_19] : memref<9x8x8xf32, #tpu.memory_space<vmem>>, vector<1x8x8xf32>
    %20 = vector.shape_cast %19 : vector<1x8x8xf32> to vector<8x8xf32>
    %c0_20 = arith.constant 0 : index
    %c24 = arith.constant 24 : index
    %21 = vector.load %arg1[%c0_20, %c24] : memref<8x1244xf32, #tpu.memory_space<vmem>>, vector<8x1196xf32>
    %cst_21 = arith.constant dense<0.000000e+00> : vector<8x1196xf32>
    %22 = tpu.matmul %20, %21, %cst_21 {dimension_numbers = #tpu.dot_dimension_numbers<[1], [0], [0], [1], [0, 0, 1, 1], [], []>} : vector<8x8xf32>, vector<8x1196xf32>, vector<8x1196xf32> -> vector<8x1196xf32>
    %23 = arith.addf %18, %22 : vector<8x1196xf32>
    %c5 = arith.constant 5 : index
    %c0_22 = arith.constant 0 : index
    %c0_23 = arith.constant 0 : index
    %24 = vector.load %arg2[%c5, %c0_22, %c0_23] : memref<9x8x8xf32, #tpu.memory_space<vmem>>, vector<1x8x8xf32>
    %25 = vector.shape_cast %24 : vector<1x8x8xf32> to vector<8x8xf32>
    %c0_24 = arith.constant 0 : index
    %c25 = arith.constant 25 : index
    %26 = vector.load %arg1[%c0_24, %c25] : memref<8x1244xf32, #tpu.memory_space<vmem>>, vector<8x1196xf32>
    %cst_25 = arith.constant dense<0.000000e+00> : vector<8x1196xf32>
    %27 = tpu.matmul %25, %26, %cst_25 {dimension_numbers = #tpu.dot_dimension_numbers<[1], [0], [0], [1], [0, 0, 1, 1], [], []>} : vector<8x8xf32>, vector<8x1196xf32>, vector<8x1196xf32> -> vector<8x1196xf32>
    %28 = arith.addf %23, %27 : vector<8x1196xf32>
    %c6 = arith.constant 6 : index
    %c0_26 = arith.constant 0 : index
    %c0_27 = arith.constant 0 : index
    %29 = vector.load %arg2[%c6, %c0_26, %c0_27] : memref<9x8x8xf32, #tpu.memory_space<vmem>>, vector<1x8x8xf32>
    %30 = vector.shape_cast %29 : vector<1x8x8xf32> to vector<8x8xf32>
    %c0_28 = arith.constant 0 : index
    %c46 = arith.constant 46 : index
    %31 = vector.load %arg1[%c0_28, %c46] : memref<8x1244xf32, #tpu.memory_space<vmem>>, vector<8x1196xf32>
    %cst_29 = arith.constant dense<0.000000e+00> : vector<8x1196xf32>
    %32 = tpu.matmul %30, %31, %cst_29 {dimension_numbers = #tpu.dot_dimension_numbers<[1], [0], [0], [1], [0, 0, 1, 1], [], []>} : vector<8x8xf32>, vector<8x1196xf32>, vector<8x1196xf32> -> vector<8x1196xf32>
    %33 = arith.addf %28, %32 : vector<8x1196xf32>
    %c7 = arith.constant 7 : index
    %c0_30 = arith.constant 0 : index
    %c0_31 = arith.constant 0 : index
    %34 = vector.load %arg2[%c7, %c0_30, %c0_31] : memref<9x8x8xf32, #tpu.memory_space<vmem>>, vector<1x8x8xf32>
    %35 = vector.shape_cast %34 : vector<1x8x8xf32> to vector<8x8xf32>
    %c0_32 = arith.constant 0 : index
    %c47 = arith.constant 47 : index
    %36 = vector.load %arg1[%c0_32, %c47] : memref<8x1244xf32, #tpu.memory_space<vmem>>, vector<8x1196xf32>
    %cst_33 = arith.constant dense<0.000000e+00> : vector<8x1196xf32>
    %37 = tpu.matmul %35, %36, %cst_33 {dimension_numbers = #tpu.dot_dimension_numbers<[1], [0], [0], [1], [0, 0, 1, 1], [], []>} : vector<8x8xf32>, vector<8x1196xf32>, vector<8x1196xf32> -> vector<8x1196xf32>
    %38 = arith.addf %33, %37 : vector<8x1196xf32>
    %c8 = arith.constant 8 : index
    %c0_34 = arith.constant 0 : index
    %c0_35 = arith.constant 0 : index
    %39 = vector.load %arg2[%c8, %c0_34, %c0_35] : memref<9x8x8xf32, #tpu.memory_space<vmem>>, vector<1x8x8xf32>
    %40 = vector.shape_cast %39 : vector<1x8x8xf32> to vector<8x8xf32>
    %c0_36 = arith.constant 0 : index
    %c48 = arith.constant 48 : index
    %41 = vector.load %arg1[%c0_36, %c48] : memref<8x1244xf32, #tpu.memory_space<vmem>>, vector<8x1196xf32>
    %cst_37 = arith.constant dense<0.000000e+00> : vector<8x1196xf32>
    %42 = tpu.matmul %40, %41, %cst_37 {dimension_numbers = #tpu.dot_dimension_numbers<[1], [0], [0], [1], [0, 0, 1, 1], [], []>} : vector<8x8xf32>, vector<8x1196xf32>, vector<8x1196xf32> -> vector<8x1196xf32>
    %43 = arith.addf %38, %42 : vector<8x1196xf32>
    %c0_38 = arith.constant 0 : index
    %c0_39 = arith.constant 0 : index
    %44 = vector.load %arg3[%c0_38, %c0_39] : memref<8x1xf32, #tpu.memory_space<vmem>>, vector<8x1xf32>
    %45 = vector.broadcast %44 : vector<8x1xf32> to vector<8x1196xf32>
    %46 = arith.addf %43, %45 : vector<8x1196xf32>
    %cst_40 = arith.constant 0.000000e+00 : f32
    %47 = vector.broadcast %cst_40 : f32 to vector<8x1196xf32>
    %48 = arith.maximumf %46, %47 : vector<8x1196xf32>
    %c0_41 = arith.constant 0 : index
    %c0_42 = arith.constant 0 : index
    %49 = vector.load %arg4[%c0_41, %c0_42] : memref<8x1196xf32, #tpu.memory_space<vmem>>, vector<8x1196xf32>
    tpu.vector_store %arg4[%c0_41, %c0_42], %48 {strides = array<i32>} : memref<8x1196xf32, #tpu.memory_space<vmem>>, vector<8x1196xf32>,
    return
  }
  func.func @transform_0(%arg0: i32) -> (i32, i32) {
    %c0_i32 = arith.constant 0 : i32
    %c0_i32_0 = arith.constant 0 : i32
    %c0_i32_1 = arith.constant 0 : i32
    return %c0_i32, %c0_i32_0 : i32, i32
  }
  func.func @transform_1(%arg0: i32) -> (i32, i32, i32) {
    %c0_i32 = arith.constant 0 : i32
    %c0_i32_0 = arith.constant 0 : i32
    %c0_i32_1 = arith.constant 0 : i32
    %c0_i32_2 = arith.constant 0 : i32
    return %c0_i32, %c0_i32_0, %c0_i32_1 : i32, i32, i32
  }
  func.func @transform_2(%arg0: i32) -> (i32, i32) {
    %c0_i32 = arith.constant 0 : i32
    %c0_i32_0 = arith.constant 0 : i32
    %c0_i32_1 = arith.constant 0 : i32
    return %c0_i32, %c0_i32_0 : i32, i32
  }
  func.func @transform_3(%arg0: i32) -> (i32, i32) {
    %c0_i32 = arith.constant 0 : i32
    %c0_i32_0 = arith.constant 0 : i32
    %c0_i32_1 = arith.constant 0 : i32
    return %c0_i32, %c0_i32_0 : i32, i32
  }
}

module attributes {stable_mosaic.version = 11 : i64} {
  func.func @kernel(%arg0: i32, %arg1: memref<32x325xf32, #tpu.memory_space<vmem>>, %arg2: memref<4x8x32xf32, #tpu.memory_space<vmem>>, %arg3: memref<8x1xf32, #tpu.memory_space<vmem>>, %arg4: memref<8x312xf32, #tpu.memory_space<vmem>>) attributes {dimension_semantics = [#tpu.dimension_semantics<arbitrary>], iteration_bounds = array<i64: 1>, scalar_prefetch = 0 : i64, scratch_operands = 0 : i64, tpu.core_type = #tpu.core_type<tc>, window_params = [{pipeline_mode = #tpu.pipeline_mode<synchronous>, transform_indices = @transform_0, window_bounds = array<i64: 32, 325>}, {pipeline_mode = #tpu.pipeline_mode<synchronous>, transform_indices = @transform_1, window_bounds = array<i64: 4, 8, 32>}, {pipeline_mode = #tpu.pipeline_mode<synchronous>, transform_indices = @transform_2, window_bounds = array<i64: 8, 1>}, {pipeline_mode = #tpu.pipeline_mode<synchronous>, transform_indices = @transform_3, window_bounds = array<i64: 8, 312>}]} {
    %c0 = arith.constant 0 : index
    %c0_0 = arith.constant 0 : index
    %c0_1 = arith.constant 0 : index
    %0 = vector.load %arg2[%c0, %c0_0, %c0_1] : memref<4x8x32xf32, #tpu.memory_space<vmem>>, vector<1x8x32xf32>
    %1 = vector.shape_cast %0 : vector<1x8x32xf32> to vector<8x32xf32>
    %c0_2 = arith.constant 0 : index
    %c0_3 = arith.constant 0 : index
    %2 = vector.load %arg1[%c0_2, %c0_3] : memref<32x325xf32, #tpu.memory_space<vmem>>, vector<32x312xf32>
    %cst = arith.constant dense<0.000000e+00> : vector<8x312xf32>
    %3 = tpu.matmul %1, %2, %cst {dimension_numbers = #tpu.dot_dimension_numbers<[1], [0], [0], [1], [0, 0, 1, 1], [], []>} : vector<8x32xf32>, vector<32x312xf32>, vector<8x312xf32> -> vector<8x312xf32>
    %c1 = arith.constant 1 : index
    %c0_4 = arith.constant 0 : index
    %c0_5 = arith.constant 0 : index
    %4 = vector.load %arg2[%c1, %c0_4, %c0_5] : memref<4x8x32xf32, #tpu.memory_space<vmem>>, vector<1x8x32xf32>
    %5 = vector.shape_cast %4 : vector<1x8x32xf32> to vector<8x32xf32>
    %c0_6 = arith.constant 0 : index
    %c1_7 = arith.constant 1 : index
    %6 = vector.load %arg1[%c0_6, %c1_7] : memref<32x325xf32, #tpu.memory_space<vmem>>, vector<32x312xf32>
    %cst_8 = arith.constant dense<0.000000e+00> : vector<8x312xf32>
    %7 = tpu.matmul %5, %6, %cst_8 {dimension_numbers = #tpu.dot_dimension_numbers<[1], [0], [0], [1], [0, 0, 1, 1], [], []>} : vector<8x32xf32>, vector<32x312xf32>, vector<8x312xf32> -> vector<8x312xf32>
    %8 = arith.addf %3, %7 : vector<8x312xf32>
    %c2 = arith.constant 2 : index
    %c0_9 = arith.constant 0 : index
    %c0_10 = arith.constant 0 : index
    %9 = vector.load %arg2[%c2, %c0_9, %c0_10] : memref<4x8x32xf32, #tpu.memory_space<vmem>>, vector<1x8x32xf32>
    %10 = vector.shape_cast %9 : vector<1x8x32xf32> to vector<8x32xf32>
    %c0_11 = arith.constant 0 : index
    %c12 = arith.constant 12 : index
    %11 = vector.load %arg1[%c0_11, %c12] : memref<32x325xf32, #tpu.memory_space<vmem>>, vector<32x312xf32>
    %cst_12 = arith.constant dense<0.000000e+00> : vector<8x312xf32>
    %12 = tpu.matmul %10, %11, %cst_12 {dimension_numbers = #tpu.dot_dimension_numbers<[1], [0], [0], [1], [0, 0, 1, 1], [], []>} : vector<8x32xf32>, vector<32x312xf32>, vector<8x312xf32> -> vector<8x312xf32>
    %13 = arith.addf %8, %12 : vector<8x312xf32>
    %c3 = arith.constant 3 : index
    %c0_13 = arith.constant 0 : index
    %c0_14 = arith.constant 0 : index
    %14 = vector.load %arg2[%c3, %c0_13, %c0_14] : memref<4x8x32xf32, #tpu.memory_space<vmem>>, vector<1x8x32xf32>
    %15 = vector.shape_cast %14 : vector<1x8x32xf32> to vector<8x32xf32>
    %c0_15 = arith.constant 0 : index
    %c13 = arith.constant 13 : index
    %16 = vector.load %arg1[%c0_15, %c13] : memref<32x325xf32, #tpu.memory_space<vmem>>, vector<32x312xf32>
    %cst_16 = arith.constant dense<0.000000e+00> : vector<8x312xf32>
    %17 = tpu.matmul %15, %16, %cst_16 {dimension_numbers = #tpu.dot_dimension_numbers<[1], [0], [0], [1], [0, 0, 1, 1], [], []>} : vector<8x32xf32>, vector<32x312xf32>, vector<8x312xf32> -> vector<8x312xf32>
    %18 = arith.addf %13, %17 : vector<8x312xf32>
    %c0_17 = arith.constant 0 : index
    %c0_18 = arith.constant 0 : index
    %19 = vector.load %arg3[%c0_17, %c0_18] : memref<8x1xf32, #tpu.memory_space<vmem>>, vector<8x1xf32>
    %20 = vector.broadcast %19 : vector<8x1xf32> to vector<8x312xf32>
    %21 = arith.addf %18, %20 : vector<8x312xf32>
    %cst_19 = arith.constant 0.000000e+00 : f32
    %22 = vector.broadcast %cst_19 : f32 to vector<8x312xf32>
    %23 = arith.maximumf %21, %22 : vector<8x312xf32>
    %c0_20 = arith.constant 0 : index
    %c0_21 = arith.constant 0 : index
    %24 = vector.load %arg4[%c0_20, %c0_21] : memref<8x312xf32, #tpu.memory_space<vmem>>, vector<8x312xf32>
    tpu.vector_store %arg4[%c0_20, %c0_21], %23 {strides = array<i32>} : memref<8x312xf32, #tpu.memory_space<vmem>>, vector<8x312xf32>,
    return
  }
  func.func @transform_0(%arg0: i32) -> (i32, i32) {
    %c0_i32 = arith.constant 0 : i32
    %c0_i32_0 = arith.constant 0 : i32
    %c0_i32_1 = arith.constant 0 : i32
    return %c0_i32, %c0_i32_0 : i32, i32
  }
  func.func @transform_1(%arg0: i32) -> (i32, i32, i32) {
    %c0_i32 = arith.constant 0 : i32
    %c0_i32_0 = arith.constant 0 : i32
    %c0_i32_1 = arith.constant 0 : i32
    %c0_i32_2 = arith.constant 0 : i32
    return %c0_i32, %c0_i32_0, %c0_i32_1 : i32, i32, i32
  }
  func.func @transform_2(%arg0: i32) -> (i32, i32) {
    %c0_i32 = arith.constant 0 : i32
    %c0_i32_0 = arith.constant 0 : i32
    %c0_i32_1 = arith.constant 0 : i32
    return %c0_i32, %c0_i32_0 : i32, i32
  }
  func.func @transform_3(%arg0: i32) -> (i32, i32) {
    %c0_i32 = arith.constant 0 : i32
    %c0_i32_0 = arith.constant 0 : i32
    %c0_i32_1 = arith.constant 0 : i32
    return %c0_i32, %c0_i32_0 : i32, i32
  }
}

module attributes {stable_mosaic.version = 11 : i64} {
  func.func @kernel(%arg0: i32, %arg1: memref<32x106xf32, #tpu.memory_space<vmem>>, %arg2: memref<4x8x32xf32, #tpu.memory_space<vmem>>, %arg3: memref<8x1xf32, #tpu.memory_space<vmem>>, %arg4: memref<8x98xf32, #tpu.memory_space<vmem>>) attributes {dimension_semantics = [#tpu.dimension_semantics<arbitrary>], iteration_bounds = array<i64: 1>, scalar_prefetch = 0 : i64, scratch_operands = 0 : i64, tpu.core_type = #tpu.core_type<tc>, window_params = [{pipeline_mode = #tpu.pipeline_mode<synchronous>, transform_indices = @transform_0, window_bounds = array<i64: 32, 106>}, {pipeline_mode = #tpu.pipeline_mode<synchronous>, transform_indices = @transform_1, window_bounds = array<i64: 4, 8, 32>}, {pipeline_mode = #tpu.pipeline_mode<synchronous>, transform_indices = @transform_2, window_bounds = array<i64: 8, 1>}, {pipeline_mode = #tpu.pipeline_mode<synchronous>, transform_indices = @transform_3, window_bounds = array<i64: 8, 98>}]} {
    %c0 = arith.constant 0 : index
    %c0_0 = arith.constant 0 : index
    %c0_1 = arith.constant 0 : index
    %0 = vector.load %arg2[%c0, %c0_0, %c0_1] : memref<4x8x32xf32, #tpu.memory_space<vmem>>, vector<1x8x32xf32>
    %1 = vector.shape_cast %0 : vector<1x8x32xf32> to vector<8x32xf32>
    %c0_2 = arith.constant 0 : index
    %c0_3 = arith.constant 0 : index
    %2 = vector.load %arg1[%c0_2, %c0_3] : memref<32x106xf32, #tpu.memory_space<vmem>>, vector<32x98xf32>
    %cst = arith.constant dense<0.000000e+00> : vector<8x98xf32>
    %3 = tpu.matmul %1, %2, %cst {dimension_numbers = #tpu.dot_dimension_numbers<[1], [0], [0], [1], [0, 0, 1, 1], [], []>} : vector<8x32xf32>, vector<32x98xf32>, vector<8x98xf32> -> vector<8x98xf32>
    %c1 = arith.constant 1 : index
    %c0_4 = arith.constant 0 : index
    %c0_5 = arith.constant 0 : index
    %4 = vector.load %arg2[%c1, %c0_4, %c0_5] : memref<4x8x32xf32, #tpu.memory_space<vmem>>, vector<1x8x32xf32>
    %5 = vector.shape_cast %4 : vector<1x8x32xf32> to vector<8x32xf32>
    %c0_6 = arith.constant 0 : index
    %c1_7 = arith.constant 1 : index
    %6 = vector.load %arg1[%c0_6, %c1_7] : memref<32x106xf32, #tpu.memory_space<vmem>>, vector<32x98xf32>
    %cst_8 = arith.constant dense<0.000000e+00> : vector<8x98xf32>
    %7 = tpu.matmul %5, %6, %cst_8 {dimension_numbers = #tpu.dot_dimension_numbers<[1], [0], [0], [1], [0, 0, 1, 1], [], []>} : vector<8x32xf32>, vector<32x98xf32>, vector<8x98xf32> -> vector<8x98xf32>
    %8 = arith.addf %3, %7 : vector<8x98xf32>
    %c2 = arith.constant 2 : index
    %c0_9 = arith.constant 0 : index
    %c0_10 = arith.constant 0 : index
    %9 = vector.load %arg2[%c2, %c0_9, %c0_10] : memref<4x8x32xf32, #tpu.memory_space<vmem>>, vector<1x8x32xf32>
    %10 = vector.shape_cast %9 : vector<1x8x32xf32> to vector<8x32xf32>
    %c0_11 = arith.constant 0 : index
    %c7 = arith.constant 7 : index
    %11 = vector.load %arg1[%c0_11, %c7] : memref<32x106xf32, #tpu.memory_space<vmem>>, vector<32x98xf32>
    %cst_12 = arith.constant dense<0.000000e+00> : vector<8x98xf32>
    %12 = tpu.matmul %10, %11, %cst_12 {dimension_numbers = #tpu.dot_dimension_numbers<[1], [0], [0], [1], [0, 0, 1, 1], [], []>} : vector<8x32xf32>, vector<32x98xf32>, vector<8x98xf32> -> vector<8x98xf32>
    %13 = arith.addf %8, %12 : vector<8x98xf32>
    %c3 = arith.constant 3 : index
    %c0_13 = arith.constant 0 : index
    %c0_14 = arith.constant 0 : index
    %14 = vector.load %arg2[%c3, %c0_13, %c0_14] : memref<4x8x32xf32, #tpu.memory_space<vmem>>, vector<1x8x32xf32>
    %15 = vector.shape_cast %14 : vector<1x8x32xf32> to vector<8x32xf32>
    %c0_15 = arith.constant 0 : index
    %c8 = arith.constant 8 : index
    %16 = vector.load %arg1[%c0_15, %c8] : memref<32x106xf32, #tpu.memory_space<vmem>>, vector<32x98xf32>
    %cst_16 = arith.constant dense<0.000000e+00> : vector<8x98xf32>
    %17 = tpu.matmul %15, %16, %cst_16 {dimension_numbers = #tpu.dot_dimension_numbers<[1], [0], [0], [1], [0, 0, 1, 1], [], []>} : vector<8x32xf32>, vector<32x98xf32>, vector<8x98xf32> -> vector<8x98xf32>
    %18 = arith.addf %13, %17 : vector<8x98xf32>
    %c0_17 = arith.constant 0 : index
    %c0_18 = arith.constant 0 : index
    %19 = vector.load %arg3[%c0_17, %c0_18] : memref<8x1xf32, #tpu.memory_space<vmem>>, vector<8x1xf32>
    %20 = vector.broadcast %19 : vector<8x1xf32> to vector<8x98xf32>
    %21 = arith.addf %18, %20 : vector<8x98xf32>
    %cst_19 = arith.constant 0.000000e+00 : f32
    %22 = vector.broadcast %cst_19 : f32 to vector<8x98xf32>
    %23 = arith.maximumf %21, %22 : vector<8x98xf32>
    %c0_20 = arith.constant 0 : index
    %c0_21 = arith.constant 0 : index
    %24 = vector.load %arg4[%c0_20, %c0_21] : memref<8x98xf32, #tpu.memory_space<vmem>>, vector<8x98xf32>
    tpu.vector_store %arg4[%c0_20, %c0_21], %23 {strides = array<i32>} : memref<8x98xf32, #tpu.memory_space<vmem>>, vector<8x98xf32>,
    return
  }
  func.func @transform_0(%arg0: i32) -> (i32, i32) {
    %c0_i32 = arith.constant 0 : i32
    %c0_i32_0 = arith.constant 0 : i32
    %c0_i32_1 = arith.constant 0 : i32
    return %c0_i32, %c0_i32_0 : i32, i32
  }
  func.func @transform_1(%arg0: i32) -> (i32, i32, i32) {
    %c0_i32 = arith.constant 0 : i32
    %c0_i32_0 = arith.constant 0 : i32
    %c0_i32_1 = arith.constant 0 : i32
    %c0_i32_2 = arith.constant 0 : i32
    return %c0_i32, %c0_i32_0, %c0_i32_1 : i32, i32, i32
  }
  func.func @transform_2(%arg0: i32) -> (i32, i32) {
    %c0_i32 = arith.constant 0 : i32
    %c0_i32_0 = arith.constant 0 : i32
    %c0_i32_1 = arith.constant 0 : i32
    return %c0_i32, %c0_i32_0 : i32, i32
  }
  func.func @transform_3(%arg0: i32) -> (i32, i32) {
    %c0_i32 = arith.constant 0 : i32
    %c0_i32_0 = arith.constant 0 : i32
    %c0_i32_1 = arith.constant 0 : i32
    return %c0_i32, %c0_i32_0 : i32, i32
  }
}

module attributes {stable_mosaic.version = 11 : i64} {
  func.func @kernel(%arg0: i32, %arg1: memref<8x137xf32, #tpu.memory_space<vmem>>, %arg2: memref<4x32x8xf32, #tpu.memory_space<vmem>>, %arg3: memref<32x1xf32, #tpu.memory_space<vmem>>, %arg4: memref<32x128xf32, #tpu.memory_space<vmem>>) attributes {dimension_semantics = [#tpu.dimension_semantics<arbitrary>], iteration_bounds = array<i64: 1>, scalar_prefetch = 0 : i64, scratch_operands = 0 : i64, tpu.core_type = #tpu.core_type<tc>, window_params = [{pipeline_mode = #tpu.pipeline_mode<synchronous>, transform_indices = @transform_0, window_bounds = array<i64: 8, 137>}, {pipeline_mode = #tpu.pipeline_mode<synchronous>, transform_indices = @transform_1, window_bounds = array<i64: 4, 32, 8>}, {pipeline_mode = #tpu.pipeline_mode<synchronous>, transform_indices = @transform_2, window_bounds = array<i64: 32, 1>}, {pipeline_mode = #tpu.pipeline_mode<synchronous>, transform_indices = @transform_3, window_bounds = array<i64: 32, 128>}]} {
    %c0 = arith.constant 0 : index
    %c0_0 = arith.constant 0 : index
    %c0_1 = arith.constant 0 : index
    %0 = vector.load %arg2[%c0, %c0_0, %c0_1] : memref<4x32x8xf32, #tpu.memory_space<vmem>>, vector<1x32x8xf32>
    %1 = vector.shape_cast %0 : vector<1x32x8xf32> to vector<32x8xf32>
    %c0_2 = arith.constant 0 : index
    %c0_3 = arith.constant 0 : index
    %2 = vector.load %arg1[%c0_2, %c0_3] : memref<8x137xf32, #tpu.memory_space<vmem>>, vector<8x128xf32>
    %cst = arith.constant dense<0.000000e+00> : vector<32x128xf32>
    %3 = tpu.matmul %1, %2, %cst {dimension_numbers = #tpu.dot_dimension_numbers<[1], [0], [0], [1], [0, 0, 1, 1], [], []>} : vector<32x8xf32>, vector<8x128xf32>, vector<32x128xf32> -> vector<32x128xf32>
    %c1 = arith.constant 1 : index
    %c0_4 = arith.constant 0 : index
    %c0_5 = arith.constant 0 : index
    %4 = vector.load %arg2[%c1, %c0_4, %c0_5] : memref<4x32x8xf32, #tpu.memory_space<vmem>>, vector<1x32x8xf32>
    %5 = vector.shape_cast %4 : vector<1x32x8xf32> to vector<32x8xf32>
    %c0_6 = arith.constant 0 : index
    %c1_7 = arith.constant 1 : index
    %6 = vector.load %arg1[%c0_6, %c1_7] : memref<8x137xf32, #tpu.memory_space<vmem>>, vector<8x128xf32>
    %cst_8 = arith.constant dense<0.000000e+00> : vector<32x128xf32>
    %7 = tpu.matmul %5, %6, %cst_8 {dimension_numbers = #tpu.dot_dimension_numbers<[1], [0], [0], [1], [0, 0, 1, 1], [], []>} : vector<32x8xf32>, vector<8x128xf32>, vector<32x128xf32> -> vector<32x128xf32>
    %8 = arith.addf %3, %7 : vector<32x128xf32>
    %c2 = arith.constant 2 : index
    %c0_9 = arith.constant 0 : index
    %c0_10 = arith.constant 0 : index
    %9 = vector.load %arg2[%c2, %c0_9, %c0_10] : memref<4x32x8xf32, #tpu.memory_space<vmem>>, vector<1x32x8xf32>
    %10 = vector.shape_cast %9 : vector<1x32x8xf32> to vector<32x8xf32>
    %c0_11 = arith.constant 0 : index
    %c8 = arith.constant 8 : index
    %11 = vector.load %arg1[%c0_11, %c8] : memref<8x137xf32, #tpu.memory_space<vmem>>, vector<8x128xf32>
    %cst_12 = arith.constant dense<0.000000e+00> : vector<32x128xf32>
    %12 = tpu.matmul %10, %11, %cst_12 {dimension_numbers = #tpu.dot_dimension_numbers<[1], [0], [0], [1], [0, 0, 1, 1], [], []>} : vector<32x8xf32>, vector<8x128xf32>, vector<32x128xf32> -> vector<32x128xf32>
    %13 = arith.addf %8, %12 : vector<32x128xf32>
    %c3 = arith.constant 3 : index
    %c0_13 = arith.constant 0 : index
    %c0_14 = arith.constant 0 : index
    %14 = vector.load %arg2[%c3, %c0_13, %c0_14] : memref<4x32x8xf32, #tpu.memory_space<vmem>>, vector<1x32x8xf32>
    %15 = vector.shape_cast %14 : vector<1x32x8xf32> to vector<32x8xf32>
    %c0_15 = arith.constant 0 : index
    %c9 = arith.constant 9 : index
    %16 = vector.load %arg1[%c0_15, %c9] : memref<8x137xf32, #tpu.memory_space<vmem>>, vector<8x128xf32>
    %cst_16 = arith.constant dense<0.000000e+00> : vector<32x128xf32>
    %17 = tpu.matmul %15, %16, %cst_16 {dimension_numbers = #tpu.dot_dimension_numbers<[1], [0], [0], [1], [0, 0, 1, 1], [], []>} : vector<32x8xf32>, vector<8x128xf32>, vector<32x128xf32> -> vector<32x128xf32>
    %18 = arith.addf %13, %17 : vector<32x128xf32>
    %c0_17 = arith.constant 0 : index
    %c0_18 = arith.constant 0 : index
    %19 = vector.load %arg3[%c0_17, %c0_18] : memref<32x1xf32, #tpu.memory_space<vmem>>, vector<32x1xf32>
    %20 = vector.broadcast %19 : vector<32x1xf32> to vector<32x128xf32>
    %21 = arith.addf %18, %20 : vector<32x128xf32>
    %cst_19 = arith.constant 0.000000e+00 : f32
    %22 = vector.broadcast %cst_19 : f32 to vector<32x128xf32>
    %23 = arith.maximumf %21, %22 : vector<32x128xf32>
    %c0_20 = arith.constant 0 : index
    %c0_21 = arith.constant 0 : index
    %24 = vector.load %arg4[%c0_20, %c0_21] : memref<32x128xf32, #tpu.memory_space<vmem>>, vector<32x128xf32>
    tpu.vector_store %arg4[%c0_20, %c0_21], %23 {strides = array<i32>} : memref<32x128xf32, #tpu.memory_space<vmem>>, vector<32x128xf32>,
    return
  }
  func.func @transform_0(%arg0: i32) -> (i32, i32) {
    %c0_i32 = arith.constant 0 : i32
    %c0_i32_0 = arith.constant 0 : i32
    %c0_i32_1 = arith.constant 0 : i32
    return %c0_i32, %c0_i32_0 : i32, i32
  }
  func.func @transform_1(%arg0: i32) -> (i32, i32, i32) {
    %c0_i32 = arith.constant 0 : i32
    %c0_i32_0 = arith.constant 0 : i32
    %c0_i32_1 = arith.constant 0 : i32
    %c0_i32_2 = arith.constant 0 : i32
    return %c0_i32, %c0_i32_0, %c0_i32_1 : i32, i32, i32
  }
  func.func @transform_2(%arg0: i32) -> (i32, i32) {
    %c0_i32 = arith.constant 0 : i32
    %c0_i32_0 = arith.constant 0 : i32
    %c0_i32_1 = arith.constant 0 : i32
    return %c0_i32, %c0_i32_0 : i32, i32
  }
  func.func @transform_3(%arg0: i32) -> (i32, i32) {
    %c0_i32 = arith.constant 0 : i32
    %c0_i32_0 = arith.constant 0 : i32
    %c0_i32_1 = arith.constant 0 : i32
    return %c0_i32, %c0_i32_0 : i32, i32
  }
}

module attributes {stable_mosaic.version = 11 : i64} {
  func.func @kernel(%arg0: i32, %arg1: memref<8x378xf32, #tpu.memory_space<vmem>>, %arg2: memref<4x32x8xf32, #tpu.memory_space<vmem>>, %arg3: memref<32x1xf32, #tpu.memory_space<vmem>>, %arg4: memref<32x364xf32, #tpu.memory_space<vmem>>) attributes {dimension_semantics = [#tpu.dimension_semantics<arbitrary>], iteration_bounds = array<i64: 1>, scalar_prefetch = 0 : i64, scratch_operands = 0 : i64, tpu.core_type = #tpu.core_type<tc>, window_params = [{pipeline_mode = #tpu.pipeline_mode<synchronous>, transform_indices = @transform_0, window_bounds = array<i64: 8, 378>}, {pipeline_mode = #tpu.pipeline_mode<synchronous>, transform_indices = @transform_1, window_bounds = array<i64: 4, 32, 8>}, {pipeline_mode = #tpu.pipeline_mode<synchronous>, transform_indices = @transform_2, window_bounds = array<i64: 32, 1>}, {pipeline_mode = #tpu.pipeline_mode<synchronous>, transform_indices = @transform_3, window_bounds = array<i64: 32, 364>}]} {
    %c0 = arith.constant 0 : index
    %c0_0 = arith.constant 0 : index
    %c0_1 = arith.constant 0 : index
    %0 = vector.load %arg2[%c0, %c0_0, %c0_1] : memref<4x32x8xf32, #tpu.memory_space<vmem>>, vector<1x32x8xf32>
    %1 = vector.shape_cast %0 : vector<1x32x8xf32> to vector<32x8xf32>
    %c0_2 = arith.constant 0 : index
    %c0_3 = arith.constant 0 : index
    %2 = vector.load %arg1[%c0_2, %c0_3] : memref<8x378xf32, #tpu.memory_space<vmem>>, vector<8x364xf32>
    %cst = arith.constant dense<0.000000e+00> : vector<32x364xf32>
    %3 = tpu.matmul %1, %2, %cst {dimension_numbers = #tpu.dot_dimension_numbers<[1], [0], [0], [1], [0, 0, 1, 1], [], []>} : vector<32x8xf32>, vector<8x364xf32>, vector<32x364xf32> -> vector<32x364xf32>
    %c1 = arith.constant 1 : index
    %c0_4 = arith.constant 0 : index
    %c0_5 = arith.constant 0 : index
    %4 = vector.load %arg2[%c1, %c0_4, %c0_5] : memref<4x32x8xf32, #tpu.memory_space<vmem>>, vector<1x32x8xf32>
    %5 = vector.shape_cast %4 : vector<1x32x8xf32> to vector<32x8xf32>
    %c0_6 = arith.constant 0 : index
    %c1_7 = arith.constant 1 : index
    %6 = vector.load %arg1[%c0_6, %c1_7] : memref<8x378xf32, #tpu.memory_space<vmem>>, vector<8x364xf32>
    %cst_8 = arith.constant dense<0.000000e+00> : vector<32x364xf32>
    %7 = tpu.matmul %5, %6, %cst_8 {dimension_numbers = #tpu.dot_dimension_numbers<[1], [0], [0], [1], [0, 0, 1, 1], [], []>} : vector<32x8xf32>, vector<8x364xf32>, vector<32x364xf32> -> vector<32x364xf32>
    %8 = arith.addf %3, %7 : vector<32x364xf32>
    %c2 = arith.constant 2 : index
    %c0_9 = arith.constant 0 : index
    %c0_10 = arith.constant 0 : index
    %9 = vector.load %arg2[%c2, %c0_9, %c0_10] : memref<4x32x8xf32, #tpu.memory_space<vmem>>, vector<1x32x8xf32>
    %10 = vector.shape_cast %9 : vector<1x32x8xf32> to vector<32x8xf32>
    %c0_11 = arith.constant 0 : index
    %c13 = arith.constant 13 : index
    %11 = vector.load %arg1[%c0_11, %c13] : memref<8x378xf32, #tpu.memory_space<vmem>>, vector<8x364xf32>
    %cst_12 = arith.constant dense<0.000000e+00> : vector<32x364xf32>
    %12 = tpu.matmul %10, %11, %cst_12 {dimension_numbers = #tpu.dot_dimension_numbers<[1], [0], [0], [1], [0, 0, 1, 1], [], []>} : vector<32x8xf32>, vector<8x364xf32>, vector<32x364xf32> -> vector<32x364xf32>
    %13 = arith.addf %8, %12 : vector<32x364xf32>
    %c3 = arith.constant 3 : index
    %c0_13 = arith.constant 0 : index
    %c0_14 = arith.constant 0 : index
    %14 = vector.load %arg2[%c3, %c0_13, %c0_14] : memref<4x32x8xf32, #tpu.memory_space<vmem>>, vector<1x32x8xf32>
    %15 = vector.shape_cast %14 : vector<1x32x8xf32> to vector<32x8xf32>
    %c0_15 = arith.constant 0 : index
    %c14 = arith.constant 14 : index
    %16 = vector.load %arg1[%c0_15, %c14] : memref<8x378xf32, #tpu.memory_space<vmem>>, vector<8x364xf32>
    %cst_16 = arith.constant dense<0.000000e+00> : vector<32x364xf32>
    %17 = tpu.matmul %15, %16, %cst_16 {dimension_numbers = #tpu.dot_dimension_numbers<[1], [0], [0], [1], [0, 0, 1, 1], [], []>} : vector<32x8xf32>, vector<8x364xf32>, vector<32x364xf32> -> vector<32x364xf32>
    %18 = arith.addf %13, %17 : vector<32x364xf32>
    %c0_17 = arith.constant 0 : index
    %c0_18 = arith.constant 0 : index
    %19 = vector.load %arg3[%c0_17, %c0_18] : memref<32x1xf32, #tpu.memory_space<vmem>>, vector<32x1xf32>
    %20 = vector.broadcast %19 : vector<32x1xf32> to vector<32x364xf32>
    %21 = arith.addf %18, %20 : vector<32x364xf32>
    %cst_19 = arith.constant 0.000000e+00 : f32
    %22 = vector.broadcast %cst_19 : f32 to vector<32x364xf32>
    %23 = arith.maximumf %21, %22 : vector<32x364xf32>
    %c0_20 = arith.constant 0 : index
    %c0_21 = arith.constant 0 : index
    %24 = vector.load %arg4[%c0_20, %c0_21] : memref<32x364xf32, #tpu.memory_space<vmem>>, vector<32x364xf32>
    tpu.vector_store %arg4[%c0_20, %c0_21], %23 {strides = array<i32>} : memref<32x364xf32, #tpu.memory_space<vmem>>, vector<32x364xf32>,
    return
  }
  func.func @transform_0(%arg0: i32) -> (i32, i32) {
    %c0_i32 = arith.constant 0 : i32
    %c0_i32_0 = arith.constant 0 : i32
    %c0_i32_1 = arith.constant 0 : i32
    return %c0_i32, %c0_i32_0 : i32, i32
  }
  func.func @transform_1(%arg0: i32) -> (i32, i32, i32) {
    %c0_i32 = arith.constant 0 : i32
    %c0_i32_0 = arith.constant 0 : i32
    %c0_i32_1 = arith.constant 0 : i32
    %c0_i32_2 = arith.constant 0 : i32
    return %c0_i32, %c0_i32_0, %c0_i32_1 : i32, i32, i32
  }
  func.func @transform_2(%arg0: i32) -> (i32, i32) {
    %c0_i32 = arith.constant 0 : i32
    %c0_i32_0 = arith.constant 0 : i32
    %c0_i32_1 = arith.constant 0 : i32
    return %c0_i32, %c0_i32_0 : i32, i32
  }
  func.func @transform_3(%arg0: i32) -> (i32, i32) {
    %c0_i32 = arith.constant 0 : i32
    %c0_i32_0 = arith.constant 0 : i32
    %c0_i32_1 = arith.constant 0 : i32
    return %c0_i32, %c0_i32_0 : i32, i32
  }
}

module attributes {stable_mosaic.version = 11 : i64} {
  func.func @kernel(%arg0: i32, %arg1: memref<8x1452xf32, #tpu.memory_space<vmem>>, %arg2: memref<9x8x8xf32, #tpu.memory_space<vmem>>, %arg3: memref<8x1xf32, #tpu.memory_space<vmem>>, %arg4: memref<8x1400xf32, #tpu.memory_space<vmem>>) attributes {dimension_semantics = [#tpu.dimension_semantics<arbitrary>], iteration_bounds = array<i64: 1>, scalar_prefetch = 0 : i64, scratch_operands = 0 : i64, tpu.core_type = #tpu.core_type<tc>, window_params = [{pipeline_mode = #tpu.pipeline_mode<synchronous>, transform_indices = @transform_0, window_bounds = array<i64: 8, 1452>}, {pipeline_mode = #tpu.pipeline_mode<synchronous>, transform_indices = @transform_1, window_bounds = array<i64: 9, 8, 8>}, {pipeline_mode = #tpu.pipeline_mode<synchronous>, transform_indices = @transform_2, window_bounds = array<i64: 8, 1>}, {pipeline_mode = #tpu.pipeline_mode<synchronous>, transform_indices = @transform_3, window_bounds = array<i64: 8, 1400>}]} {
    %c0 = arith.constant 0 : index
    %c0_0 = arith.constant 0 : index
    %c0_1 = arith.constant 0 : index
    %0 = vector.load %arg2[%c0, %c0_0, %c0_1] : memref<9x8x8xf32, #tpu.memory_space<vmem>>, vector<1x8x8xf32>
    %1 = vector.shape_cast %0 : vector<1x8x8xf32> to vector<8x8xf32>
    %c0_2 = arith.constant 0 : index
    %c0_3 = arith.constant 0 : index
    %2 = vector.load %arg1[%c0_2, %c0_3] : memref<8x1452xf32, #tpu.memory_space<vmem>>, vector<8x1400xf32>
    %cst = arith.constant dense<0.000000e+00> : vector<8x1400xf32>
    %3 = tpu.matmul %1, %2, %cst {dimension_numbers = #tpu.dot_dimension_numbers<[1], [0], [0], [1], [0, 0, 1, 1], [], []>} : vector<8x8xf32>, vector<8x1400xf32>, vector<8x1400xf32> -> vector<8x1400xf32>
    %c1 = arith.constant 1 : index
    %c0_4 = arith.constant 0 : index
    %c0_5 = arith.constant 0 : index
    %4 = vector.load %arg2[%c1, %c0_4, %c0_5] : memref<9x8x8xf32, #tpu.memory_space<vmem>>, vector<1x8x8xf32>
    %5 = vector.shape_cast %4 : vector<1x8x8xf32> to vector<8x8xf32>
    %c0_6 = arith.constant 0 : index
    %c1_7 = arith.constant 1 : index
    %6 = vector.load %arg1[%c0_6, %c1_7] : memref<8x1452xf32, #tpu.memory_space<vmem>>, vector<8x1400xf32>
    %cst_8 = arith.constant dense<0.000000e+00> : vector<8x1400xf32>
    %7 = tpu.matmul %5, %6, %cst_8 {dimension_numbers = #tpu.dot_dimension_numbers<[1], [0], [0], [1], [0, 0, 1, 1], [], []>} : vector<8x8xf32>, vector<8x1400xf32>, vector<8x1400xf32> -> vector<8x1400xf32>
    %8 = arith.addf %3, %7 : vector<8x1400xf32>
    %c2 = arith.constant 2 : index
    %c0_9 = arith.constant 0 : index
    %c0_10 = arith.constant 0 : index
    %9 = vector.load %arg2[%c2, %c0_9, %c0_10] : memref<9x8x8xf32, #tpu.memory_space<vmem>>, vector<1x8x8xf32>
    %10 = vector.shape_cast %9 : vector<1x8x8xf32> to vector<8x8xf32>
    %c0_11 = arith.constant 0 : index
    %c2_12 = arith.constant 2 : index
    %11 = vector.load %arg1[%c0_11, %c2_12] : memref<8x1452xf32, #tpu.memory_space<vmem>>, vector<8x1400xf32>
    %cst_13 = arith.constant dense<0.000000e+00> : vector<8x1400xf32>
    %12 = tpu.matmul %10, %11, %cst_13 {dimension_numbers = #tpu.dot_dimension_numbers<[1], [0], [0], [1], [0, 0, 1, 1], [], []>} : vector<8x8xf32>, vector<8x1400xf32>, vector<8x1400xf32> -> vector<8x1400xf32>
    %13 = arith.addf %8, %12 : vector<8x1400xf32>
    %c3 = arith.constant 3 : index
    %c0_14 = arith.constant 0 : index
    %c0_15 = arith.constant 0 : index
    %14 = vector.load %arg2[%c3, %c0_14, %c0_15] : memref<9x8x8xf32, #tpu.memory_space<vmem>>, vector<1x8x8xf32>
    %15 = vector.shape_cast %14 : vector<1x8x8xf32> to vector<8x8xf32>
    %c0_16 = arith.constant 0 : index
    %c25 = arith.constant 25 : index
    %16 = vector.load %arg1[%c0_16, %c25] : memref<8x1452xf32, #tpu.memory_space<vmem>>, vector<8x1400xf32>
    %cst_17 = arith.constant dense<0.000000e+00> : vector<8x1400xf32>
    %17 = tpu.matmul %15, %16, %cst_17 {dimension_numbers = #tpu.dot_dimension_numbers<[1], [0], [0], [1], [0, 0, 1, 1], [], []>} : vector<8x8xf32>, vector<8x1400xf32>, vector<8x1400xf32> -> vector<8x1400xf32>
    %18 = arith.addf %13, %17 : vector<8x1400xf32>
    %c4 = arith.constant 4 : index
    %c0_18 = arith.constant 0 : index
    %c0_19 = arith.constant 0 : index
    %19 = vector.load %arg2[%c4, %c0_18, %c0_19] : memref<9x8x8xf32, #tpu.memory_space<vmem>>, vector<1x8x8xf32>
    %20 = vector.shape_cast %19 : vector<1x8x8xf32> to vector<8x8xf32>
    %c0_20 = arith.constant 0 : index
    %c26 = arith.constant 26 : index
    %21 = vector.load %arg1[%c0_20, %c26] : memref<8x1452xf32, #tpu.memory_space<vmem>>, vector<8x1400xf32>
    %cst_21 = arith.constant dense<0.000000e+00> : vector<8x1400xf32>
    %22 = tpu.matmul %20, %21, %cst_21 {dimension_numbers = #tpu.dot_dimension_numbers<[1], [0], [0], [1], [0, 0, 1, 1], [], []>} : vector<8x8xf32>, vector<8x1400xf32>, vector<8x1400xf32> -> vector<8x1400xf32>
    %23 = arith.addf %18, %22 : vector<8x1400xf32>
    %c5 = arith.constant 5 : index
    %c0_22 = arith.constant 0 : index
    %c0_23 = arith.constant 0 : index
    %24 = vector.load %arg2[%c5, %c0_22, %c0_23] : memref<9x8x8xf32, #tpu.memory_space<vmem>>, vector<1x8x8xf32>
    %25 = vector.shape_cast %24 : vector<1x8x8xf32> to vector<8x8xf32>
    %c0_24 = arith.constant 0 : index
    %c27 = arith.constant 27 : index
    %26 = vector.load %arg1[%c0_24, %c27] : memref<8x1452xf32, #tpu.memory_space<vmem>>, vector<8x1400xf32>
    %cst_25 = arith.constant dense<0.000000e+00> : vector<8x1400xf32>
    %27 = tpu.matmul %25, %26, %cst_25 {dimension_numbers = #tpu.dot_dimension_numbers<[1], [0], [0], [1], [0, 0, 1, 1], [], []>} : vector<8x8xf32>, vector<8x1400xf32>, vector<8x1400xf32> -> vector<8x1400xf32>
    %28 = arith.addf %23, %27 : vector<8x1400xf32>
    %c6 = arith.constant 6 : index
    %c0_26 = arith.constant 0 : index
    %c0_27 = arith.constant 0 : index
    %29 = vector.load %arg2[%c6, %c0_26, %c0_27] : memref<9x8x8xf32, #tpu.memory_space<vmem>>, vector<1x8x8xf32>
    %30 = vector.shape_cast %29 : vector<1x8x8xf32> to vector<8x8xf32>
    %c0_28 = arith.constant 0 : index
    %c50 = arith.constant 50 : index
    %31 = vector.load %arg1[%c0_28, %c50] : memref<8x1452xf32, #tpu.memory_space<vmem>>, vector<8x1400xf32>
    %cst_29 = arith.constant dense<0.000000e+00> : vector<8x1400xf32>
    %32 = tpu.matmul %30, %31, %cst_29 {dimension_numbers = #tpu.dot_dimension_numbers<[1], [0], [0], [1], [0, 0, 1, 1], [], []>} : vector<8x8xf32>, vector<8x1400xf32>, vector<8x1400xf32> -> vector<8x1400xf32>
    %33 = arith.addf %28, %32 : vector<8x1400xf32>
    %c7 = arith.constant 7 : index
    %c0_30 = arith.constant 0 : index
    %c0_31 = arith.constant 0 : index
    %34 = vector.load %arg2[%c7, %c0_30, %c0_31] : memref<9x8x8xf32, #tpu.memory_space<vmem>>, vector<1x8x8xf32>
    %35 = vector.shape_cast %34 : vector<1x8x8xf32> to vector<8x8xf32>
    %c0_32 = arith.constant 0 : index
    %c51 = arith.constant 51 : index
    %36 = vector.load %arg1[%c0_32, %c51] : memref<8x1452xf32, #tpu.memory_space<vmem>>, vector<8x1400xf32>
    %cst_33 = arith.constant dense<0.000000e+00> : vector<8x1400xf32>
    %37 = tpu.matmul %35, %36, %cst_33 {dimension_numbers = #tpu.dot_dimension_numbers<[1], [0], [0], [1], [0, 0, 1, 1], [], []>} : vector<8x8xf32>, vector<8x1400xf32>, vector<8x1400xf32> -> vector<8x1400xf32>
    %38 = arith.addf %33, %37 : vector<8x1400xf32>
    %c8 = arith.constant 8 : index
    %c0_34 = arith.constant 0 : index
    %c0_35 = arith.constant 0 : index
    %39 = vector.load %arg2[%c8, %c0_34, %c0_35] : memref<9x8x8xf32, #tpu.memory_space<vmem>>, vector<1x8x8xf32>
    %40 = vector.shape_cast %39 : vector<1x8x8xf32> to vector<8x8xf32>
    %c0_36 = arith.constant 0 : index
    %c52 = arith.constant 52 : index
    %41 = vector.load %arg1[%c0_36, %c52] : memref<8x1452xf32, #tpu.memory_space<vmem>>, vector<8x1400xf32>
    %cst_37 = arith.constant dense<0.000000e+00> : vector<8x1400xf32>
    %42 = tpu.matmul %40, %41, %cst_37 {dimension_numbers = #tpu.dot_dimension_numbers<[1], [0], [0], [1], [0, 0, 1, 1], [], []>} : vector<8x8xf32>, vector<8x1400xf32>, vector<8x1400xf32> -> vector<8x1400xf32>
    %43 = arith.addf %38, %42 : vector<8x1400xf32>
    %c0_38 = arith.constant 0 : index
    %c0_39 = arith.constant 0 : index
    %44 = vector.load %arg3[%c0_38, %c0_39] : memref<8x1xf32, #tpu.memory_space<vmem>>, vector<8x1xf32>
    %45 = vector.broadcast %44 : vector<8x1xf32> to vector<8x1400xf32>
    %46 = arith.addf %43, %45 : vector<8x1400xf32>
    %cst_40 = arith.constant 0.000000e+00 : f32
    %47 = vector.broadcast %cst_40 : f32 to vector<8x1400xf32>
    %48 = arith.maximumf %46, %47 : vector<8x1400xf32>
    %c0_41 = arith.constant 0 : index
    %c0_42 = arith.constant 0 : index
    %49 = vector.load %arg4[%c0_41, %c0_42] : memref<8x1400xf32, #tpu.memory_space<vmem>>, vector<8x1400xf32>
    tpu.vector_store %arg4[%c0_41, %c0_42], %48 {strides = array<i32>} : memref<8x1400xf32, #tpu.memory_space<vmem>>, vector<8x1400xf32>,
    return
  }
  func.func @transform_0(%arg0: i32) -> (i32, i32) {
    %c0_i32 = arith.constant 0 : i32
    %c0_i32_0 = arith.constant 0 : i32
    %c0_i32_1 = arith.constant 0 : i32
    return %c0_i32, %c0_i32_0 : i32, i32
  }
  func.func @transform_1(%arg0: i32) -> (i32, i32, i32) {
    %c0_i32 = arith.constant 0 : i32
    %c0_i32_0 = arith.constant 0 : i32
    %c0_i32_1 = arith.constant 0 : i32
    %c0_i32_2 = arith.constant 0 : i32
    return %c0_i32, %c0_i32_0, %c0_i32_1 : i32, i32, i32
  }
  func.func @transform_2(%arg0: i32) -> (i32, i32) {
    %c0_i32 = arith.constant 0 : i32
    %c0_i32_0 = arith.constant 0 : i32
    %c0_i32_1 = arith.constant 0 : i32
    return %c0_i32, %c0_i32_0 : i32, i32
  }
  func.func @transform_3(%arg0: i32) -> (i32, i32) {
    %c0_i32 = arith.constant 0 : i32
    %c0_i32_0 = arith.constant 0 : i32
    %c0_i32_1 = arith.constant 0 : i32
    return %c0_i32, %c0_i32_0 : i32, i32
  }
}

</mosaic_0001>

<bundles_post_ra>
// kernel: _lambda_.6
= control target key start
LH: loop header
LB: loop body
LE: loop exit
PB: predicated region body
PF: predicated region fallthrough
CT: control target
= control target key end

     0   :  { %v3849_v2 = vmov 0.0   ;;  %s3850_s16 = smov 127   ;;  %vm77_vm0 = vcmask 64512   ;;  %s3851_s25 = smov 126   ;;  %vm57_vm1 = vcmask 1039360   ;;  %vm816_vm2 = vcmask 1031168   ;;  %s4396_s0 = inlined_call_operand.vmem [shape: f32[8,1244], index: 0, kind: input, shape index: {}]   ;;  %s4397_s1 = inlined_call_operand.vmem [shape: f32[9,8,8], index: 1, kind: input, shape index: {}]   ;;  %s4398_s2 = inlined_call_operand.vmem [shape: f32[8,1], index: 2, kind: input, shape index: {}]   ;;  %s4399_s3 = inlined_call_operand.vmem [shape: f32[8,1196], index: 3, kind: output, shape index: {}]  }
   0x1   :  { %v3882_v0 = vld [vmem:[%s4396_s0 + $0x8] sm:$0xff]  ;;  %v3887_v1 = vld [vmem:[%s4396_s0] sm:$0xff]  ;;  %645 = vmatprep.mubr.f32.mxu0 %v3849_v2  ;;  %145 = vmatprep.mubr.f32.mxu1 %v3849_v2  ;;  %v3898_v3 = vld [vmem:[%s4396_s0 + $0x10] sm:$0xff]  ;;  %s3852_s9 = smov 105   ;;  %s3854_s10 = smov 103   ;;  %vm1226_vm3 = vcmask 859136  }
   0x2   :  { %39 = vrot.lane.b32.xlu0 %v3882_v0, %s3850_s16  ;;  %37 = vrot.lane.b32.xlu1 %v3887_v1, %s3850_s16  ;;  %v3903_v4 = vld [vmem:[%s4396_s0 + $0x28] sm:$0xff]  ;;  %v3908_v5 = vld [vmem:[%s4396_s0 + $0x20] sm:$0xff]  ;;  %s3855_s11 = smov 82   ;;  %s3856_s12 = smov 81   ;;  %v3858_v47 = vmov 0   ;;  %vm1636_vm4 = vcmask 850944  }
   0x3   :  { %581 = vmatprep.subr.mxu0 %v3903_v4  ;;  %v3914_v6 = vld [vmem:[%s4397_s1] sm:$0xff]  ;;  %v3924_v7 = vld [vmem:[%s4396_s0 + $0x48] sm:$0xff]  ;;  %v3943_v9 = vld [vmem:[%s4396_s0 + $0x18] sm:$0xff]  ;;  %s3857_s17 = smov 80   ;;  %3848 = vset.pattern.permute.xlu0 %v3858_v47  ;;  %vm2046_vm5 = vcmask 842752   ;;  %vm2456_vm6 = vcmask 670720  }
   0x4   :  { %582 = vmatpush1.msra.mxu0 %v3908_v5  ;;  %v3929_v8 = vld [vmem:[%s4396_s0 + $0x40] sm:$0xff]  ;;  %v3955_v10 = vld [vmem:[%s4396_s0 + $0x30] sm:$0xff]  ;;  %v3972_v11 = vld [vmem:[%s4396_s0 + $0x38] sm:$0xff]  ;;  %s3853_s0 = smov 104   ;;  %vm2866_vm7 = vcmask 662528   ;;  %vm3276_vm8 = vcmask 654336  }
   0x5   :  { %3713 = vmatmul.mubr.msk.f32.vlgmr.msra.gmra.mrb[0].mxu0 %vm77_vm0, %v3914_v6  ;;  %723 = vmatprep.subr.mxu0 %v3924_v7  ;;  %v4040_v17 = vld [vmem:[%s4397_s1 + $0x8] sm:$0xff]  ;;  %v4057_v23 = vld [vmem:[%s4397_s1 + $0x10] sm:$0xff]  ;;  %v4131_v50 = vld [vmem:[%s4397_s1 + $0x18] sm:$0xff]  ;;  %vm3699_vm9 = vcmask 359424  }
   0x6   :  { %41 = vrot.lane.b32.xlu0 %v3898_v3, %s3850_s16  ;;  %798 = vrot.lane.b32.xlu1 %v3882_v0, %s3851_s25  ;;  %v3664_v61 = vld [vmem:[%s4398_s2] sm:$0xff]  ;;  %v4280_v47 = vld [vmem:[%s4397_s1 + $0x30] sm:$0xff] }
   0x7   :  { %724 = vmatpush1.msra.mxu0 %v3929_v8  ;;  %787 = vmatprep.mubr.f32.mxu0 %v3849_v2 }
   0x9   :  { %3715 = vmatmul.mubr.msk.f32.vlgmr.msra.gmra.mrb[2].mxu0 %vm77_vm0, %v3914_v6 }
   0xa   :  { %800 = vrot.lane.b32.xlu0 %v3898_v3, %s3851_s25  ;;  %796 = vrot.lane.b32.xlu1 %v3887_v1, %s3851_s25 }
   0xb   :  { %903 = vmatprep.mubr.f32.mxu0 %v3849_v2 }
   0xe   :  { %43 = vrot.lane.b32.xlu0 %v3943_v9, %s3850_s16  ;;  %45 = vrot.lane.b32.xlu1 %v3908_v5, %s3850_s16 }
  0x12   :  { %806 = vrot.lane.b32.xlu0 %v3903_v4, %s3851_s25  ;;  %808 = vrot.lane.b32.xlu1 %v3955_v10, %s3851_s25 }
  0x16   :  { %804 = vrot.lane.b32.xlu0 %v3908_v5, %s3851_s25  ;;  %47 = vrot.lane.b32.xlu1 %v3903_v4, %s3850_s16 }
  0x1a   :  { %49 = vrot.lane.b32.xlu0 %v3955_v10, %s3850_s16  ;;  %812 = vrot.lane.b32.xlu1 %v3929_v8, %s3851_s25 }
  0x1e   :  { %814 = vrot.lane.b32.xlu0 %v3924_v7, %s3851_s25  ;;  %51 = vrot.lane.b32.xlu1 %v3972_v11, %s3850_s16 }
  0x22   :  { %53 = vrot.lane.b32.xlu0 %v3929_v8, %s3850_s16  ;;  %1208 = vrot.lane.b32.xlu1 %v3882_v0, %s3852_s9 }
  0x26   :  { %1210 = vrot.lane.b32.xlu0 %v3898_v3, %s3852_s9  ;;  %1206 = vrot.lane.b32.xlu1 %v3887_v1, %s3852_s9 }
  0x2a   :  { %55 = vrot.lane.b32.xlu0 %v3924_v7, %s3850_s16  ;;  %1216 = vrot.lane.b32.xlu1 %v3903_v4, %s3852_s9 }
  0x2e   :  { %1218 = vrot.lane.b32.xlu0 %v3955_v10, %s3852_s9  ;;  %1214 = vrot.lane.b32.xlu1 %v3908_v5, %s3852_s9 }
  0x32   :  { %1222 = vrot.lane.b32.xlu0 %v3929_v8, %s3852_s9  ;;  %1224 = vrot.lane.b32.xlu1 %v3924_v7, %s3852_s9 }
  0x36   :  { %1618 = vrot.lane.b32.xlu0 %v3882_v0, %s3853_s0  ;;  %1620 = vrot.lane.b32.xlu1 %v3898_v3, %s3853_s0 }
  0x3a   :  { %1616 = vrot.lane.b32.xlu0 %v3887_v1, %s3853_s0  ;;  %1626 = vrot.lane.b32.xlu1 %v3903_v4, %s3853_s0 }
  0x3e   :  { %1628 = vrot.lane.b32.xlu0 %v3955_v10, %s3853_s0  ;;  %1624 = vrot.lane.b32.xlu1 %v3908_v5, %s3853_s0 }
  0x42   :  { %802 = vrot.lane.b32.xlu0 %v3943_v9, %s3851_s25  ;;  %1632 = vrot.lane.b32.xlu1 %v3929_v8, %s3853_s0 }
  0x46   :  { %1634 = vrot.lane.b32.xlu0 %v3924_v7, %s3853_s0  ;;  %810 = vrot.lane.b32.xlu1 %v3972_v11, %s3851_s25 }
  0x4a   :  { %2028 = vrot.lane.b32.xlu0 %v3882_v0, %s3854_s10  ;;  %2030 = vrot.lane.b32.xlu1 %v3898_v3, %s3854_s10 }
  0x4e   :  { %2026 = vrot.lane.b32.xlu0 %v3887_v1, %s3854_s10  ;;  %1212 = vrot.lane.b32.xlu1 %v3943_v9, %s3852_s9 }
  0x52   :  { %2036 = vrot.lane.b32.xlu0 %v3903_v4, %s3854_s10  ;;  %2038 = vrot.lane.b32.xlu1 %v3955_v10, %s3854_s10 }
  0x56   :  { %2034 = vrot.lane.b32.xlu0 %v3908_v5, %s3854_s10  ;;  %1220 = vrot.lane.b32.xlu1 %v3972_v11, %s3852_s9 }
  0x5a   :  { %2042 = vrot.lane.b32.xlu0 %v3929_v8, %s3854_s10  ;;  %2044 = vrot.lane.b32.xlu1 %v3924_v7, %s3854_s10 }
  0x5e   :  { %1622 = vrot.lane.b32.xlu0 %v3943_v9, %s3853_s0  ;;  %2438 = vrot.lane.b32.xlu1 %v3882_v0, %s3855_s11 }
  0x62   :  { %2440 = vrot.lane.b32.xlu0 %v3898_v3, %s3855_s11  ;;  %2436 = vrot.lane.b32.xlu1 %v3887_v1, %s3855_s11 }
  0x66   :  { %1630 = vrot.lane.b32.xlu0 %v3972_v11, %s3853_s0  ;;  %2446 = vrot.lane.b32.xlu1 %v3903_v4, %s3855_s11 }
  0x6a   :  { %2448 = vrot.lane.b32.xlu0 %v3955_v10, %s3855_s11  ;;  %2444 = vrot.lane.b32.xlu1 %v3908_v5, %s3855_s11 }
  0x6e   :  { %2032 = vrot.lane.b32.xlu0 %v3943_v9, %s3854_s10  ;;  %2452 = vrot.lane.b32.xlu1 %v3929_v8, %s3855_s11 }
  0x72   :  { %2454 = vrot.lane.b32.xlu0 %v3924_v7, %s3855_s11  ;;  %2040 = vrot.lane.b32.xlu1 %v3972_v11, %s3854_s10 }
  0x74   :  { %v40_v12 = vpop.permute.xlu0 %39  ;;  %v38_v13 = vpop.permute.xlu1 %37 }
  0x75   :  { %v58_v18 = vsel %vm57_vm1, %v38_v13, %v40_v12 }
  0x76   :  { %2848 = vrot.lane.b32.xlu0 %v3882_v0, %s3856_s12  ;;  %2850 = vrot.lane.b32.xlu1 %v3898_v3, %s3856_s12 }
  0x78   :  { %v42_v14 = vpop.permute.xlu0 %41  ;;  %v799_v15 = vpop.permute.xlu1 %798 }
  0x79   :  { %v59_v16 = vsel %vm57_vm1, %v40_v12, %v42_v14 }
  0x7a   :  { %81 = vmatprep.subr.mxu1 %v59_v16  ;;  %2846 = vrot.lane.b32.xlu0 %v3887_v1, %s3856_s12 }
  0x7b   :  { %2442 = vrot.lane.b32.xlu1 %v3943_v9, %s3855_s11  ;;  %82 = vmatpush1.msra.mxu1 %v58_v18 }
  0x7c   :  { %v4047_v19 = vpop.permute.xlu0 %800  ;;  %v797_v20 = vpop.permute.xlu1 %796  ;;  %3706 = vmatmul.mubr.msk.f32.vlgmr.msra.gmra.mrb[0].mxu1 %vm77_vm0, %v4040_v17 }
  0x7d   :  { %v817_v21 = vsel %vm816_vm2, %v797_v20, %v799_v15  ;;  %v818_v22 = vsel %vm816_vm2, %v799_v15, %v4047_v19  ;;  %216 = vmatprep.mubr.f32.mxu1 %v3849_v2 }
  0x7e   :  { %2856 = vrot.lane.b32.xlu0 %v3903_v4, %s3856_s12  ;;  %839 = vmatprep.subr.mxu0 %v818_v22 }
  0x7f   :  { %2858 = vrot.lane.b32.xlu1 %v3955_v10, %s3856_s12  ;;  %840 = vmatpush1.msra.mxu0 %v817_v21 }
  0x80   :  { %v44_v24 = vpop.permute.xlu0 %43  ;;  %v46_v25 = vpop.permute.xlu1 %45  ;;  %3717 = vmatmul.mubr.msk.f32.vlgmr.msra.gmra.mrb[4].mxu0 %vm77_vm0, %v4057_v23 }
  0x81   :  { %v60_v26 = vsel %vm57_vm1, %v42_v14, %v44_v24  ;;  %v61_v27 = vsel %vm57_vm1, %v44_v24, %v46_v25  ;;  %1045 = vmatprep.mubr.f32.mxu0 %v3849_v2 }
  0x82   :  { %2854 = vrot.lane.b32.xlu0 %v3908_v5, %s3856_s12  ;;  %152 = vmatprep.subr.mxu1 %v61_v27 }
  0x83   :  { %2450 = vrot.lane.b32.xlu1 %v3972_v11, %s3855_s11  ;;  %153 = vmatpush1.msra.mxu1 %v60_v26 }
  0x84   :  { %v807_v28 = vpop.permute.xlu0 %806  ;;  %v4073_v29 = vpop.permute.xlu1 %808  ;;  %3707 = vmatmul.mubr.msk.f32.vlgmr.msra.gmra.mrb[2].mxu1 %vm77_vm0, %v4040_v17 }
  0x85   :  { %v822_v30 = vsel %vm816_vm2, %v807_v28, %v4073_v29  ;;  %287 = vmatprep.mubr.f32.mxu1 %v3849_v2 }
  0x86   :  { %2862 = vrot.lane.b32.xlu0 %v3929_v8, %s3856_s12  ;;  %981 = vmatprep.subr.mxu0 %v822_v30 }
  0x87   :  { %2864 = vrot.lane.b32.xlu1 %v3924_v7, %s3856_s12 }
  0x88   :  { %v4084_v31 = vpop.permute.xlu0 %804  ;;  %v48_v32 = vpop.permute.xlu1 %47 }
  0x89   :  { %v821_v33 = vsel %vm816_vm2, %v4084_v31, %v807_v28  ;;  %v62_v37 = vsel %vm57_vm1, %v46_v25, %v48_v32  ;;  %v4237_v25 = vld [vmem:[%s4397_s1 + $0x28] sm:$0xff] }
  0x8a   :  { %2852 = vrot.lane.b32.xlu0 %v3943_v9, %s3856_s12  ;;  %982 = vmatpush1.msra.mxu0 %v821_v33 }
  0x8b   :  { %3258 = vrot.lane.b32.xlu1 %v3882_v0, %s3857_s17  ;;  %3719 = vmatmul.mubr.msk.f32.vlgmr.msra.gmra.mrb[0].mxu0 %vm77_vm0, %v4057_v23 }
  0x8c   :  { %v50_v34 = vpop.permute.xlu0 %49  ;;  %v4094_v35 = vpop.permute.xlu1 %812  ;;  %1187 = vmatprep.mubr.f32.mxu0 %v3849_v2 }
  0x8d   :  { %v63_v36 = vsel %vm57_vm1, %v48_v32, %v50_v34 }
  0x8e   :  { %3260 = vrot.lane.b32.xlu0 %v3898_v3, %s3857_s17  ;;  %223 = vmatprep.subr.mxu1 %v63_v36 }
  0x8f   :  { %3256 = vrot.lane.b32.xlu1 %v3887_v1, %s3857_s17  ;;  %224 = vmatpush1.msra.mxu1 %v62_v37 }
  0x90   :  { %v815_v38 = vpop.permute.xlu0 %814  ;;  %v52_v39 = vpop.permute.xlu1 %51  ;;  %3708 = vmatmul.mubr.msk.f32.vlgmr.msra.gmra.mrb[4].mxu1 %vm77_vm0, %v4040_v17 }
  0x91   :  { %v825_v40 = vsel %vm816_vm2, %v4094_v35, %v815_v38  ;;  %1123 = vmatprep.subr.mxu0 %v815_v38  ;;  %358 = vmatprep.mubr.f32.mxu1 %v3849_v2  ;;  %v64_v44 = vsel %vm57_vm1, %v50_v34, %v52_v39 }
  0x92   :  { %2860 = vrot.lane.b32.xlu0 %v3972_v11, %s3856_s12  ;;  %1124 = vmatpush1.msra.mxu0 %v825_v40 }
  0x93   :  { %3266 = vrot.lane.b32.xlu1 %v3903_v4, %s3857_s17  ;;  %3721 = vmatmul.mubr.msk.f32.vlgmr.msra.gmra.mrb[2].mxu0 %vm77_vm0, %v4057_v23  ;;  %v4191_v4 = vld [vmem:[%s4397_s1 + $0x20] sm:$0xff] }
  0x94   :  { %v54_v41 = vpop.permute.xlu0 %53  ;;  %v1209_v42 = vpop.permute.xlu1 %1208  ;;  %1313 = vmatprep.mubr.f32.mxu0 %v3849_v2 }
  0x95   :  { %v65_v43 = vsel %vm57_vm1, %v52_v39, %v54_v41 }
  0x96   :  { %3268 = vrot.lane.b32.xlu0 %v3955_v10, %s3857_s17  ;;  %294 = vmatprep.subr.mxu1 %v65_v43 }
  0x97   :  { %3264 = vrot.lane.b32.xlu1 %v3908_v5, %s3857_s17  ;;  %295 = vmatpush1.msra.mxu1 %v64_v44 }
  0x98   :  { %v4121_v45 = vpop.permute.xlu0 %1210  ;;  %v1207_v46 = vpop.permute.xlu1 %1206  ;;  %3709 = vmatmul.mubr.msk.f32.vlgmr.msra.gmra.mrb[6].mxu1 %vm77_vm0, %v4040_v17 }
  0x99   :  { %v1227_v48 = vsel %vm1226_vm3, %v1207_v46, %v1209_v42  ;;  %v1228_v49 = vsel %vm1226_vm3, %v1209_v42, %v4121_v45  ;;  %429 = vmatprep.mubr.f32.mxu1 %v3849_v2 }
  0x9a   :  { %3262 = vrot.lane.b32.xlu0 %v3943_v9, %s3857_s17  ;;  %1249 = vmatprep.subr.mxu0 %v1228_v49 }
  0x9b   :  { %3272 = vrot.lane.b32.xlu1 %v3929_v8, %s3857_s17  ;;  %1250 = vmatpush1.msra.mxu0 %v1227_v48 }
  0x9c   :  { %v56_v51 = vpop.permute.xlu0 %55  ;;  %v1217_v52 = vpop.permute.xlu1 %1216  ;;  %3723 = vmatmul.mubr.msk.f32.vlgmr.msra.gmra.mrb[4].mxu0 %vm77_vm0, %v4131_v50 }
  0x9d   :  { %v66_v53 = vsel %vm57_vm1, %v54_v41, %v56_v51  ;;  %365 = vmatprep.subr.mxu1 %v56_v51  ;;  %1455 = vmatprep.mubr.f32.mxu0 %v3849_v2 }
  0x9e   :  { %3274 = vrot.lane.b32.xlu0 %v3924_v7, %s3857_s17  ;;  %366 = vmatpush1.msra.mxu1 %v66_v53 }
  0x9f   :  { %3270 = vrot.lane.b32.xlu1 %v3972_v11, %s3857_s17  ;;  %3710 = vmatmul.mubr.msk.f32.vlgmr.msra.gmra.mrb[8].mxu1 %vm77_vm0, %v4040_v17 }
  0xa0   :  { %v4148_v54 = vpop.permute.xlu0 %1218  ;;  %v4150_v55 = vpop.permute.xlu1 %1214  ;;  %439 = vmatprep.subr.mxu1 %v3882_v0  ;;  %503 = vmatprep.mubr.f32.mxu1 %v3849_v2 }
  0xa1   :  { %v1231_v56 = vsel %vm1226_vm3, %v4150_v55, %v1217_v52  ;;  %v1232_v57 = vsel %vm1226_vm3, %v1217_v52, %v4148_v54  ;;  %440 = vmatpush1.msra.mxu1 %v3887_v1 }
  0xa2   :  { %1391 = vmatprep.subr.mxu0 %v1232_v57  ;;  %510 = vmatprep.subr.mxu1 %v3943_v9 }
  0xa3   :  { %1392 = vmatpush1.msra.mxu0 %v1231_v56  ;;  %3711 = vmatmul.mubr.msk.f32.vlgmr.msra.gmra.mrb[0].mxu1 %vm77_vm0, %v3914_v6 }
  0xa4   :  { %v4162_v58 = vpop.permute.xlu0 %1222  ;;  %v1225_v59 = vpop.permute.xlu1 %1224  ;;  %3725 = vmatmul.mubr.msk.f32.vlgmr.msra.gmra.mrb[0].mxu0 %vm77_vm0, %v4131_v50  ;;  %511 = vmatpush1.msra.mxu1 %v3898_v3 }
  0xa5   :  { %v1235_v60 = vsel %vm1226_vm3, %v4162_v58, %v1225_v59  ;;  %1533 = vmatprep.subr.mxu0 %v1225_v59  ;;  %1597 = vmatprep.mubr.f32.mxu0 %v3849_v2 }
  0xa6   :  { %1534 = vmatpush1.msra.mxu0 %v1235_v60  ;;  %574 = vmatprep.mubr.f32.mxu1 %v3849_v2 }
  0xa7   :  { %3712 = vmatmul.mubr.msk.f32.vlgmr.msra.gmra.mrb[2].mxu1 %vm77_vm0, %v3914_v6  ;;  %652 = vmatprep.subr.mxu1 %v3972_v11 }
  0xa8   :  { %v1619_v62 = vpop.permute.xlu0 %1618  ;;  %v4177_v63 = vpop.permute.xlu1 %1620  ;;  %3727 = vmatmul.mubr.msk.f32.vlgmr.msra.gmra.mrb[2].mxu0 %vm77_vm0, %v4131_v50  ;;  %653 = vmatpush1.msra.mxu1 %v3955_v10 }
  0xa9   :  { %v1638_v0 = vsel %vm1636_vm4, %v1619_v62, %v4177_v63  ;;  %1723 = vmatprep.mubr.f32.mxu0 %v3849_v2  ;;  %716 = vmatprep.mubr.f32.mxu1 %v3849_v2 }
  0xaa   :  { %1659 = vmatprep.subr.mxu0 %v1638_v0  ;;  %3667 = vperm.xlu0 %3848, %v3664_v61  }
  0xab   :  { %3714 = vmatmul.mubr.msk.f32.vlgmr.msra.gmra.mrb[6].mxu1 %vm77_vm0, %v3914_v6 }
  0xac   :  { %v1617_v1 = vpop.permute.xlu0 %1616  ;;  %v1627_v3 = vpop.permute.xlu1 %1626  ;;  %974 = vmatprep.mubr.f32.mxu1 %v3849_v2 }
  0xad   :  { %v1637_v5 = vsel %vm1636_vm4, %v1617_v1, %v1619_v62 }
  0xae   :  { %1660 = vmatpush1.msra.mxu0 %v1637_v5 }
  0xaf   :  { %3729 = vmatmul.mubr.msk.f32.vlgmr.msra.gmra.mrb[4].mxu0 %vm77_vm0, %v4191_v4 }
  0xb0   :  { %v4197_v7 = vpop.permute.xlu0 %1628  ;;  %v4199_v8 = vpop.permute.xlu1 %1624  ;;  %1865 = vmatprep.mubr.f32.mxu0 %v3849_v2 }
  0xb1   :  { %v1641_v6 = vsel %vm1636_vm4, %v4199_v8, %v1627_v3  ;;  %v1642_v9 = vsel %vm1636_vm4, %v1627_v3, %v4197_v7 }
  0xb2   :  { %1801 = vmatprep.subr.mxu0 %v1642_v9 }
  0xb3   :  { %1802 = vmatpush1.msra.mxu0 %v1641_v6 }
  0xb4   :  { %v803_v10 = vpop.permute.xlu0 %802  ;;  %v4206_v11 = vpop.permute.xlu1 %1632  ;;  %3731 = vmatmul.mubr.msk.f32.vlgmr.msra.gmra.mrb[0].mxu0 %vm77_vm0, %v4191_v4 }
  0xb5   :  { %v819_v12 = vsel %vm816_vm2, %v4047_v19, %v803_v10  ;;  %v820_v13 = vsel %vm816_vm2, %v803_v10, %v4084_v31  ;;  %2007 = vmatprep.mubr.f32.mxu0 %v3849_v2 }
  0xb6   :  { %910 = vmatprep.subr.mxu1 %v820_v13 }
  0xb7   :  { %911 = vmatpush1.msra.mxu1 %v819_v12 }
  0xb8   :  { %v1635_v14 = vpop.permute.xlu0 %1634  ;;  %v811_v15 = vpop.permute.xlu1 %810  ;;  %3718 = vmatmul.mubr.msk.f32.vlgmr.msra.gmra.mrb[2].mxu1 %vm77_vm0, %v4057_v23 }
  0xb9   :  { %v1645_v16 = vsel %vm1636_vm4, %v4206_v11, %v1635_v14  ;;  %v823_v17 = vsel %vm816_vm2, %v4073_v29, %v811_v15  ;;  %1943 = vmatprep.subr.mxu0 %v1635_v14  ;;  %v824_v18 = vsel %vm816_vm2, %v811_v15, %v4094_v35  ;;  %1116 = vmatprep.mubr.f32.mxu1 %v3849_v2 }
  0xba   :  { %1052 = vmatprep.subr.mxu1 %v824_v18  ;;  %1944 = vmatpush1.msra.mxu0 %v1645_v16 }
  0xbb   :  { %1053 = vmatpush1.msra.mxu1 %v823_v17  ;;  %3733 = vmatmul.mubr.msk.f32.vlgmr.msra.gmra.mrb[2].mxu0 %vm77_vm0, %v4191_v4 }
  0xbc   :  { %v2029_v19 = vpop.permute.xlu0 %2028  ;;  %v4226_v20 = vpop.permute.xlu1 %2030  ;;  %3720 = vmatmul.mubr.msk.f32.vlgmr.msra.gmra.mrb[6].mxu1 %vm77_vm0, %v4057_v23  ;;  %2133 = vmatprep.mubr.f32.mxu0 %v3849_v2 }
  0xbd   :  { %v2048_v21 = vsel %vm2046_vm5, %v2029_v19, %v4226_v20  ;;  %1384 = vmatprep.mubr.f32.mxu1 %v3849_v2 }
  0xbe   :  { %2069 = vmatprep.subr.mxu0 %v2048_v21 }
  0xc0   :  { %v2027_v22 = vpop.permute.xlu0 %2026  ;;  %v1213_v24 = vpop.permute.xlu1 %1212 }
  0xc1   :  { %v2047_v26 = vsel %vm2046_vm5, %v2027_v22, %v2029_v19  ;;  %v1229_v23 = vsel %vm1226_vm3, %v4121_v45, %v1213_v24  ;;  %v1230_v27 = vsel %vm1226_vm3, %v1213_v24, %v4150_v55 }
  0xc2   :  { %1320 = vmatprep.subr.mxu1 %v1230_v27  ;;  %2070 = vmatpush1.msra.mxu0 %v2047_v26 }
  0xc3   :  { %1321 = vmatpush1.msra.mxu1 %v1229_v23  ;;  %3735 = vmatmul.mubr.msk.f32.vlgmr.msra.gmra.mrb[4].mxu0 %vm77_vm0, %v4237_v25 }
  0xc4   :  { %v2037_v28 = vpop.permute.xlu0 %2036  ;;  %v4246_v29 = vpop.permute.xlu1 %2038  ;;  %3724 = vmatmul.mubr.msk.f32.vlgmr.msra.gmra.mrb[2].mxu1 %vm77_vm0, %v4131_v50  ;;  %2275 = vmatprep.mubr.f32.mxu0 %v3849_v2 }
  0xc5   :  { %v2052_v30 = vsel %vm2046_vm5, %v2037_v28, %v4246_v29  ;;  %1526 = vmatprep.mubr.f32.mxu1 %v3849_v2 }
  0xc6   :  { %2211 = vmatprep.subr.mxu0 %v2052_v30 }
  0xc8   :  { %v2035_v31 = vpop.permute.xlu0 %2034  ;;  %v1221_v32 = vpop.permute.xlu1 %1220 }
  0xc9   :  { %v2051_v33 = vsel %vm2046_vm5, %v2035_v31, %v2037_v28  ;;  %v1233_v34 = vsel %vm1226_vm3, %v4148_v54, %v1221_v32  ;;  %v1234_v35 = vsel %vm1226_vm3, %v1221_v32, %v4162_v58 }
  0xca   :  { %1462 = vmatprep.subr.mxu1 %v1234_v35  ;;  %2212 = vmatpush1.msra.mxu0 %v2051_v33 }
  0xcb   :  { %1463 = vmatpush1.msra.mxu1 %v1233_v34  ;;  %3737 = vmatmul.mubr.msk.f32.vlgmr.msra.gmra.mrb[0].mxu0 %vm77_vm0, %v4237_v25 }
  0xcc   :  { %v2043_v36 = vpop.permute.xlu0 %2042  ;;  %v2045_v37 = vpop.permute.xlu1 %2044  ;;  %3726 = vmatmul.mubr.msk.f32.vlgmr.msra.gmra.mrb[6].mxu1 %vm77_vm0, %v4131_v50  ;;  %2417 = vmatprep.mubr.f32.mxu0 %v3849_v2 }
  0xcd   :  { %v2055_v38 = vsel %vm2046_vm5, %v2043_v36, %v2045_v37  ;;  %2353 = vmatprep.subr.mxu0 %v2045_v37  ;;  %1794 = vmatprep.mubr.f32.mxu1 %v3849_v2 }
  0xce   :  { %2354 = vmatpush1.msra.mxu0 %v2055_v38 }
  0xcf   :  { %3739 = vmatmul.mubr.msk.f32.vlgmr.msra.gmra.mrb[2].mxu0 %vm77_vm0, %v4237_v25 }
  0xd0   :  { %v1623_v39 = vpop.permute.xlu0 %1622  ;;  %v2439_v40 = vpop.permute.xlu1 %2438  ;;  %2543 = vmatprep.mubr.f32.mxu0 %v3849_v2 }
  0xd1   :  { %v1639_v41 = vsel %vm1636_vm4, %v4177_v63, %v1623_v39  ;;  %v1640_v42 = vsel %vm1636_vm4, %v1623_v39, %v4199_v8 }
  0xd2   :  { %1730 = vmatprep.subr.mxu1 %v1640_v42 }
  0xd3   :  { %1731 = vmatpush1.msra.mxu1 %v1639_v41 }
  0xd4   :  { %v2441_v43 = vpop.permute.xlu0 %2440  ;;  %v2437_v44 = vpop.permute.xlu1 %2436  ;;  %3730 = vmatmul.mubr.msk.f32.vlgmr.msra.gmra.mrb[2].mxu1 %vm77_vm0, %v4191_v4 }
  0xd5   :  { %v2457_v45 = vsel %vm2456_vm6, %v2437_v44, %v2439_v40  ;;  %v2458_v46 = vsel %vm2456_vm6, %v2439_v40, %v2441_v43  ;;  %1936 = vmatprep.mubr.f32.mxu1 %v3849_v2 }
  0xd6   :  { %2479 = vmatprep.subr.mxu0 %v2458_v46 }
  0xd7   :  { %2480 = vmatpush1.msra.mxu0 %v2457_v45 }
  0xd8   :  { %v1631_v48 = vpop.permute.xlu0 %1630  ;;  %v2447_v49 = vpop.permute.xlu1 %2446  ;;  %3741 = vmatmul.mubr.msk.f32.vlgmr.msra.gmra.mrb[4].mxu0 %vm77_vm0, %v4280_v47 }
  0xd9   :  { %v1643_v50 = vsel %vm1636_vm4, %v4197_v7, %v1631_v48  ;;  %v1644_v51 = vsel %vm1636_vm4, %v1631_v48, %v4206_v11  ;;  %2685 = vmatprep.mubr.f32.mxu0 %v3849_v2  ;;  %v3746_v7 = vld [vmem:[%s4397_s1 + $0x38] sm:$0xff] }
  0xda   :  { %1872 = vmatprep.subr.mxu1 %v1644_v51 }
  0xdb   :  { %1873 = vmatpush1.msra.mxu1 %v1643_v50 }
  0xdc   :  { %v2449_v52 = vpop.permute.xlu0 %2448  ;;  %v2445_v53 = vpop.permute.xlu1 %2444  ;;  %3732 = vmatmul.mubr.msk.f32.vlgmr.msra.gmra.mrb[6].mxu1 %vm77_vm0, %v4191_v4 }
  0xdd   :  { %v2461_v54 = vsel %vm2456_vm6, %v2445_v53, %v2447_v49  ;;  %v2462_v55 = vsel %vm2456_vm6, %v2447_v49, %v2449_v52  ;;  %2204 = vmatprep.mubr.f32.mxu1 %v3849_v2 }
  0xde   :  { %2621 = vmatprep.subr.mxu0 %v2462_v55 }
  0xdf   :  { %2622 = vmatpush1.msra.mxu0 %v2461_v54 }
  0xe0   :  { %v2033_v56 = vpop.permute.xlu0 %2032  ;;  %v2453_v57 = vpop.permute.xlu1 %2452  ;;  %3743 = vmatmul.mubr.msk.f32.vlgmr.msra.gmra.mrb[0].mxu0 %vm77_vm0, %v4280_v47 }
  0xe1   :  { %v2049_v58 = vsel %vm2046_vm5, %v4226_v20, %v2033_v56  ;;  %v2050_v59 = vsel %vm2046_vm5, %v2033_v56, %v2035_v31  ;;  %2827 = vmatprep.mubr.f32.mxu0 %v3849_v2 }
  0xe2   :  { %2140 = vmatprep.subr.mxu1 %v2050_v59 }
  0xe3   :  { %2141 = vmatpush1.msra.mxu1 %v2049_v58 }
  0xe4   :  { %v2455_v60 = vpop.permute.xlu0 %2454  ;;  %v2041_v61 = vpop.permute.xlu1 %2040  ;;  %3736 = vmatmul.mubr.msk.f32.vlgmr.msra.gmra.mrb[2].mxu1 %vm77_vm0, %v4237_v25 }
  0xe5   :  { %v2465_v62 = vsel %vm2456_vm6, %v2453_v57, %v2455_v60  ;;  %v2053_v63 = vsel %vm2046_vm5, %v4246_v29, %v2041_v61  ;;  %2763 = vmatprep.subr.mxu0 %v2455_v60  ;;  %v2054_v0 = vsel %vm2046_vm5, %v2041_v61, %v2043_v36  ;;  %2346 = vmatprep.mubr.f32.mxu1 %v3849_v2  ;;  %v3752_v29 = vld [vmem:[%s4397_s1 + $0x40] sm:$0xff] }
  0xe6   :  { %2282 = vmatprep.subr.mxu1 %v2054_v0  ;;  %2764 = vmatpush1.msra.mxu0 %v2465_v62 }
  0xe7   :  { %2283 = vmatpush1.msra.mxu1 %v2053_v63  ;;  %3745 = vmatmul.mubr.msk.f32.vlgmr.msra.gmra.mrb[2].mxu0 %vm77_vm0, %v4280_v47 }
  0xe8   :  { %v2849_v1 = vpop.permute.xlu0 %2848  ;;  %v2851_v3 = vpop.permute.xlu1 %2850  ;;  %3738 = vmatmul.mubr.msk.f32.vlgmr.msra.gmra.mrb[6].mxu1 %vm77_vm0, %v4237_v25  ;;  %2953 = vmatprep.mubr.f32.mxu0 %v3849_v2 }
  0xe9   :  { %v2868_v4 = vsel %vm2866_vm7, %v2849_v1, %v2851_v3  ;;  %2614 = vmatprep.mubr.f32.mxu1 %v3849_v2 }
  0xea   :  { %2889 = vmatprep.subr.mxu0 %v2868_v4 }
  0xec   :  { %v2847_v5 = vpop.permute.xlu0 %2846 }
  0xed   :  { %v2867_v8 = vsel %vm2866_vm7, %v2847_v5, %v2849_v1  ;;  %v2443_v6 = vpop.permute.xlu1 %2442 }
  0xee   :  { %v2459_v9 = vsel %vm2456_vm6, %v2441_v43, %v2443_v6  ;;  %v2460_v10 = vsel %vm2456_vm6, %v2443_v6, %v2445_v53  ;;  %2890 = vmatpush1.msra.mxu0 %v2867_v8 }
  0xef   :  { %2550 = vmatprep.subr.mxu1 %v2460_v10  ;;  %3747 = vmatmul.mubr.msk.f32.vlgmr.msra.gmra.mrb[4].mxu0 %vm77_vm0, %v3746_v7 }
  0xf0   :  { %2551 = vmatpush1.msra.mxu1 %v2459_v9  ;;  %v2857_v11 = vpop.permute.xlu0 %2856  ;;  %3095 = vmatprep.mubr.f32.mxu0 %v3849_v2 }
  0xf1   :  { %v2859_v12 = vpop.permute.xlu1 %2858  ;;  %3742 = vmatmul.mubr.msk.f32.vlgmr.msra.gmra.mrb[2].mxu1 %vm77_vm0, %v4280_v47 }
  0xf2   :  { %v2872_v13 = vsel %vm2866_vm7, %v2857_v11, %v2859_v12  ;;  %2756 = vmatprep.mubr.f32.mxu1 %v3849_v2 }
  0xf3   :  { %3031 = vmatprep.subr.mxu0 %v2872_v13 }
  0xf4   :  { %v2855_v14 = vpop.permute.xlu0 %2854 }
  0xf5   :  { %v2871_v15 = vsel %vm2866_vm7, %v2855_v14, %v2857_v11  ;;  %v2451_v16 = vpop.permute.xlu1 %2450 }
  0xf6   :  { %v2463_v17 = vsel %vm2456_vm6, %v2449_v52, %v2451_v16  ;;  %v2464_v18 = vsel %vm2456_vm6, %v2451_v16, %v2453_v57  ;;  %3032 = vmatpush1.msra.mxu0 %v2871_v15 }
  0xf7   :  { %2692 = vmatprep.subr.mxu1 %v2464_v18  ;;  %3749 = vmatmul.mubr.msk.f32.vlgmr.msra.gmra.mrb[0].mxu0 %vm77_vm0, %v3746_v7 }
  0xf8   :  { %2693 = vmatpush1.msra.mxu1 %v2463_v17  ;;  %v2863_v19 = vpop.permute.xlu0 %2862  ;;  %3237 = vmatprep.mubr.f32.mxu0 %v3849_v2 }
  0xf9   :  { %v2865_v20 = vpop.permute.xlu1 %2864  ;;  %3744 = vmatmul.mubr.msk.f32.vlgmr.msra.gmra.mrb[6].mxu1 %vm77_vm0, %v4280_v47 }
  0xfa   :  { %v2875_v21 = vsel %vm2866_vm7, %v2863_v19, %v2865_v20  ;;  %3173 = vmatprep.subr.mxu0 %v2865_v20  ;;  %3024 = vmatprep.mubr.f32.mxu1 %v3849_v2 }
  0xfb   :  { %3174 = vmatpush1.msra.mxu0 %v2875_v21 }
  0xfc   :  { %v2853_v22 = vpop.permute.xlu0 %2852  ;;  %3751 = vmatmul.mubr.msk.f32.vlgmr.msra.gmra.mrb[2].mxu0 %vm77_vm0, %v3746_v7 }
  0xfd   :  { %v2869_v24 = vsel %vm2866_vm7, %v2851_v3, %v2853_v22  ;;  %v3259_v25 = vpop.permute.xlu1 %3258  ;;  %v2870_v26 = vsel %vm2866_vm7, %v2853_v22, %v2855_v14  ;;  %3363 = vmatprep.mubr.f32.mxu0 %v3849_v2 }
  0xfe   :  { %2960 = vmatprep.subr.mxu1 %v2870_v26 }
  0xff   :  { %2961 = vmatpush1.msra.mxu1 %v2869_v24 }
 0x100   :  { %v3261_v23 = vpop.permute.xlu0 %3260  ;;  %3748 = vmatmul.mubr.msk.f32.vlgmr.msra.gmra.mrb[2].mxu1 %vm77_vm0, %v3746_v7 }
 0x101   :  { %v3257_v27 = vpop.permute.xlu1 %3256  ;;  %v3278_v28 = vsel %vm3276_vm8, %v3259_v25, %v3261_v23  ;;  %3166 = vmatprep.mubr.f32.mxu1 %v3849_v2 }
 0x102   :  { %v3277_v30 = vsel %vm3276_vm8, %v3257_v27, %v3259_v25  ;;  %3299 = vmatprep.subr.mxu0 %v3278_v28 }
 0x103   :  { %3300 = vmatpush1.msra.mxu0 %v3277_v30 }
 0x104   :  { %v2861_v31 = vpop.permute.xlu0 %2860  ;;  %3753 = vmatmul.mubr.msk.f32.vlgmr.msra.gmra.mrb[4].mxu0 %vm77_vm0, %v3752_v29 }
 0x105   :  { %v2873_v32 = vsel %vm2866_vm7, %v2859_v12, %v2861_v31  ;;  %v3267_v33 = vpop.permute.xlu1 %3266  ;;  %v2874_v34 = vsel %vm2866_vm7, %v2861_v31, %v2863_v19  ;;  %3505 = vmatprep.mubr.f32.mxu0 %v3849_v2 }
 0x106   :  { %3102 = vmatprep.subr.mxu1 %v2874_v34 }
 0x107   :  { %3103 = vmatpush1.msra.mxu1 %v2873_v32 }
 0x108   :  { %v3269_v35 = vpop.permute.xlu0 %3268  ;;  %3750 = vmatmul.mubr.msk.f32.vlgmr.msra.gmra.mrb[6].mxu1 %vm77_vm0, %v3746_v7 }
 0x109   :  { %v3265_v36 = vpop.permute.xlu1 %3264  ;;  %v3282_v37 = vsel %vm3276_vm8, %v3267_v33, %v3269_v35  ;;  %3434 = vmatprep.mubr.f32.mxu1 %v3849_v2 }
 0x10a   :  { %v3281_v38 = vsel %vm3276_vm8, %v3265_v36, %v3267_v33  ;;  %3441 = vmatprep.subr.mxu0 %v3282_v37 }
 0x10b   :  { %3442 = vmatpush1.msra.mxu0 %v3281_v38 }
 0x10c   :  { %v3263_v39 = vpop.permute.xlu0 %3262  ;;  %3755 = vmatmul.mubr.msk.f32.vlgmr.msra.gmra.mrb[0].mxu0 %vm77_vm0, %v3752_v29 }
 0x10d   :  { %v3279_v40 = vsel %vm3276_vm8, %v3261_v23, %v3263_v39  ;;  %v3273_v41 = vpop.permute.xlu1 %3272  ;;  %v3280_v42 = vsel %vm3276_vm8, %v3263_v39, %v3265_v36  ;;  %3647 = vmatprep.mubr.f32.mxu0 %v3849_v2 }
 0x10e   :  { %3370 = vmatprep.subr.mxu1 %v3280_v42 }
 0x10f   :  { %3371 = vmatpush1.msra.mxu1 %v3279_v40 }
 0x110   :  { %v3275_v43 = vpop.permute.xlu0 %3274  ;;  %3754 = vmatmul.mubr.msk.f32.vlgmr.msra.gmra.mrb[2].mxu1 %vm77_vm0, %v3752_v29 }
 0x111   :  { %v3285_v44 = vsel %vm3276_vm8, %v3273_v41, %v3275_v43  ;;  %v3271_v45 = vpop.permute.xlu1 %3270  ;;  %3583 = vmatprep.subr.mxu0 %v3275_v43  ;;  %3576 = vmatprep.mubr.f32.mxu1 %v3849_v2 }
 0x112   :  { %v3283_v46 = vsel %vm3276_vm8, %v3269_v35, %v3271_v45  ;;  %v3284_v47 = vsel %vm3276_vm8, %v3271_v45, %v3273_v41  ;;  %3584 = vmatpush1.msra.mxu0 %v3285_v44 }
 0x113   :  { %3512 = vmatprep.subr.mxu1 %v3284_v47  ;;  %3757 = vmatmul.mubr.msk.f32.vlgmr.msra.gmra.mrb[2].mxu0 %vm77_vm0, %v3752_v29 }
 0x114   :  { %3513 = vmatpush1.msra.mxu1 %v3283_v46 }
 0x115   :  { %3756 = vmatmul.mubr.msk.f32.vlgmr.msra.gmra.mrb[6].mxu1 %vm77_vm0, %v3752_v29 }
 0x129   :  { %v3668_v55 = vpop.permute.xlu0 %3667 }
 0x163   :  { %v289_v48 = vpop.f32.mrb[4].mxu1 }
 0x164   :  { %v291_v49 = vpop.f32.mrb[5].mxu1 }
 0x172   :  { %v431_v50 = vpop.f32.mrb[8].mxu1 }
 0x173   :  { %v433_v51 = vpop.f32.mrb[9].mxu1 }
 0x176   :  { %v505_v52 = vpop.f32.mrb[0].mxu1 }
 0x177   :  { %v507_v53 = vpop.f32.mrb[1].mxu1 }
 0x1d7   :  { %v3365_v54 = vpop.f32.mrb[4].mxu0 }
 0x1d8   :  { %v3758_v2 = vadd.f32 %v3365_v54, %v505_v52  ;;  %v3367_v56 = vpop.f32.mrb[5].mxu0 }
 0x1d9   :  { %v3759_v57 = vadd.f32 %v3367_v56, %v507_v53 }
 0x1da   :  { %v3670_v58 = vadd.f32 %v3758_v2, %v3668_v55 }
 0x1db   :  { %v3671_v59 = vadd.f32 %v3759_v57, %v3668_v55 }
 0x1dc   :  { %v3680_v60 = vmax.f32 %v3670_v58, 0.0 }
 0x1dd   :  { %v3681_v61 = vmax.f32 %v3671_v59, 0.0 }
 0x1de   :  { %3690 = vst [vmem:[%s4399_s3] sm:$0xff] %v3680_v60 }
 0x1df   :  { %3691 = vst [vmem:[%s4399_s3 + $0x8] sm:$0xff] %v3681_v61  ;;  %v3507_v62 = vpop.f32.mrb[0].mxu0 }
 0x1e0   :  { %v3760_v63 = vadd.f32 %v3507_v62, %v289_v48  ;;  %v3509_v0 = vpop.f32.mrb[1].mxu0 }
 0x1e1   :  { %v3761_v1 = vadd.f32 %v3509_v0, %v291_v49 }
 0x1e2   :  { %v3674_v3 = vadd.f32 %v3760_v63, %v3668_v55 }
 0x1e3   :  { %v3675_v4 = vadd.f32 %v3761_v1, %v3668_v55  ;;  %v3436_v5 = vpop.f32.mrb[2].mxu1 }
 0x1e4   :  { %v3684_v7 = vmax.f32 %v3674_v3, 0.0  ;;  %v3672_v8 = vadd.f32 %v3668_v55, %v3436_v5  ;;  %v3438_v6 = vpop.f32.mrb[3].mxu1 }
 0x1e5   :  { %v3685_v9 = vmax.f32 %v3675_v4, 0.0  ;;  %v3673_v10 = vadd.f32 %v3668_v55, %v3438_v6 }
 0x1e6   :  { %3694 = vst [vmem:[%s4399_s3 + $0x20] sm:$0xff] %v3684_v7  ;;  %v3682_v11 = vmax.f32 %v3672_v8, 0.0  ;;  %v3649_v12 = vpop.f32.mrb[2].mxu0 }
 0x1e7   :  { %3695 = vst [vmem:[%s4399_s3 + $0x28] sm:$0xff] %v3685_v9  ;;  %v3683_v13 = vmax.f32 %v3673_v10, 0.0  ;;  %v3762_v14 = vadd.f32 %v3649_v12, %v431_v50  ;;  %v3651_v15 = vpop.f32.mrb[3].mxu0 }
 0x1e8   :  { %3692 = vst [vmem:[%s4399_s3 + $0x10] sm:$0xff] %v3682_v11  ;;  %v3578_v16 = vpop.f32.mrb[6].mxu1  ;;  %v3763_v17 = vadd.f32 %v3651_v15, %v433_v51 }
 0x1e9   :  { %3693 = vst [vmem:[%s4399_s3 + $0x18] sm:$0xff] %v3683_v13  ;;  %v3678_v18 = vadd.f32 %v3762_v14, %v3668_v55  ;;  %v3676_v19 = vadd.f32 %v3668_v55, %v3578_v16  ;;  %v3580_v20 = vpop.f32.mrb[7].mxu1 }
 0x1ea   :  { %v3679_v21 = vadd.f32 %v3763_v17, %v3668_v55  ;;  %v3677_v22 = vadd.f32 %v3668_v55, %v3580_v20 }
 0x1eb   :  { %v3688_v24 = vmax.f32 %v3678_v18, 0.0  ;;  %v3686_v25 = vmax.f32 %v3676_v19, 0.0 }
 0x1ec   :  { %v3689_v26 = vmax.f32 %v3679_v21, 0.0  ;;  %v3687_v23 = vmax.f32 %v3677_v22, 0.0 }
 0x1ed   :  { %3698 = vst [vmem:[%s4399_s3 + $0x40] sm:$0xff] %v3688_v24  ;;  %3696 = vst [vmem:[%s4399_s3 + $0x30] sm:$0xff] %v3686_v25 }
 0x1ee   :  { %3700 = vst.msk [vmem:[%s4399_s3 + $0x48] sm:$0xff] %vm3699_vm9, %v3689_v26  ;;  %3697 = vst [vmem:[%s4399_s3 + $0x38] sm:$0xff] %v3687_v23 }

// kernel: _lambda_.7
= control target key start
LH: loop header
LB: loop body
LE: loop exit
PB: predicated region body
PF: predicated region fallthrough
CT: control target
= control target key end

     0   :  { %v1018_v3 = vmov 0.0|0.0   ;;  %s1019_s28 = smov 127   ;;  %v1020_v17 = vmov 0.0   ;;  %vm1021_vm0 = vmmov 0   ;;  %s1023_s10 = smov 115   ;;  %v1024_v26 = vmov 0   ;;  %s1223_s0 = inlined_call_operand.vmem [shape: f32[32,325], index: 0, kind: input, shape index: {}]   ;;  %s1224_s2 = inlined_call_operand.vmem [shape: f32[8,1], index: 2, kind: input, shape index: {}]   ;;  %s1225_s1 = inlined_call_operand.vmem [shape: f32[4,8,32], index: 1, kind: input, shape index: {}]   ;;  %s1226_s3 = inlined_call_operand.vmem [shape: f32[8,312], index: 3, kind: output, shape index: {}]  }
   0x1   :  { %v1048_v0 = vld [vmem:[%s1223_s0 + $0x8] sm:$0xff]  ;;  %v1053_v1 = vld [vmem:[%s1223_s0 + $0x10] sm:$0xff]  ;;  %v1058_v2 = vld [vmem:[%s1223_s0] sm:$0xff]  ;;  %866 = vmatprep.subr.bf16.mxu1 %v1018_v3  ;;  %154 = vmatprep.mubr.f32.mxu0 %v1020_v17  ;;  %vm65_vm1 = vcmask 1039360   ;;  %vm86_vm2 = vcmask 261120   ;;  %vm401_vm3 = vcmask 949248  }
   0x2   :  { %v927_v4 = vpack.i.bf16 %v1053_v1, %v1048_v0  ;;  %v1066_v5 = vld [vmem:[%s1223_s0 + $0x18] sm:$0xff]  ;;  %v1071_v6 = vld [vmem:[%s1223_s0 + $0x20] sm:$0xff]  ;;  %v1076_v7 = vld [vmem:[%s1223_s0 + $0x28] sm:$0xff]  ;;  %822 = vmatprep.mubr.msk.f32.mxu1 %vm1021_vm0, %v1020_v17  ;;  %1017 = vset.pattern.permute.xlu0 %v1024_v26  ;;  %vm595_vm4 = vcmask 941056   ;;  %vm777_vm5 = vcmask 457728  }
   0x3   :  { %v937_v8 = vpack.i.bf16 %v1066_v5, %v1058_v2  ;;  %v1083_v9 = vld [vmem:[%s1223_s0 + $0x38] sm:$0xff]  ;;  %v1088_v10 = vld [vmem:[%s1223_s0 + $0x40] sm:$0xff]  ;;  %v932_v11 = vpack.i.bf16 %v1076_v7, %v1071_v6  ;;  %v1097_v13 = vld [vmem:[%s1223_s0 + $0x50] sm:$0xff]  ;;  %v881_v18 = vpack.c.bf16 %v1076_v7, %v1053_v1  ;;  %v872_v20 = vpack.c.bf16 %v1071_v6, %v1048_v0 }
   0x4   :  { %928 = vrot.lane.b32.xlu0 %v927_v4, %s1019_s28  ;;  %v942_v12 = vpack.i.bf16 %v1088_v10, %v1083_v9  ;;  %v1102_v14 = vld [vmem:[%s1223_s0 + $0x58] sm:$0xff]  ;;  %v1107_v15 = vld [vmem:[%s1223_s0 + $0x30] sm:$0xff]  ;;  %v1112_v16 = vld [vmem:[%s1223_s0 + $0x48] sm:$0xff]  ;;  %v874_v21 = vpack.c.bf16 %v1066_v5, %v1058_v2  ;;  %v876_v24 = vpack.c.bf16 %v1097_v13, %v1083_v9  ;;  %s1022_s0 = smov 116  }
   0x5   :  { %938 = vrot.lane.b32.xlu1 %v937_v8, %s1019_s28  ;;  %v947_v19 = vpack.i.bf16 %v1102_v14, %v1097_v13  ;;  %v952_v22 = vpack.i.bf16 %v1112_v16, %v1107_v15  ;;  %v884_v23 = vpack.c.bf16 %v1102_v14, %v1088_v10  ;;  %v878_v25 = vpack.c.bf16 %v1112_v16, %v1107_v15  ;;  %v763_v27 = vld [vmem:[%s1224_s2] sm:$0xff]  ;;  %v783_v62 = vld [vmem:[%s1225_s1 + $0x8] sm:$0xff] }
   0x8   :  { %933 = vrot.lane.b32.xlu0 %v932_v11, %s1019_s28 }
   0x9   :  { %943 = vrot.lane.b32.xlu1 %v942_v12, %s1019_s28 }
   0xc   :  { %948 = vrot.lane.b32.xlu0 %v947_v19, %s1019_s28 }
   0xd   :  { %953 = vrot.lane.b32.xlu1 %v952_v22, %s1019_s28 }
  0x10   :  { %958 = vrot.lane.b32.xlu0 %v927_v4, %s1022_s0 }
  0x11   :  { %963 = vrot.lane.b32.xlu1 %v932_v11, %s1022_s0 }
  0x14   :  { %968 = vrot.lane.b32.xlu0 %v937_v8, %s1022_s0 }
  0x15   :  { %973 = vrot.lane.b32.xlu1 %v942_v12, %s1022_s0 }
  0x18   :  { %978 = vrot.lane.b32.xlu0 %v947_v19, %s1022_s0 }
  0x19   :  { %983 = vrot.lane.b32.xlu1 %v952_v22, %s1022_s0 }
  0x1c   :  { %988 = vrot.lane.b32.xlu0 %v927_v4, %s1023_s10 }
  0x1d   :  { %993 = vrot.lane.b32.xlu1 %v932_v11, %s1023_s10 }
  0x20   :  { %998 = vrot.lane.b32.xlu0 %v937_v8, %s1023_s10 }
  0x21   :  { %1003 = vrot.lane.b32.xlu1 %v942_v12, %s1023_s10 }
  0x24   :  { %1008 = vrot.lane.b32.xlu0 %v947_v19, %s1023_s10 }
  0x25   :  { %1013 = vrot.lane.b32.xlu1 %v952_v22, %s1023_s10 }
  0x28   :  { %766 = vperm.xlu0 %1017, %v763_v27  }
  0x76   :  { %v929_v28 = vpop.permute.xlu0 %928 }
  0x77   :  { %v939_v29 = vpop.permute.xlu1 %938  ;;  %v931_v30 = vunpack.i.h.bf16 %v929_v28  ;;  %v930_v31 = vunpack.i.l.bf16 %v929_v28 }
  0x78   :  { %v940_v32 = vunpack.i.l.bf16 %v939_v29  ;;  %v941_v34 = vunpack.i.h.bf16 %v939_v29 }
  0x79   :  { %v67_v39 = vsel %vm65_vm1, %v930_v31, %v931_v30 }
  0x7a   :  { %v934_v33 = vpop.permute.xlu0 %933  ;;  %v66_v40 = vsel %vm65_vm1, %v940_v32, %v930_v31 }
  0x7b   :  { %v936_v35 = vunpack.i.h.bf16 %v934_v33  ;;  %v935_v36 = vunpack.i.l.bf16 %v934_v33  ;;  %v944_v37 = vpop.permute.xlu1 %943 }
  0x7c   :  { %v946_v38 = vunpack.i.h.bf16 %v944_v37  ;;  %v945_v41 = vunpack.i.l.bf16 %v944_v37 }
  0x7d   :  { %v867_v42 = vpack.c.bf16 %v936_v35, %v931_v30  ;;  %v69_v43 = vsel %vm65_vm1, %v935_v36, %v936_v35  ;;  %v68_v44 = vsel %vm65_vm1, %v941_v34, %v935_v36 }
  0x7e   :  { %v949_v45 = vpop.permute.xlu0 %948  ;;  %v858_v46 = vpack.c.bf16 %v69_v43, %v67_v39  ;;  %v860_v47 = vpack.c.bf16 %v68_v44, %v66_v40  ;;  %v71_v54 = vsel %vm65_vm1, %v945_v41, %v946_v38  ;;  %v788_v44 = vld [vmem:[%s1225_s1 + $0x10] sm:$0xff] }
  0x7f   :  { %v951_v48 = vunpack.i.h.bf16 %v949_v45  ;;  %v950_v49 = vunpack.i.l.bf16 %v949_v45  ;;  %v954_v50 = vpop.permute.xlu1 %953  ;;  %868 = vmatpush3.bf16.msra.mxu1 %v867_v42 }
  0x80   :  { %v956_v51 = vunpack.i.h.bf16 %v954_v50  ;;  %v955_v52 = vunpack.i.l.bf16 %v954_v50  ;;  %859 = vmatprep.subr.bf16.mxu0 %v858_v46  ;;  %869 = vmatprep.subr.bf16.mxu1 %v1018_v3 }
  0x81   :  { %v870_v53 = vpack.c.bf16 %v951_v48, %v946_v38  ;;  %861 = vmatpush1.bf16.msra.mxu0 %v860_v47  ;;  %v73_v55 = vsel %vm65_vm1, %v950_v49, %v951_v48 }
  0x82   :  { %v959_v56 = vpop.permute.xlu0 %958  ;;  %v862_v57 = vpack.c.bf16 %v73_v55, %v71_v54  ;;  %v70_v58 = vsel %vm65_vm1, %v955_v52, %v945_v41  ;;  %v72_v59 = vsel %vm65_vm1, %v956_v51, %v950_v49 }
  0x83   :  { %v964_v60 = vpop.permute.xlu1 %963  ;;  %871 = vmatpush3.bf16.msra.mxu1 %v870_v53  ;;  %v864_v61 = vpack.c.bf16 %v72_v59, %v70_v58  ;;  %v961_v63 = vunpack.i.h.bf16 %v959_v56  ;;  %v960_v4 = vunpack.i.l.bf16 %v959_v56 }
  0x84   :  { %863 = vmatprep.subr.bf16.mxu0 %v862_v57  ;;  %880 = vmatprep.subr.bf16.mxu1 %v1018_v3  ;;  %v966_v8 = vunpack.i.h.bf16 %v964_v60  ;;  %v965_v11 = vunpack.i.l.bf16 %v964_v60 }
  0x85   :  { %865 = vmatpush1.bf16.msra.mxu0 %v864_v61  ;;  %v403_v0 = vsel %vm401_vm3, %v960_v4, %v961_v63 }
  0x86   :  { %v969_v12 = vpop.permute.xlu0 %968  ;;  %823 = vmatmul.mubr.msk.f32.vlgmr.msra.gmra.mrb[0].mxu1 %vm86_vm2, %v783_v62  ;;  %873 = vmatprep.subr.bf16.mxu0 %v872_v20  ;;  %v405_v6 = vsel %vm401_vm3, %v965_v11, %v966_v8  ;;  %v895_v9 = vpack.c.bf16 %v966_v8, %v961_v63  ;;  %v791_v8 = vld [vmem:[%s1225_s1 + $0x18] sm:$0xff] }
  0x87   :  { %v971_v19 = vunpack.i.h.bf16 %v969_v12  ;;  %v970_v22 = vunpack.i.l.bf16 %v969_v12  ;;  %v974_v26 = vpop.permute.xlu1 %973  ;;  %882 = vmatpush3.bf16.msra.mxu1 %v881_v18  ;;  %833 = vmatprep.mubr.msk.f32.mxu1 %vm1021_vm0, %v1020_v17  ;;  %v886_v31 = vpack.c.bf16 %v405_v6, %v403_v0 }
  0x88   :  { %784 = vmatmul.mubr.msk.f32.vlgmr.msra.gmra.mrb[0].mxu0 %vm86_vm2, %v783_v62  ;;  %883 = vmatprep.subr.bf16.mxu1 %v1018_v3  ;;  %v976_v20 = vunpack.i.h.bf16 %v974_v26  ;;  %v975_v1 = vunpack.i.l.bf16 %v974_v26 }
  0x89   :  { %875 = vmatpush1.bf16.msra.mxu0 %v874_v21  ;;  %298 = vmatprep.mubr.f32.mxu0 %v1020_v17  ;;  %v402_v18 = vsel %vm401_vm3, %v970_v22, %v960_v4  ;;  %v404_v27 = vsel %vm401_vm3, %v971_v19, %v965_v11  ;;  %v14_v21 = vld [vmem:[%s1225_s1] sm:$0xff] }
  0x8a   :  { %v979_v7 = vpop.permute.xlu0 %978  ;;  %877 = vmatprep.subr.bf16.mxu0 %v876_v24  ;;  %v888_v24 = vpack.c.bf16 %v404_v27, %v402_v18  ;;  %v407_v34 = vsel %vm401_vm3, %v975_v1, %v976_v20 }
  0x8b   :  { %v981_v28 = vunpack.i.h.bf16 %v979_v7  ;;  %v980_v2 = vunpack.i.l.bf16 %v979_v7  ;;  %v984_v5 = vpop.permute.xlu1 %983  ;;  %885 = vmatpush3.bf16.msra.mxu1 %v884_v23 }
  0x8c   :  { %v986_v29 = vunpack.i.h.bf16 %v984_v5  ;;  %v985_v30 = vunpack.i.l.bf16 %v984_v5  ;;  %894 = vmatprep.subr.bf16.mxu1 %v1018_v3 }
  0x8d   :  { %879 = vmatpush1.bf16.msra.mxu0 %v878_v25  ;;  %v409_v13 = vsel %vm401_vm3, %v980_v2, %v981_v28  ;;  %v898_v36 = vpack.c.bf16 %v981_v28, %v976_v20 }
  0x8e   :  { %v989_v32 = vpop.permute.xlu0 %988  ;;  %834 = vmatmul.mubr.msk.f32.vlgmr.msra.gmra.mrb[2].mxu1 %vm86_vm2, %v14_v21  ;;  %887 = vmatprep.subr.bf16.mxu0 %v886_v31  ;;  %v408_v10 = vsel %vm401_vm3, %v986_v29, %v980_v2  ;;  %v406_v15 = vsel %vm401_vm3, %v985_v30, %v975_v1  ;;  %v890_v35 = vpack.c.bf16 %v409_v13, %v407_v34 }
  0x8f   :  { %v991_v14 = vunpack.i.h.bf16 %v989_v32  ;;  %v990_v23 = vunpack.i.l.bf16 %v989_v32  ;;  %v994_v33 = vpop.permute.xlu1 %993  ;;  %896 = vmatpush3.bf16.msra.mxu1 %v895_v9  ;;  %844 = vmatprep.mubr.msk.f32.mxu1 %vm1021_vm0, %v1020_v17  ;;  %v892_v40 = vpack.c.bf16 %v408_v10, %v406_v15 }
  0x90   :  { %v996_v16 = vunpack.i.h.bf16 %v994_v33  ;;  %v995_v25 = vunpack.i.l.bf16 %v994_v33  ;;  %786 = vmatmul.mubr.msk.f32.vlgmr.msra.gmra.mrb[0].mxu0 %vm86_vm2, %v14_v21  ;;  %897 = vmatprep.subr.bf16.mxu1 %v1018_v3 }
  0x91   :  { %889 = vmatpush1.bf16.msra.mxu0 %v888_v24  ;;  %v597_v37 = vsel %vm595_vm4, %v990_v23, %v991_v14  ;;  %489 = vmatprep.mubr.f32.mxu0 %v1020_v17 }
  0x92   :  { %v999_v38 = vpop.permute.xlu0 %998  ;;  %891 = vmatprep.subr.bf16.mxu0 %v890_v35  ;;  %v599_v39 = vsel %vm595_vm4, %v995_v25, %v996_v16  ;;  %v909_v45 = vpack.c.bf16 %v996_v16, %v991_v14 }
  0x93   :  { %v1001_v41 = vunpack.i.h.bf16 %v999_v38  ;;  %v1000_v42 = vunpack.i.l.bf16 %v999_v38  ;;  %v1004_v43 = vpop.permute.xlu1 %1003  ;;  %899 = vmatpush3.bf16.msra.mxu1 %v898_v36  ;;  %v900_v46 = vpack.c.bf16 %v599_v39, %v597_v37 }
  0x94   :  { %908 = vmatprep.subr.bf16.mxu1 %v1018_v3  ;;  %v1006_v49 = vunpack.i.h.bf16 %v1004_v43  ;;  %v1005_v50 = vunpack.i.l.bf16 %v1004_v43 }
  0x95   :  { %v596_v47 = vsel %vm595_vm4, %v1000_v42, %v990_v23  ;;  %v598_v48 = vsel %vm595_vm4, %v1001_v41, %v995_v25  ;;  %893 = vmatpush1.bf16.msra.mxu0 %v892_v40 }
  0x96   :  { %v902_v51 = vpack.c.bf16 %v598_v48, %v596_v47  ;;  %v1009_v52 = vpop.permute.xlu0 %1008  ;;  %845 = vmatmul.mubr.msk.f32.vlgmr.msra.gmra.mrb[4].mxu1 %vm86_vm2, %v788_v44  ;;  %901 = vmatprep.subr.bf16.mxu0 %v900_v46  ;;  %v601_v59 = vsel %vm595_vm4, %v1005_v50, %v1006_v49 }
  0x97   :  { %v1011_v53 = vunpack.i.h.bf16 %v1009_v52  ;;  %v1010_v54 = vunpack.i.l.bf16 %v1009_v52  ;;  %v1014_v55 = vpop.permute.xlu1 %1013  ;;  %910 = vmatpush3.bf16.msra.mxu1 %v909_v45  ;;  %855 = vmatprep.mubr.msk.f32.mxu1 %vm1021_vm0, %v1020_v17 }
  0x98   :  { %v1016_v56 = vunpack.i.h.bf16 %v1014_v55  ;;  %v1015_v57 = vunpack.i.l.bf16 %v1014_v55  ;;  %789 = vmatmul.mubr.msk.f32.vlgmr.msra.gmra.mrb[0].mxu0 %vm86_vm2, %v788_v44  ;;  %911 = vmatprep.subr.bf16.mxu1 %v1018_v3 }
  0x99   :  { %v912_v58 = vpack.c.bf16 %v1011_v53, %v1006_v49  ;;  %903 = vmatpush1.bf16.msra.mxu0 %v902_v51  ;;  %v603_v60 = vsel %vm595_vm4, %v1010_v54, %v1011_v53  ;;  %683 = vmatprep.mubr.f32.mxu0 %v1020_v17 }
  0x9a   :  { %v602_v61 = vsel %vm595_vm4, %v1016_v56, %v1010_v54  ;;  %v600_v62 = vsel %vm595_vm4, %v1015_v57, %v1005_v50  ;;  %v904_v63 = vpack.c.bf16 %v603_v60, %v601_v59 }
  0x9b   :  { %v906_v4 = vpack.c.bf16 %v602_v61, %v600_v62  ;;  %913 = vmatpush3.bf16.msra.mxu1 %v912_v58 }
  0x9c   :  { %905 = vmatprep.subr.bf16.mxu0 %v904_v63 }
  0x9d   :  { %907 = vmatpush1.bf16.msra.mxu0 %v906_v4 }
  0x9e   :  { %856 = vmatmul.mubr.msk.f32.vlgmr.msra.gmra.mrb[6].mxu1 %vm86_vm2, %v791_v8 }
  0xa0   :  { %792 = vmatmul.mubr.msk.f32.vlgmr.msra.gmra.mrb[0].mxu0 %vm86_vm2, %v791_v8 }
  0xa7   :  { %v767_v20 = vpop.permute.xlu0 %766 }
 0x159   :  { %v227_v3 = vpop.f32.mrb[0].mxu1 }
 0x15a   :  { %v824_v11 = vpop.f32.mrb[1].mxu1 }
 0x161   :  { %v371_v17 = vpop.f32.mrb[2].mxu1 }
 0x162   :  { %v372_v12 = vadd.f32 %v371_v17, %v227_v3  ;;  %v835_v19 = vpop.f32.mrb[3].mxu1 }
 0x169   :  { %v562_v22 = vpop.f32.mrb[4].mxu1 }
 0x16a   :  { %v568_v26 = vadd.f32 %v562_v22, %v372_v12  ;;  %v846_v0 = vpop.f32.mrb[5].mxu1 }
 0x171   :  { %v756_v6 = vpop.f32.mrb[6].mxu1 }
 0x172   :  { %v762_v1 = vadd.f32 %v756_v6, %v568_v26  ;;  %v857_v7 = vpop.f32.mrb[7].mxu1 }
 0x173   :  { %v685_v18 = vpop.f32.mrb[0].mxu0 }
 0x174   :  { %v771_v27 = vadd.f32 %v767_v20, %v762_v1  ;;  %v769_v28 = vadd.f32 %v767_v20, %v685_v18  ;;  %v687_v2 = vpop.f32.mrb[1].mxu0 }
 0x175   :  { %v770_v5 = vadd.f32 %v767_v20, %v687_v2 }
 0x176   :  { %v774_v21 = vmax.f32 %v771_v27, 0.0  ;;  %v772_v29 = vmax.f32 %v769_v28, 0.0 }
 0x177   :  { %v773_v30 = vmax.f32 %v770_v5, 0.0 }
 0x178   :  { %775 = vst [vmem:[%s1226_s3] sm:$0xff] %v772_v29  ;;  %778 = vst.msk [vmem:[%s1226_s3 + $0x10] sm:$0xff] %vm777_vm5, %v774_v21 }
 0x179   :  { %776 = vst [vmem:[%s1226_s3 + $0x8] sm:$0xff] %v773_v30 }

// kernel: _lambda_.8
= control target key start
LH: loop header
LB: loop body
LE: loop exit
PB: predicated region body
PF: predicated region fallthrough
CT: control target
= control target key end

     0   :  { %v507_v3 = vmov 0.0|0.0   ;;  %vm508_vm0 = vmmov 0   ;;  %v509_v7 = vmov 0.0   ;;  %s510_s20 = smov 127   ;;  %s511_s21 = smov 121   ;;  %vm37_vm1 = vcmask 261120   ;;  %s584_s0 = inlined_call_operand.vmem [shape: f32[32,106], index: 0, kind: input, shape index: {}]   ;;  %s585_s1 = inlined_call_operand.vmem [shape: f32[4,8,32], index: 1, kind: input, shape index: {}]   ;;  %s586_s2 = inlined_call_operand.vmem [shape: f32[8,1], index: 2, kind: input, shape index: {}]   ;;  %s587_s3 = inlined_call_operand.vmem [shape: f32[8,98], index: 3, kind: output, shape index: {}]  }
   0x1   :  { %v15_v0 = vld [vmem:[%s584_s0] sm:$0xff]  ;;  %v16_v1 = vld [vmem:[%s584_s0 + $0x8] sm:$0xff]  ;;  %v17_v2 = vld [vmem:[%s584_s0 + $0x10] sm:$0xff]  ;;  %445 = vmatprep.subr.bf16.mxu0 %v507_v3  ;;  %451 = vmatprep.subr.bf16.mxu1 %v507_v3  ;;  %v513_v11 = vmov 0   ;;  %vm368_vm2 = vcmask 801792  }
   0x2   :  { %v476_v4 = vpack.i.bf16 %v16_v1, %v15_v0  ;;  %v18_v5 = vld [vmem:[%s584_s0 + $0x18] sm:$0xff]  ;;  %v452_v6 = vpack.c.bf16 %v16_v1, %v15_v0  ;;  %409 = vmatprep.mubr.msk.f32.mxu0 %vm508_vm0, %v509_v7  ;;  %420 = vmatprep.mubr.msk.f32.mxu1 %vm508_vm0, %v509_v7  ;;  %s512_s0 = smov 120   ;;  %v14_v10 = vld [vmem:[%s585_s1] sm:$0xff]  ;;  %v374_v32 = vld [vmem:[%s585_s1 + $0x8] sm:$0xff] }
   0x3   :  { %v481_v8 = vpack.i.bf16 %v18_v5, %v17_v2  ;;  %v455_v9 = vpack.c.bf16 %v18_v5, %v17_v2  ;;  %506 = vset.pattern.permute.xlu0 %v513_v11  ;;  %v360_v12 = vld [vmem:[%s586_s2] sm:$0xff]  ;;  %v379_v38 = vld [vmem:[%s585_s1 + $0x18] sm:$0xff]  ;;  %v377_v39 = vld [vmem:[%s585_s1 + $0x10] sm:$0xff] }
   0x4   :  { %477 = vrot.lane.b32.xlu0 %v476_v4, %s510_s20  ;;  %487 = vrot.lane.b32.xlu1 %v476_v4, %s511_s21 }
   0x5   :  { %453 = vmatpush3.bf16.msra.mxu1 %v452_v6 }
   0x6   :  { %454 = vmatprep.subr.bf16.mxu1 %v507_v3 }
   0x8   :  { %482 = vrot.lane.b32.xlu0 %v481_v8, %s510_s20  ;;  %492 = vrot.lane.b32.xlu1 %v476_v4, %s512_s0 }
   0x9   :  { %456 = vmatpush3.bf16.msra.mxu1 %v455_v9 }
   0xa   :  { %463 = vmatprep.subr.bf16.mxu1 %v507_v3 }
   0xc   :  { %497 = vrot.lane.b32.xlu0 %v481_v8, %s511_s21  ;;  %502 = vrot.lane.b32.xlu1 %v481_v8, %s512_s0 }
   0xd   :  { %421 = vmatmul.mubr.msk.f32.vlgmr.msra.gmra.mrb[0].mxu1 %vm37_vm1, %v14_v10 }
   0xe   :  { %442 = vmatprep.mubr.msk.f32.mxu1 %vm508_vm0, %v509_v7 }
  0x10   :  { %363 = vperm.xlu0 %506, %v360_v12  }
  0x76   :  { %v478_v13 = vpop.permute.xlu0 %477  ;;  %v488_v14 = vpop.permute.xlu1 %487 }
  0x77   :  { %v480_v15 = vunpack.i.h.bf16 %v478_v13  ;;  %v479_v16 = vunpack.i.l.bf16 %v478_v13  ;;  %v490_v25 = vunpack.i.h.bf16 %v488_v14  ;;  %v489_v26 = vunpack.i.l.bf16 %v488_v14 }
  0x79   :  { %v446_v17 = vpack.c.bf16 %v480_v15, %v479_v16  ;;  %v458_v35 = vpack.c.bf16 %v490_v25, %v489_v26 }
  0x7a   :  { %v483_v18 = vpop.permute.xlu0 %482  ;;  %v493_v19 = vpop.permute.xlu1 %492 }
  0x7b   :  { %v485_v20 = vunpack.i.h.bf16 %v483_v18  ;;  %v484_v21 = vunpack.i.l.bf16 %v483_v18  ;;  %447 = vmatpush3.bf16.msra.mxu0 %v446_v17  ;;  %v495_v22 = vunpack.i.h.bf16 %v493_v19  ;;  %v494_v23 = vunpack.i.l.bf16 %v493_v19 }
  0x7c   :  { %448 = vmatprep.subr.bf16.mxu0 %v507_v3 }
  0x7d   :  { %v449_v24 = vpack.c.bf16 %v485_v20, %v484_v21  ;;  %v464_v27 = vpack.c.bf16 %v495_v22, %v494_v23 }
  0x7e   :  { %v498_v28 = vpop.permute.xlu0 %497  ;;  %v503_v29 = vpop.permute.xlu1 %502 }
  0x7f   :  { %450 = vmatpush3.bf16.msra.mxu0 %v449_v24  ;;  %v500_v30 = vunpack.i.h.bf16 %v498_v28  ;;  %v499_v31 = vunpack.i.l.bf16 %v498_v28  ;;  %v505_v33 = vunpack.i.h.bf16 %v503_v29  ;;  %v504_v34 = vunpack.i.l.bf16 %v503_v29  ;;  %465 = vmatpush3.bf16.msra.mxu1 %v464_v27 }
  0x80   :  { %457 = vmatprep.subr.bf16.mxu0 %v507_v3  ;;  %466 = vmatprep.subr.bf16.mxu1 %v507_v3 }
  0x81   :  { %v467_v36 = vpack.c.bf16 %v505_v33, %v504_v34  ;;  %v461_v37 = vpack.c.bf16 %v500_v30, %v499_v31 }
  0x82   :  { %410 = vmatmul.mubr.msk.f32.vlgmr.msra.gmra.mrb[0].mxu0 %vm37_vm1, %v374_v32 }
  0x83   :  { %459 = vmatpush3.bf16.msra.mxu0 %v458_v35  ;;  %468 = vmatpush3.bf16.msra.mxu1 %v467_v36 }
  0x84   :  { %460 = vmatprep.subr.bf16.mxu0 %v507_v3  ;;  %431 = vmatprep.mubr.msk.f32.mxu0 %vm508_vm0, %v509_v7 }
  0x86   :  { %443 = vmatmul.mubr.msk.f32.vlgmr.msra.gmra.mrb[2].mxu1 %vm37_vm1, %v379_v38 }
  0x87   :  { %462 = vmatpush3.bf16.msra.mxu0 %v461_v37 }
  0x8a   :  { %432 = vmatmul.mubr.msk.f32.vlgmr.msra.gmra.mrb[2].mxu0 %vm37_vm1, %v377_v39 }
  0x8f   :  { %v364_v50 = vpop.permute.xlu0 %363 }
  0xe0   :  { %v180_v40 = vpop.f32.mrb[0].mxu1 }
  0xe1   :  { %v422_v41 = vpop.f32.mrb[1].mxu1 }
 0x155   :  { %v107_v42 = vpop.f32.mrb[0].mxu0 }
 0x156   :  { %v411_v43 = vpop.f32.mrb[1].mxu0  ;;  %v181_v44 = vadd.f32 %v180_v40, %v107_v42 }
 0x159   :  { %v355_v45 = vpop.f32.mrb[2].mxu1 }
 0x15a   :  { %v444_v46 = vpop.f32.mrb[3].mxu1 }
 0x15d   :  { %v267_v47 = vpop.f32.mrb[2].mxu0 }
 0x15e   :  { %v271_v48 = vadd.f32 %v267_v47, %v181_v44  ;;  %v433_v49 = vpop.f32.mrb[3].mxu0 }
 0x160   :  { %v359_v51 = vadd.f32 %v355_v45, %v271_v48 }
 0x162   :  { %v366_v52 = vadd.f32 %v364_v50, %v359_v51 }
 0x164   :  { %v367_v53 = vmax.f32 %v366_v52, 0.0 }
 0x166   :  { %369 = vst.msk [vmem:[%s587_s3] sm:$0xff] %vm368_vm2, %v367_v53 }

// kernel: _lambda_.9
= control target key start
LH: loop header
LB: loop body
LE: loop exit
PB: predicated region body
PF: predicated region fallthrough
CT: control target
= control target key end

     0   :  { %vm34_vm0 = vcmask 64512   ;;  %s593_s16 = smov 120   ;;  %s594_s17 = smov 127   ;;  %v595_v4 = vmov 0   ;;  %vm31_vm1 = vcmask 1039360   ;;  %vm238_vm2 = vcmask 982016   ;;  %s711_s0 = inlined_call_operand.vmem [shape: f32[8,137], index: 0, kind: input, shape index: {}]   ;;  %s712_s1 = inlined_call_operand.vmem [shape: f32[4,32,8], index: 1, kind: input, shape index: {}]   ;;  %s713_s2 = inlined_call_operand.vmem [shape: f32[32,1], index: 2, kind: input, shape index: {}]   ;;  %s714_s3 = inlined_call_operand.vmem [shape: f32[32,128], index: 3, kind: output, shape index: {}]  }
   0x1   :  { %v18_v0 = vld [vmem:[%s711_s0] sm:$0xff]  ;;  %v24_v3 = vld [vmem:[%s711_s0 + $0x8] sm:$0xff]  ;;  %592 = vset.pattern.permute.xlu1 %v595_v4  ;;  %591 = vset.pattern.permute.xlu0 %v595_v4  ;;  %s596_s22 = smov 119   ;;  %v457_v7 = vld [vmem:[%s713_s2 + $0x10] sm:$0xff]  ;;  %vm351_vm3 = vcmask 973824  }
   0x2   :  { %v495_v1 = vld [vmem:[%s712_s1 + $0x20] sm:$0xff]  ;;  %234 = vrot.lane.b32.xlu1 %v18_v0, %s593_s16  ;;  %27 = vrot.lane.b32.xlu0 %v18_v0, %s594_s17  ;;  %v456_v5 = vld [vmem:[%s713_s2 + $0x8] sm:$0xff] }
   0x3   :  { %v507_v2 = vld [vmem:[%s712_s1 + $0x40] sm:$0xff]  ;;  %545 = vmatprep.mubr.msk.f32.mxu1 %vm34_vm0, %v495_v1  ;;  %v458_v8 = vld [vmem:[%s713_s2 + $0x18] sm:$0xff]  ;;  %v508_v15 = vld [vmem:[%s712_s1 + $0x48] sm:$0xff] }
   0x4   :  { %561 = vmatprep.mubr.msk.f32.mxu0 %vm34_vm0, %v507_v2  ;;  %v455_v6 = vld [vmem:[%s713_s2] sm:$0xff]  ;;  %v496_v16 = vld [vmem:[%s712_s1 + $0x28] sm:$0xff]  ;;  %v497_v17 = vld [vmem:[%s712_s1 + $0x30] sm:$0xff] }
   0x5   :  { %v509_v20 = vld [vmem:[%s712_s1 + $0x50] sm:$0xff]  ;;  %v498_v22 = vld [vmem:[%s712_s1 + $0x38] sm:$0xff]  ;;  %v14_v24 = vld [vmem:[%s712_s1] sm:$0xff] }
   0x6   :  { %236 = vrot.lane.b32.xlu1 %v24_v3, %s593_s16  ;;  %29 = vrot.lane.b32.xlu0 %v24_v3, %s594_s17  ;;  %v510_v23 = vld [vmem:[%s712_s1 + $0x58] sm:$0xff]  ;;  %v515_v25 = vld [vmem:[%s712_s1 + $0x60] sm:$0xff] }
   0x7   :  { %v15_v26 = vld [vmem:[%s712_s1 + $0x8] sm:$0xff]  ;;  %v16_v28 = vld [vmem:[%s712_s1 + $0x10] sm:$0xff]  ;;  %v17_v30 = vld [vmem:[%s712_s1 + $0x18] sm:$0xff] }
   0x8   :  { %v516_v27 = vld [vmem:[%s712_s1 + $0x68] sm:$0xff]  ;;  %v517_v29 = vld [vmem:[%s712_s1 + $0x70] sm:$0xff]  ;;  %v518_v31 = vld [vmem:[%s712_s1 + $0x78] sm:$0xff] }
   0xa   :  { %349 = vrot.lane.b32.xlu1 %v24_v3, %s596_s22  ;;  %347 = vrot.lane.b32.xlu0 %v18_v0, %s596_s22 }
   0xe   :  { %466 = vperm.xlu1 %592, %v456_v5   ;;  %461 = vperm.xlu0 %591, %v455_v6  }
  0x12   :  { %471 = vperm.xlu1 %592, %v457_v7   ;;  %476 = vperm.xlu0 %591, %v458_v8  }
  0x74   :  { %v235_v9 = vpop.permute.xlu1 %234  ;;  %v28_v10 = vpop.permute.xlu0 %27 }
  0x78   :  { %v237_v11 = vpop.permute.xlu1 %236  ;;  %v30_v12 = vpop.permute.xlu0 %29 }
  0x79   :  { %v32_v13 = vsel %vm31_vm1, %v28_v10, %v30_v12  ;;  %v239_v14 = vsel %vm238_vm2, %v235_v9, %v237_v11 }
  0x7a   :  { %543 = vmatprep.subr.mxu1 %v32_v13  ;;  %559 = vmatprep.subr.mxu0 %v239_v14 }
  0x7b   :  { %544 = vmatpush3.msra.mxu1 %v32_v13  ;;  %560 = vmatpush3.msra.mxu0 %v239_v14 }
  0x7c   :  { %562 = vmatmul.mubr.msk.f32.vlgmr.msra.gmra.mrb[0].mxu0 %vm34_vm0, %v508_v15  ;;  %v350_v18 = vpop.permute.xlu1 %349  ;;  %546 = vmatmul.mubr.msk.f32.vlgmr.msra.gmra.mrb[0].mxu1 %vm34_vm0, %v496_v16  ;;  %v348_v19 = vpop.permute.xlu0 %347 }
  0x7d   :  { %551 = vmatprep.subr.mxu1 %v18_v0  ;;  %v352_v21 = vsel %vm351_vm3, %v348_v19, %v350_v18  ;;  %548 = vmatprep.mubr.msk.f32.mxu1 %vm34_vm0, %v497_v17 }
  0x7e   :  { %567 = vmatprep.subr.mxu0 %v352_v21  ;;  %552 = vmatpush3.msra.mxu1 %v18_v0 }
  0x7f   :  { %564 = vmatprep.mubr.msk.f32.mxu0 %vm34_vm0, %v509_v20  ;;  %568 = vmatpush3.msra.mxu0 %v352_v21 }
  0x80   :  { %549 = vmatmul.mubr.msk.f32.gmra.mrb[2].mxu1 %vm34_vm0, %v498_v22  ;;  %565 = vmatmul.mubr.msk.f32.gmra.mrb[2].mxu0 %vm34_vm0, %v510_v23 }
  0x81   :  { %553 = vmatprep.mubr.msk.f32.mxu1 %vm34_vm0, %v14_v24  ;;  %569 = vmatprep.mubr.msk.f32.mxu0 %vm34_vm0, %v515_v25 }
  0x84   :  { %554 = vmatmul.mubr.msk.f32.vlgmr.msra.gmra.mrb[0].mxu1 %vm34_vm0, %v15_v26  ;;  %570 = vmatmul.mubr.msk.f32.vlgmr.msra.gmra.mrb[0].mxu0 %vm34_vm0, %v516_v27 }
  0x85   :  { %556 = vmatprep.mubr.msk.f32.mxu1 %vm34_vm0, %v16_v28  ;;  %572 = vmatprep.mubr.msk.f32.mxu0 %vm34_vm0, %v517_v29 }
  0x88   :  { %557 = vmatmul.mubr.msk.f32.gmra.mrb[2].mxu1 %vm34_vm0, %v17_v30  ;;  %573 = vmatmul.mubr.msk.f32.gmra.mrb[2].mxu0 %vm34_vm0, %v518_v31 }
  0x8d   :  { %v467_v32 = vpop.permute.xlu1 %466  ;;  %v462_v33 = vpop.permute.xlu0 %461 }
  0x91   :  { %v477_v50 = vpop.permute.xlu0 %476  ;;  %v472_v51 = vpop.permute.xlu1 %471 }
 0x157   :  { %v555_v34 = vpop.f32.mrb[0].mxu1  ;;  %v571_v35 = vpop.f32.mrb[0].mxu0 }
 0x158   :  { %v575_v36 = vadd.f32 %v571_v35, %v555_v34  ;;  %v210_v37 = vpop.f32.mrb[1].mxu1  ;;  %v432_v38 = vpop.f32.mrb[1].mxu0 }
 0x159   :  { %v576_v39 = vadd.f32 %v432_v38, %v210_v37 }
 0x15a   :  { %v480_v40 = vadd.f32 %v575_v36, %v467_v32 }
 0x15b   :  { %v479_v41 = vadd.f32 %v576_v39, %v462_v33  ;;  %v558_v42 = vpop.f32.mrb[2].mxu1  ;;  %v574_v43 = vpop.f32.mrb[2].mxu0 }
 0x15c   :  { %v484_v44 = vmax.f32 %v480_v40, 0.0  ;;  %v577_v45 = vadd.f32 %v574_v43, %v558_v42  ;;  %v220_v46 = vpop.f32.mrb[3].mxu1  ;;  %v442_v47 = vpop.f32.mrb[3].mxu0 }
 0x15d   :  { %v483_v48 = vmax.f32 %v479_v41, 0.0  ;;  %v578_v49 = vadd.f32 %v442_v47, %v220_v46 }
 0x15e   :  { %488 = vst [vmem:[%s714_s3 + $0x8] sm:$0xff] %v484_v44  ;;  %v482_v52 = vadd.f32 %v577_v45, %v477_v50 }
 0x15f   :  { %487 = vst [vmem:[%s714_s3] sm:$0xff] %v483_v48  ;;  %v481_v53 = vadd.f32 %v578_v49, %v472_v51 }
 0x160   :  { %v486_v54 = vmax.f32 %v482_v52, 0.0 }
 0x161   :  { %v485_v55 = vmax.f32 %v481_v53, 0.0 }
 0x162   :  { %490 = vst [vmem:[%s714_s3 + $0x18] sm:$0xff] %v486_v54 }
 0x163   :  { %489 = vst [vmem:[%s714_s3 + $0x10] sm:$0xff] %v485_v55 }

// kernel: _lambda_.10
= control target key start
LH: loop header
LB: loop body
LE: loop exit
PB: predicated region body
PF: predicated region fallthrough
CT: control target
= control target key end

     0   :  { %v1048_v2 = vmov 0.0   ;;  %s1049_s16 = smov 127   ;;  %vm41_vm0 = vcmask 64512   ;;  %s1050_s21 = smov 115   ;;  %v1052_v8 = vmov 0   ;;  %vm35_vm1 = vcmask 1039360   ;;  %s1251_s0 = inlined_call_operand.vmem [shape: f32[8,378], index: 0, kind: input, shape index: {}]   ;;  %s1252_s1 = inlined_call_operand.vmem [shape: f32[4,32,8], index: 1, kind: input, shape index: {}]   ;;  %s1253_s2 = inlined_call_operand.vmem [shape: f32[32,1], index: 2, kind: input, shape index: {}]   ;;  %s1254_s3 = inlined_call_operand.vmem [shape: f32[32,364], index: 3, kind: output, shape index: {}]  }
   0x1   :  { %v19_v0 = vld [vmem:[%s1251_s0 + $0x8] sm:$0xff]  ;;  %v18_v1 = vld [vmem:[%s1251_s0] sm:$0xff]  ;;  %304 = vmatprep.mubr.f32.mxu0 %v1048_v2  ;;  %118 = vmatprep.mubr.f32.mxu1 %v1048_v2  ;;  %v1089_v4 = vld [vmem:[%s1251_s0 + $0x10] sm:$0xff]  ;;  %s1051_s25 = smov 114   ;;  %vm425_vm2 = vcmask 941056   ;;  %vm640_vm3 = vcmask 932864  }
   0x2   :  { %31 = vrot.lane.b32.xlu0 %v19_v0, %s1049_s16  ;;  %29 = vrot.lane.b32.xlu1 %v18_v1, %s1049_s16  ;;  %v1084_v3 = vld [vmem:[%s1252_s1] sm:$0xff]  ;;  %v1097_v5 = vld [vmem:[%s1252_s1 + $0x8] sm:$0xff]  ;;  %vm894_vm4 = vcmask 883712  }
   0x3   :  { %240 = vmatprep.subr.mxu0 %v19_v0  ;;  %v1106_v6 = vld [vmem:[%s1252_s1 + $0x10] sm:$0xff]  ;;  %v1115_v7 = vld [vmem:[%s1252_s1 + $0x18] sm:$0xff]  ;;  %1046 = vset.pattern.permute.xlu1 %v1052_v8  ;;  %v844_v9 = vld [vmem:[%s1253_s2] sm:$0xff] }
   0x4   :  { %241 = vmatpush1.msra.mxu0 %v18_v1  ;;  %1047 = vset.pattern.permute.xlu0 %v1052_v8  ;;  %v845_v10 = vld [vmem:[%s1253_s2 + $0x8] sm:$0xff]  ;;  %v846_v11 = vld [vmem:[%s1253_s2 + $0x10] sm:$0xff]  ;;  %v847_v12 = vld [vmem:[%s1253_s2 + $0x18] sm:$0xff] }
   0x5   :  { %921 = vmatmul.mubr.msk.f32.vlgmr.msra.gmra.mrb[0].mxu0 %vm41_vm0, %v1084_v3  ;;  %v909_v18 = vld [vmem:[%s1252_s1 + $0x20] sm:$0xff]  ;;  %v910_v24 = vld [vmem:[%s1252_s1 + $0x28] sm:$0xff]  ;;  %v911_v28 = vld [vmem:[%s1252_s1 + $0x30] sm:$0xff] }
   0x6   :  { %33 = vrot.lane.b32.xlu0 %v1089_v4, %s1049_s16  ;;  %421 = vrot.lane.b32.xlu1 %v19_v0, %s1050_s21  ;;  %v929_v25 = vld [vmem:[%s1252_s1 + $0x40] sm:$0xff]  ;;  %v930_v29 = vld [vmem:[%s1252_s1 + $0x48] sm:$0xff] }
   0x7   :  { %310 = vmatprep.mubr.f32.mxu0 %v1048_v2  ;;  %v912_v32 = vld [vmem:[%s1252_s1 + $0x38] sm:$0xff]  ;;  %v931_v33 = vld [vmem:[%s1252_s1 + $0x50] sm:$0xff]  ;;  %v941_v36 = vld [vmem:[%s1252_s1 + $0x60] sm:$0xff] }
   0x8   :  { %v932_v35 = vld [vmem:[%s1252_s1 + $0x58] sm:$0xff]  ;;  %v942_v37 = vld [vmem:[%s1252_s1 + $0x68] sm:$0xff]  ;;  %v943_v38 = vld [vmem:[%s1252_s1 + $0x70] sm:$0xff] }
   0x9   :  { %922 = vmatmul.mubr.msk.f32.gmra.mrb[2].mxu0 %vm41_vm0, %v1097_v5  ;;  %v944_v39 = vld [vmem:[%s1252_s1 + $0x78] sm:$0xff] }
   0xa   :  { %423 = vrot.lane.b32.xlu0 %v1089_v4, %s1050_s21  ;;  %419 = vrot.lane.b32.xlu1 %v18_v1, %s1050_s21 }
   0xb   :  { %316 = vmatprep.mubr.f32.mxu0 %v1048_v2 }
   0xd   :  { %923 = vmatmul.mubr.msk.f32.gmra.mrb[4].mxu0 %vm41_vm0, %v1106_v6 }
   0xe   :  { %636 = vrot.lane.b32.xlu0 %v19_v0, %s1051_s25  ;;  %638 = vrot.lane.b32.xlu1 %v1089_v4, %s1051_s25 }
   0xf   :  { %322 = vmatprep.mubr.f32.mxu0 %v1048_v2 }
  0x11   :  { %924 = vmatmul.mubr.msk.f32.gmra.mrb[6].mxu0 %vm41_vm0, %v1115_v7 }
  0x12   :  { %634 = vrot.lane.b32.xlu0 %v18_v1, %s1051_s25  ;;  %507 = vmatprep.mubr.f32.mxu0 %v1048_v2 }
  0x13   :  { %850 = vperm.xlu1 %1046, %v844_v9  }
  0x16   :  { %855 = vperm.xlu0 %1047, %v845_v10  }
  0x17   :  { %860 = vperm.xlu1 %1046, %v846_v11  }
  0x1b   :  { %865 = vperm.xlu1 %1046, %v847_v12  }
  0x74   :  { %v32_v13 = vpop.permute.xlu0 %31  ;;  %v30_v14 = vpop.permute.xlu1 %29 }
  0x75   :  { %v36_v19 = vsel %vm35_vm1, %v30_v14, %v32_v13 }
  0x78   :  { %v34_v15 = vpop.permute.xlu0 %33  ;;  %v422_v16 = vpop.permute.xlu1 %421 }
  0x79   :  { %v37_v17 = vsel %vm35_vm1, %v32_v13, %v34_v15 }
  0x7a   :  { %54 = vmatprep.subr.mxu1 %v37_v17 }
  0x7b   :  { %55 = vmatpush1.msra.mxu1 %v36_v19 }
  0x7c   :  { %v424_v20 = vpop.permute.xlu0 %423  ;;  %913 = vmatmul.mubr.msk.f32.vlgmr.msra.gmra.mrb[0].mxu1 %vm41_vm0, %v909_v18  ;;  %973 = vmatprep.subr.mxu1 %v34_v15  ;;  %v420_v21 = vpop.permute.xlu1 %419 }
  0x7d   :  { %v426_v22 = vsel %vm425_vm2, %v420_v21, %v422_v16  ;;  %974 = vmatpush3.msra.mxu1 %v34_v15  ;;  %v427_v23 = vsel %vm425_vm2, %v422_v16, %v424_v20  ;;  %124 = vmatprep.mubr.f32.mxu1 %v1048_v2 }
  0x7e   :  { %443 = vmatprep.subr.mxu0 %v427_v23  ;;  %981 = vmatprep.subr.mxu1 %v1089_v4 }
  0x7f   :  { %444 = vmatpush1.msra.mxu0 %v426_v22 }
  0x80   :  { %914 = vmatmul.mubr.msk.f32.gmra.mrb[2].mxu1 %vm41_vm0, %v910_v24  ;;  %933 = vmatmul.mubr.msk.f32.vlgmr.msra.gmra.mrb[0].mxu0 %vm41_vm0, %v929_v25  ;;  %v637_v26 = vpop.permute.xlu0 %636  ;;  %v639_v27 = vpop.permute.xlu1 %638 }
  0x81   :  { %130 = vmatprep.mubr.f32.mxu1 %v1048_v2  ;;  %513 = vmatprep.mubr.f32.mxu0 %v1048_v2  ;;  %v642_v30 = vsel %vm640_vm3, %v637_v26, %v639_v27 }
  0x82   :  { %658 = vmatprep.subr.mxu0 %v642_v30 }
  0x84   :  { %915 = vmatmul.mubr.msk.f32.gmra.mrb[4].mxu1 %vm41_vm0, %v911_v28  ;;  %934 = vmatmul.mubr.msk.f32.gmra.mrb[2].mxu0 %vm41_vm0, %v930_v29  ;;  %v635_v31 = vpop.permute.xlu0 %634 }
  0x85   :  { %136 = vmatprep.mubr.f32.mxu1 %v1048_v2  ;;  %519 = vmatprep.mubr.f32.mxu0 %v1048_v2  ;;  %v641_v34 = vsel %vm640_vm3, %v635_v31, %v637_v26 }
  0x86   :  { %659 = vmatpush1.msra.mxu0 %v641_v34 }
  0x88   :  { %916 = vmatmul.mubr.msk.f32.gmra.mrb[6].mxu1 %vm41_vm0, %v912_v32  ;;  %935 = vmatmul.mubr.msk.f32.gmra.mrb[4].mxu0 %vm41_vm0, %v931_v33 }
  0x89   :  { %975 = vmatprep.mubr.msk.f32.mxu1 %vm41_vm0, %v909_v18  ;;  %525 = vmatprep.mubr.f32.mxu0 %v1048_v2 }
  0x8c   :  { %976 = vmatmul.mubr.msk.f32.vlgmr.msra.gmra.mrb[8].mxu1 %vm41_vm0, %v910_v24  ;;  %936 = vmatmul.mubr.msk.f32.gmra.mrb[6].mxu0 %vm41_vm0, %v932_v35 }
  0x8d   :  { %982 = vmatpush3.msra.mxu1 %v1089_v4  ;;  %978 = vmatprep.mubr.msk.f32.mxu1 %vm41_vm0, %v911_v28 }
  0x8e   :  { %989 = vmatprep.subr.mxu1 %v424_v20  ;;  %722 = vmatprep.mubr.f32.mxu0 %v1048_v2 }
  0x90   :  { %979 = vmatmul.mubr.msk.f32.gmra.mrb[10].mxu1 %vm41_vm0, %v912_v32  ;;  %945 = vmatmul.mubr.msk.f32.vlgmr.msra.gmra.mrb[0].mxu0 %vm41_vm0, %v941_v36 }
  0x91   :  { %983 = vmatprep.mubr.msk.f32.mxu1 %vm41_vm0, %v1084_v3  ;;  %728 = vmatprep.mubr.f32.mxu0 %v1048_v2 }
  0x92   :  { %v851_v49 = vpop.permute.xlu1 %850 }
  0x94   :  { %984 = vmatmul.mubr.msk.f32.vlgmr.msra.gmra.mrb[8].mxu1 %vm41_vm0, %v1097_v5  ;;  %946 = vmatmul.mubr.msk.f32.gmra.mrb[2].mxu0 %vm41_vm0, %v942_v37 }
  0x95   :  { %990 = vmatpush3.msra.mxu1 %v424_v20  ;;  %986 = vmatprep.mubr.msk.f32.mxu1 %vm41_vm0, %v1106_v6  ;;  %v856_v56 = vpop.permute.xlu0 %855 }
  0x96   :  { %997 = vmatprep.subr.mxu1 %v639_v27  ;;  %734 = vmatprep.mubr.f32.mxu0 %v1048_v2  ;;  %v861_v62 = vpop.permute.xlu1 %860 }
  0x98   :  { %987 = vmatmul.mubr.msk.f32.gmra.mrb[10].mxu1 %vm41_vm0, %v1115_v7  ;;  %947 = vmatmul.mubr.msk.f32.gmra.mrb[4].mxu0 %vm41_vm0, %v943_v38 }
  0x99   :  { %991 = vmatprep.mubr.msk.f32.mxu1 %vm41_vm0, %v929_v25  ;;  %740 = vmatprep.mubr.f32.mxu0 %v1048_v2 }
  0x9a   :  { %v866_v10 = vpop.permute.xlu1 %865 }
  0x9c   :  { %992 = vmatmul.mubr.msk.f32.vlgmr.msra.gmra.mrb[8].mxu1 %vm41_vm0, %v930_v29  ;;  %948 = vmatmul.mubr.msk.f32.gmra.mrb[6].mxu0 %vm41_vm0, %v944_v39 }
  0x9d   :  { %998 = vmatpush3.msra.mxu1 %v639_v27  ;;  %994 = vmatprep.mubr.msk.f32.mxu1 %vm41_vm0, %v931_v33 }
  0xa0   :  { %995 = vmatmul.mubr.msk.f32.gmra.mrb[10].mxu1 %vm41_vm0, %v932_v35 }
  0xa1   :  { %999 = vmatprep.mubr.msk.f32.mxu1 %vm41_vm0, %v941_v36 }
  0xa4   :  { %1000 = vmatmul.mubr.msk.f32.vlgmr.msra.gmra.mrb[8].mxu1 %vm41_vm0, %v942_v37 }
  0xa5   :  { %1002 = vmatprep.mubr.msk.f32.mxu1 %vm41_vm0, %v943_v38 }
  0xa8   :  { %1003 = vmatmul.mubr.msk.f32.gmra.mrb[10].mxu1 %vm41_vm0, %v944_v39 }
 0x14f   :  { %v120_v40 = vpop.f32.mrb[0].mxu1 }
 0x150   :  { %v122_v41 = vpop.f32.mrb[1].mxu1 }
 0x153   :  { %v126_v42 = vpop.f32.mrb[2].mxu1 }
 0x154   :  { %v128_v43 = vpop.f32.mrb[3].mxu1 }
 0x157   :  { %v132_v44 = vpop.f32.mrb[4].mxu1 }
 0x158   :  { %v134_v45 = vpop.f32.mrb[5].mxu1 }
 0x15b   :  { %v138_v46 = vpop.f32.mrb[6].mxu1 }
 0x15c   :  { %v140_v47 = vpop.f32.mrb[7].mxu1 }
 0x163   :  { %v724_v48 = vpop.f32.mrb[0].mxu0 }
 0x164   :  { %v1005_v50 = vadd.f32 %v724_v48, %v120_v40  ;;  %v726_v51 = vpop.f32.mrb[1].mxu0 }
 0x165   :  { %v1006_v52 = vadd.f32 %v726_v51, %v122_v41 }
 0x166   :  { %v868_v53 = vadd.f32 %v1005_v50, %v851_v49 }
 0x167   :  { %v869_v54 = vadd.f32 %v1006_v52, %v851_v49  ;;  %v730_v55 = vpop.f32.mrb[2].mxu0 }
 0x168   :  { %v880_v57 = vmax.f32 %v868_v53, 0.0  ;;  %v1007_v58 = vadd.f32 %v730_v55, %v126_v42  ;;  %v732_v59 = vpop.f32.mrb[3].mxu0 }
 0x169   :  { %v881_v60 = vmax.f32 %v869_v54, 0.0  ;;  %v1008_v61 = vadd.f32 %v732_v59, %v128_v43 }
 0x16a   :  { %892 = vst [vmem:[%s1254_s3] sm:$0xff] %v880_v57  ;;  %v871_v63 = vadd.f32 %v1007_v58, %v856_v56 }
 0x16b   :  { %893 = vst [vmem:[%s1254_s3 + $0x8] sm:$0xff] %v881_v60  ;;  %v872_v0 = vadd.f32 %v1008_v61, %v856_v56  ;;  %v736_v1 = vpop.f32.mrb[4].mxu0 }
 0x16c   :  { %v883_v2 = vmax.f32 %v871_v63, 0.0  ;;  %v1009_v3 = vadd.f32 %v736_v1, %v132_v44  ;;  %v738_v4 = vpop.f32.mrb[5].mxu0 }
 0x16d   :  { %v884_v5 = vmax.f32 %v872_v0, 0.0  ;;  %v1010_v6 = vadd.f32 %v738_v4, %v134_v45 }
 0x16e   :  { %896 = vst [vmem:[%s1254_s3 + $0x18] sm:$0xff] %v883_v2  ;;  %v874_v7 = vadd.f32 %v1009_v3, %v861_v62 }
 0x16f   :  { %897 = vst [vmem:[%s1254_s3 + $0x20] sm:$0xff] %v884_v5  ;;  %v875_v8 = vadd.f32 %v1010_v6, %v861_v62  ;;  %v742_v9 = vpop.f32.mrb[6].mxu0 }
 0x170   :  { %v886_v11 = vmax.f32 %v874_v7, 0.0  ;;  %v1011_v12 = vadd.f32 %v742_v9, %v138_v46  ;;  %v744_v13 = vpop.f32.mrb[7].mxu0 }
 0x171   :  { %v887_v14 = vmax.f32 %v875_v8, 0.0  ;;  %v1012_v15 = vadd.f32 %v744_v13, %v140_v47 }
 0x172   :  { %899 = vst [vmem:[%s1254_s3 + $0x30] sm:$0xff] %v886_v11  ;;  %v877_v16 = vadd.f32 %v1011_v12, %v866_v10 }
 0x173   :  { %900 = vst [vmem:[%s1254_s3 + $0x38] sm:$0xff] %v887_v14  ;;  %v878_v17 = vadd.f32 %v1012_v15, %v866_v10 }
 0x174   :  { %v889_v18 = vmax.f32 %v877_v16, 0.0 }
 0x175   :  { %v890_v19 = vmax.f32 %v878_v17, 0.0 }
 0x176   :  { %902 = vst [vmem:[%s1254_s3 + $0x48] sm:$0xff] %v889_v18 }
 0x177   :  { %903 = vst [vmem:[%s1254_s3 + $0x50] sm:$0xff] %v890_v19  ;;  %v1001_v20 = vpop.f32.mrb[8].mxu1 }
 0x178   :  { %v873_v21 = vadd.f32 %v1001_v20, %v856_v56  ;;  %v813_v22 = vpop.f32.mrb[9].mxu1 }
 0x179   :  { %v870_v23 = vadd.f32 %v851_v49, %v813_v22 }
 0x17a   :  { %v885_v24 = vmax.f32 %v873_v21, 0.0 }
 0x17b   :  { %v882_v25 = vmax.f32 %v870_v23, 0.0  ;;  %v1004_v26 = vpop.f32.mrb[10].mxu1 }
 0x17c   :  { %898 = vst.msk [vmem:[%s1254_s3 + $0x28] sm:$0xff] %vm894_vm4, %v885_v24  ;;  %v879_v27 = vadd.f32 %v1004_v26, %v866_v10  ;;  %v823_v28 = vpop.f32.mrb[11].mxu1 }
 0x17d   :  { %895 = vst.msk [vmem:[%s1254_s3 + $0x10] sm:$0xff] %vm894_vm4, %v882_v25  ;;  %v876_v29 = vadd.f32 %v861_v62, %v823_v28 }
 0x17e   :  { %v891_v30 = vmax.f32 %v879_v27, 0.0 }
 0x17f   :  { %v888_v31 = vmax.f32 %v876_v29, 0.0 }
 0x180   :  { %904 = vst.msk [vmem:[%s1254_s3 + $0x58] sm:$0xff] %vm894_vm4, %v891_v30 }
 0x181   :  { %901 = vst.msk [vmem:[%s1254_s3 + $0x40] sm:$0xff] %vm894_vm4, %v888_v31 }

// kernel: _lambda_.11
= control target key start
LH: loop header
LB: loop body
LE: loop exit
PB: predicated region body
PF: predicated region fallthrough
CT: control target
= control target key end

     0   :  { %s4638_s16 = smov 127   ;;  %v4639_v4 = vmov 0.0   ;;  %s4640_s8 = smov 126   ;;  %vm61_vm0 = vcmask 1039360   ;;  %vm83_vm1 = vcmask 64512   ;;  %vm4645_vm2 = vmmov 0   ;;  %s5149_s0 = inlined_call_operand.vmem [shape: f32[8,1452], index: 0, kind: input, shape index: {}]   ;;  %s5150_s1 = inlined_call_operand.vmem [shape: f32[9,8,8], index: 1, kind: input, shape index: {}]   ;;  %s5151_s2 = inlined_call_operand.vmem [shape: f32[8,1], index: 2, kind: input, shape index: {}]   ;;  %s5152_s3 = inlined_call_operand.vmem [shape: f32[8,1400], index: 3, kind: output, shape index: {}]  }
   0x1   :  { %v4672_v0 = vld [vmem:[%s5149_s0 + $0x18] sm:$0xff]  ;;  %v4677_v1 = vld [vmem:[%s5149_s0 + $0x8] sm:$0xff]  ;;  %v4684_v2 = vld [vmem:[%s5149_s0 + $0x20] sm:$0xff]  ;;  %222 = vmatprep.mubr.f32.mxu1 %v4639_v4  ;;  %151 = vmatprep.mubr.f32.mxu0 %v4639_v4  ;;  %s4641_s9 = smov 103   ;;  %s4642_s12 = smov 102   ;;  %vm964_vm3 = vcmask 1031168  }
   0x2   :  { %45 = vrot.lane.b32.xlu0 %v4672_v0, %s4638_s16  ;;  %41 = vrot.lane.b32.xlu1 %v4677_v1, %s4638_s16  ;;  %v4689_v3 = vld [vmem:[%s5149_s0 + $0x10] sm:$0xff]  ;;  %v4698_v5 = vld [vmem:[%s5149_s0 + $0x38] sm:$0xff]  ;;  %s4644_s13 = smov 78   ;;  %vm1475_vm4 = vcmask 842752   ;;  %s4647_s21 = smov 76   ;;  %vm1963_vm5 = vcmask 834560  }
   0x3   :  { %v4703_v6 = vld [vmem:[%s5149_s0] sm:$0xff]  ;;  %v4710_v7 = vld [vmem:[%s5149_s0 + $0x28] sm:$0xff]  ;;  %v4727_v10 = vld [vmem:[%s5149_s0 + $0x30] sm:$0xff]  ;;  %vm2451_vm6 = vcmask 826368   ;;  %vm2939_vm7 = vcmask 637952   ;;  %vm3427_vm8 = vcmask 629760  }
   0x4   :  { %v4715_v8 = vld [vmem:[%s5149_s0 + $0x40] sm:$0xff]  ;;  %v4722_v9 = vld [vmem:[%s5149_s0 + $0x48] sm:$0xff]  ;;  %v4734_v11 = vld [vmem:[%s5149_s0 + $0x50] sm:$0xff]  ;;  %vm3915_vm9 = vcmask 621568   ;;  %vm4415_vm10 = vcmask 982016  }
   0x5   :  { %v4761_v12 = vld [vmem:[%s5149_s0 + $0x58] sm:$0xff]  ;;  %s4643_s0 = smov 101   ;;  %v4421_v20 = vld [vmem:[%s5150_s1 + $0x8] sm:$0xff]  ;;  %v14_v38 = vld [vmem:[%s5150_s1] sm:$0xff] }
   0x6   :  { %47 = vrot.lane.b32.xlu0 %v4684_v2, %s4638_s16  ;;  %43 = vrot.lane.b32.xlu1 %v4689_v3, %s4638_s16  ;;  %v4434_v53 = vld [vmem:[%s5150_s1 + $0x10] sm:$0xff] }
   0xa   :  { %53 = vrot.lane.b32.xlu1 %v4698_v5, %s4638_s16  ;;  %39 = vrot.lane.b32.xlu0 %v4703_v6, %s4638_s16 }
   0xe   :  { %49 = vrot.lane.b32.xlu1 %v4710_v7, %s4638_s16  ;;  %55 = vrot.lane.b32.xlu0 %v4715_v8, %s4638_s16 }
  0x12   :  { %57 = vrot.lane.b32.xlu1 %v4722_v9, %s4638_s16  ;;  %51 = vrot.lane.b32.xlu0 %v4727_v10, %s4638_s16 }
  0x16   :  { %948 = vrot.lane.b32.xlu1 %v4672_v0, %s4640_s8  ;;  %59 = vrot.lane.b32.xlu0 %v4734_v11, %s4638_s16  ;;  %s4646_s16 = smov 77  }
  0x1a   :  { %944 = vrot.lane.b32.xlu1 %v4677_v1, %s4640_s8  ;;  %950 = vrot.lane.b32.xlu0 %v4684_v2, %s4640_s8 }
  0x1e   :  { %942 = vrot.lane.b32.xlu1 %v4703_v6, %s4640_s8  ;;  %946 = vrot.lane.b32.xlu0 %v4689_v3, %s4640_s8 }
  0x22   :  { %958 = vrot.lane.b32.xlu1 %v4715_v8, %s4640_s8  ;;  %956 = vrot.lane.b32.xlu0 %v4698_v5, %s4640_s8 }
  0x26   :  { %954 = vrot.lane.b32.xlu1 %v4727_v10, %s4640_s8  ;;  %952 = vrot.lane.b32.xlu0 %v4710_v7, %s4640_s8 }
  0x2a   :  { %962 = vrot.lane.b32.xlu1 %v4734_v11, %s4640_s8  ;;  %960 = vrot.lane.b32.xlu0 %v4722_v9, %s4640_s8 }
  0x2e   :  { %1459 = vrot.lane.b32.xlu1 %v4684_v2, %s4641_s9  ;;  %1457 = vrot.lane.b32.xlu0 %v4672_v0, %s4641_s9 }
  0x32   :  { %1455 = vrot.lane.b32.xlu1 %v4689_v3, %s4641_s9  ;;  %1453 = vrot.lane.b32.xlu0 %v4677_v1, %s4641_s9 }
  0x36   :  { %1465 = vrot.lane.b32.xlu1 %v4698_v5, %s4641_s9  ;;  %1451 = vrot.lane.b32.xlu0 %v4703_v6, %s4641_s9 }
  0x3a   :  { %1461 = vrot.lane.b32.xlu1 %v4710_v7, %s4641_s9  ;;  %1467 = vrot.lane.b32.xlu0 %v4715_v8, %s4641_s9 }
  0x3e   :  { %1469 = vrot.lane.b32.xlu1 %v4722_v9, %s4641_s9  ;;  %1463 = vrot.lane.b32.xlu0 %v4727_v10, %s4641_s9 }
  0x42   :  { %1473 = vrot.lane.b32.xlu1 %v4761_v12, %s4641_s9  ;;  %1471 = vrot.lane.b32.xlu0 %v4734_v11, %s4641_s9 }
  0x46   :  { %1947 = vrot.lane.b32.xlu1 %v4684_v2, %s4642_s12  ;;  %1945 = vrot.lane.b32.xlu0 %v4672_v0, %s4642_s12 }
  0x4a   :  { %1943 = vrot.lane.b32.xlu1 %v4689_v3, %s4642_s12  ;;  %1941 = vrot.lane.b32.xlu0 %v4677_v1, %s4642_s12 }
  0x4e   :  { %1953 = vrot.lane.b32.xlu1 %v4698_v5, %s4642_s12  ;;  %1939 = vrot.lane.b32.xlu0 %v4703_v6, %s4642_s12 }
  0x52   :  { %1949 = vrot.lane.b32.xlu1 %v4710_v7, %s4642_s12  ;;  %1955 = vrot.lane.b32.xlu0 %v4715_v8, %s4642_s12 }
  0x56   :  { %1957 = vrot.lane.b32.xlu1 %v4722_v9, %s4642_s12  ;;  %1951 = vrot.lane.b32.xlu0 %v4727_v10, %s4642_s12 }
  0x5a   :  { %1961 = vrot.lane.b32.xlu1 %v4761_v12, %s4642_s12  ;;  %1959 = vrot.lane.b32.xlu0 %v4734_v11, %s4642_s12 }
  0x5e   :  { %2435 = vrot.lane.b32.xlu1 %v4684_v2, %s4643_s0  ;;  %2433 = vrot.lane.b32.xlu0 %v4672_v0, %s4643_s0 }
  0x62   :  { %2431 = vrot.lane.b32.xlu1 %v4689_v3, %s4643_s0  ;;  %2429 = vrot.lane.b32.xlu0 %v4677_v1, %s4643_s0 }
  0x66   :  { %2441 = vrot.lane.b32.xlu1 %v4698_v5, %s4643_s0  ;;  %2427 = vrot.lane.b32.xlu0 %v4703_v6, %s4643_s0 }
  0x6a   :  { %2437 = vrot.lane.b32.xlu1 %v4710_v7, %s4643_s0  ;;  %2443 = vrot.lane.b32.xlu0 %v4715_v8, %s4643_s0 }
  0x6e   :  { %2445 = vrot.lane.b32.xlu1 %v4722_v9, %s4643_s0  ;;  %2439 = vrot.lane.b32.xlu0 %v4727_v10, %s4643_s0 }
  0x72   :  { %2449 = vrot.lane.b32.xlu1 %v4761_v12, %s4643_s0  ;;  %2447 = vrot.lane.b32.xlu0 %v4734_v11, %s4643_s0 }
  0x74   :  { %v46_v13 = vpop.permute.xlu0 %45  ;;  %v42_v14 = vpop.permute.xlu1 %41 }
  0x76   :  { %2923 = vrot.lane.b32.xlu1 %v4684_v2, %s4644_s13  ;;  %2921 = vrot.lane.b32.xlu0 %v4672_v0, %s4644_s13 }
  0x78   :  { %v48_v15 = vpop.permute.xlu0 %47  ;;  %v44_v16 = vpop.permute.xlu1 %43 }
  0x79   :  { %v63_v17 = vsel %vm61_vm0, %v42_v14, %v44_v16  ;;  %v65_v18 = vsel %vm61_vm0, %v46_v13, %v48_v15  ;;  %v64_v19 = vsel %vm61_vm0, %v44_v16, %v46_v13 }
  0x7a   :  { %87 = vmatprep.subr.mxu0 %v63_v17  ;;  %158 = vmatprep.subr.mxu1 %v65_v18 }
  0x7b   :  { %2919 = vrot.lane.b32.xlu1 %v4689_v3, %s4644_s13  ;;  %2917 = vrot.lane.b32.xlu0 %v4677_v1, %s4644_s13 }
  0x7c   :  { %159 = vmatpush1.msra.mxu1 %v64_v19  ;;  %v54_v21 = vpop.permute.xlu1 %53  ;;  %v40_v22 = vpop.permute.xlu0 %39 }
  0x7d   :  { %v62_v23 = vsel %vm61_vm0, %v40_v22, %v42_v14  ;;  %4423 = vmatmul.mubr.msk.f32.vlgmr.msra.gmra.mrb[0].mxu1 %vm83_vm1, %v4421_v20 }
  0x7e   :  { %88 = vmatpush1.msra.mxu0 %v62_v23  ;;  %364 = vmatprep.mubr.f32.mxu1 %v4639_v4 }
  0x7f   :  { %2929 = vrot.lane.b32.xlu1 %v4698_v5, %s4644_s13  ;;  %2915 = vrot.lane.b32.xlu0 %v4703_v6, %s4644_s13 }
  0x80   :  { %v50_v24 = vpop.permute.xlu1 %49  ;;  %v56_v25 = vpop.permute.xlu0 %55  ;;  %4422 = vmatmul.mubr.msk.f32.vlgmr.msra.gmra.mrb[0].mxu0 %vm83_vm1, %v4421_v20 }
  0x81   :  { %v69_v26 = vsel %vm61_vm0, %v54_v21, %v56_v25  ;;  %293 = vmatprep.mubr.f32.mxu0 %v4639_v4  ;;  %v66_v31 = vsel %vm61_vm0, %v48_v15, %v50_v24 }
  0x82   :  { %300 = vmatprep.subr.mxu1 %v69_v26 }
  0x83   :  { %2925 = vrot.lane.b32.xlu1 %v4710_v7, %s4644_s13  ;;  %2931 = vrot.lane.b32.xlu0 %v4715_v8, %s4644_s13 }
  0x84   :  { %v58_v27 = vpop.permute.xlu1 %57  ;;  %v52_v28 = vpop.permute.xlu0 %51 }
  0x85   :  { %v68_v29 = vsel %vm61_vm0, %v52_v28, %v54_v21  ;;  %v67_v30 = vsel %vm61_vm0, %v50_v24, %v52_v28  ;;  %v70_v35 = vsel %vm61_vm0, %v56_v25, %v58_v27 }
  0x86   :  { %229 = vmatprep.subr.mxu0 %v67_v30  ;;  %301 = vmatpush1.msra.mxu1 %v68_v29 }
  0x87   :  { %2933 = vrot.lane.b32.xlu1 %v4722_v9, %s4644_s13  ;;  %2927 = vrot.lane.b32.xlu0 %v4727_v10, %s4644_s13 }
  0x88   :  { %230 = vmatpush1.msra.mxu0 %v66_v31  ;;  %4425 = vmatmul.mubr.msk.f32.vlgmr.msra.gmra.mrb[2].mxu1 %vm83_vm1, %v4421_v20  ;;  %v949_v32 = vpop.permute.xlu1 %948  ;;  %v60_v33 = vpop.permute.xlu0 %59 }
  0x89   :  { %4424 = vmatmul.mubr.msk.f32.vlgmr.msra.gmra.mrb[2].mxu0 %vm83_vm1, %v4421_v20  ;;  %4501 = vmatprep.subr.mxu1 %v4639_v4  ;;  %v71_v34 = vsel %vm61_vm0, %v58_v27, %v60_v33 }
  0x8a   :  { %4502 = vmatpush3.msra.mxu1 %v60_v33  ;;  %371 = vmatprep.subr.mxu0 %v71_v34 }
  0x8b   :  { %2937 = vrot.lane.b32.xlu1 %v4761_v12, %s4644_s13  ;;  %2935 = vrot.lane.b32.xlu0 %v4734_v11, %s4644_s13 }
  0x8c   :  { %4503 = vmatprep.mubr.msk.f32.mxu1 %vm4645_vm2, %v4639_v4  ;;  %372 = vmatpush1.msra.mxu0 %v70_v35  ;;  %v945_v36 = vpop.permute.xlu1 %944  ;;  %v4835_v37 = vpop.permute.xlu0 %950 }
  0x8d   :  { %435 = vmatprep.mubr.f32.mxu0 %v4639_v4  ;;  %4504 = vmatmul.mubr.msk.f32.vlgmr.msra.gmra.mrb[4].mxu1 %vm83_vm1, %v4421_v20  ;;  %v968_v45 = vsel %vm964_vm3, %v949_v32, %v4835_v37 }
  0x8e   :  { %4426 = vmatmul.mubr.msk.f32.vlgmr.msra.gmra.mrb[4].mxu0 %vm83_vm1, %v4421_v20  ;;  %586 = vmatprep.subr.mxu1 %v4672_v0  ;;  %v4441_v20 = vld [vmem:[%s5150_s1 + $0x18] sm:$0xff] }
  0x8f   :  { %3411 = vrot.lane.b32.xlu1 %v4684_v2, %s4646_s16  ;;  %3409 = vrot.lane.b32.xlu0 %v4672_v0, %s4646_s16 }
  0x90   :  { %515 = vmatprep.subr.mxu0 %v4677_v1  ;;  %587 = vmatpush1.msra.mxu1 %v4689_v3  ;;  %v943_v39 = vpop.permute.xlu1 %942  ;;  %v947_v40 = vpop.permute.xlu0 %946 }
  0x91   :  { %650 = vmatprep.mubr.f32.mxu1 %v4639_v4  ;;  %516 = vmatpush1.msra.mxu0 %v4703_v6  ;;  %v966_v46 = vsel %vm964_vm3, %v945_v36, %v947_v40  ;;  %v967_v49 = vsel %vm964_vm3, %v947_v40, %v949_v32  ;;  %v965_v50 = vsel %vm964_vm3, %v943_v39, %v945_v36 }
  0x92   :  { %579 = vmatprep.mubr.f32.mxu0 %v4639_v4  ;;  %4429 = vmatmul.mubr.msk.f32.vlgmr.msra.gmra.mrb[0].mxu1 %vm83_vm1, %v14_v38 }
  0x93   :  { %4428 = vmatmul.mubr.msk.f32.vlgmr.msra.gmra.mrb[0].mxu0 %vm83_vm1, %v14_v38  ;;  %728 = vmatprep.subr.mxu1 %v4698_v5 }
  0x94   :  { %657 = vmatprep.subr.mxu0 %v4710_v7  ;;  %729 = vmatpush1.msra.mxu1 %v4727_v10  ;;  %v959_v41 = vpop.permute.xlu1 %958  ;;  %v957_v42 = vpop.permute.xlu0 %956 }
  0x95   :  { %3407 = vrot.lane.b32.xlu1 %v4689_v3, %s4646_s16  ;;  %3405 = vrot.lane.b32.xlu0 %v4677_v1, %s4646_s16  ;;  %v972_v51 = vsel %vm964_vm3, %v957_v42, %v959_v41 }
  0x96   :  { %658 = vmatpush1.msra.mxu0 %v4684_v2  ;;  %792 = vmatprep.mubr.f32.mxu1 %v4639_v4 }
  0x97   :  { %4506 = vmatprep.subr.mxu1 %v4639_v4  ;;  %721 = vmatprep.mubr.f32.mxu0 %v4639_v4 }
  0x98   :  { %4431 = vmatmul.mubr.msk.f32.vlgmr.msra.gmra.mrb[2].mxu1 %vm83_vm1, %v14_v38  ;;  %799 = vmatprep.subr.mxu0 %v4722_v9  ;;  %v955_v43 = vpop.permute.xlu1 %954  ;;  %v953_v44 = vpop.permute.xlu0 %952 }
  0x99   :  { %4507 = vmatpush3.msra.mxu1 %v4734_v11  ;;  %4430 = vmatmul.mubr.msk.f32.vlgmr.msra.gmra.mrb[2].mxu0 %vm83_vm1, %v14_v38  ;;  %v970_v52 = vsel %vm964_vm3, %v953_v44, %v955_v43  ;;  %v971_v54 = vsel %vm964_vm3, %v955_v43, %v957_v42  ;;  %v969_v57 = vsel %vm964_vm3, %v4835_v37, %v953_v44 }
  0x9a   :  { %800 = vmatpush1.msra.mxu0 %v4715_v8  ;;  %1060 = vmatprep.subr.mxu1 %v968_v45 }
  0x9b   :  { %989 = vmatprep.subr.mxu0 %v966_v46  ;;  %3417 = vrot.lane.b32.xlu1 %v4698_v5, %s4646_s16 }
  0x9c   :  { %3403 = vrot.lane.b32.xlu0 %v4703_v6, %s4646_s16  ;;  %4508 = vmatprep.mubr.msk.f32.mxu1 %vm4645_vm2, %v4639_v4  ;;  %v963_v47 = vpop.permute.xlu1 %962  ;;  %v961_v48 = vpop.permute.xlu0 %960 }
  0x9d   :  { %863 = vmatprep.mubr.f32.mxu0 %v4639_v4  ;;  %4509 = vmatmul.mubr.msk.f32.vlgmr.msra.gmra.mrb[6].mxu1 %vm83_vm1, %v14_v38  ;;  %v974_v58 = vsel %vm964_vm3, %v961_v48, %v963_v47  ;;  %v973_v62 = vsel %vm964_vm3, %v959_v41, %v961_v48 }
  0x9e   :  { %1061 = vmatpush1.msra.mxu1 %v967_v49  ;;  %4432 = vmatmul.mubr.msk.f32.vlgmr.msra.gmra.mrb[4].mxu0 %vm83_vm1, %v14_v38 }
  0x9f   :  { %990 = vmatpush1.msra.mxu0 %v965_v50  ;;  %1202 = vmatprep.subr.mxu1 %v972_v51  ;;  %v4455_v50 = vld [vmem:[%s5150_s1 + $0x28] sm:$0xff] }
  0xa0   :  { %3413 = vrot.lane.b32.xlu1 %v4710_v7, %s4646_s16  ;;  %3419 = vrot.lane.b32.xlu0 %v4715_v8, %s4646_s16  ;;  %v1460_v55 = vpop.permute.xlu1 %1459  ;;  %v1458_v56 = vpop.permute.xlu0 %1457 }
  0xa1   :  { %1124 = vmatprep.mubr.f32.mxu1 %v4639_v4  ;;  %1131 = vmatprep.subr.mxu0 %v970_v52  ;;  %v1479_v61 = vsel %vm1475_vm4, %v1458_v56, %v1460_v55 }
  0xa2   :  { %1053 = vmatprep.mubr.f32.mxu0 %v4639_v4  ;;  %4436 = vmatmul.mubr.msk.f32.vlgmr.msra.gmra.mrb[0].mxu1 %vm83_vm1, %v4434_v53 }
  0xa3   :  { %1203 = vmatpush1.msra.mxu1 %v971_v54  ;;  %4435 = vmatmul.mubr.msk.f32.vlgmr.msra.gmra.mrb[0].mxu0 %vm83_vm1, %v4434_v53 }
  0xa4   :  { %1132 = vmatpush1.msra.mxu0 %v969_v57  ;;  %3421 = vrot.lane.b32.xlu1 %v4722_v9, %s4646_s16  ;;  %v1456_v59 = vpop.permute.xlu1 %1455  ;;  %v1454_v60 = vpop.permute.xlu0 %1453 }
  0xa5   :  { %3415 = vrot.lane.b32.xlu0 %v4727_v10, %s4646_s16  ;;  %1266 = vmatprep.mubr.f32.mxu1 %v4639_v4  ;;  %v1477_v63 = vsel %vm1475_vm4, %v1454_v60, %v1456_v59  ;;  %v1478_v15 = vsel %vm1475_vm4, %v1456_v59, %v1458_v56 }
  0xa6   :  { %1273 = vmatprep.subr.mxu0 %v974_v58  ;;  %4511 = vmatprep.subr.mxu1 %v4639_v4 }
  0xa7   :  { %1195 = vmatprep.mubr.f32.mxu0 %v4639_v4  ;;  %4438 = vmatmul.mubr.msk.f32.vlgmr.msra.gmra.mrb[2].mxu1 %vm83_vm1, %v4434_v53 }
  0xa8   :  { %4512 = vmatpush3.msra.mxu1 %v963_v47  ;;  %4437 = vmatmul.mubr.msk.f32.vlgmr.msra.gmra.mrb[2].mxu0 %vm83_vm1, %v4434_v53  ;;  %v1466_v13 = vpop.permute.xlu1 %1465  ;;  %v1452_v14 = vpop.permute.xlu0 %1451 }
  0xa9   :  { %1274 = vmatpush1.msra.mxu0 %v973_v62  ;;  %3425 = vrot.lane.b32.xlu1 %v4761_v12, %s4646_s16  ;;  %v1476_v16 = vsel %vm1475_vm4, %v1452_v14, %v1454_v60 }
  0xaa   :  { %3423 = vrot.lane.b32.xlu0 %v4734_v11, %s4646_s16  ;;  %1572 = vmatprep.subr.mxu1 %v1479_v61 }
  0xab   :  { %4513 = vmatprep.mubr.msk.f32.mxu1 %vm4645_vm2, %v4639_v4  ;;  %1501 = vmatprep.subr.mxu0 %v1477_v63 }
  0xac   :  { %4514 = vmatmul.mubr.msk.f32.vlgmr.msra.gmra.mrb[8].mxu1 %vm83_vm1, %v4434_v53  ;;  %1337 = vmatprep.mubr.f32.mxu0 %v4639_v4  ;;  %v1462_v17 = vpop.permute.xlu1 %1461  ;;  %v1468_v18 = vpop.permute.xlu0 %1467 }
  0xad   :  { %3899 = vrot.lane.b32.xlu1 %v4684_v2, %s4647_s21  ;;  %1573 = vmatpush1.msra.mxu1 %v1478_v15  ;;  %v1483_v19 = vsel %vm1475_vm4, %v1466_v13, %v1468_v18  ;;  %v1480_v23 = vsel %vm1475_vm4, %v1460_v55, %v1462_v17 }
  0xae   :  { %3897 = vrot.lane.b32.xlu0 %v4672_v0, %s4647_s21  ;;  %4439 = vmatmul.mubr.msk.f32.vlgmr.msra.gmra.mrb[4].mxu0 %vm83_vm1, %v4434_v53 }
  0xaf   :  { %1502 = vmatpush1.msra.mxu0 %v1476_v16  ;;  %1714 = vmatprep.subr.mxu1 %v1483_v19 }
  0xb0   :  { %v1470_v21 = vpop.permute.xlu1 %1469  ;;  %v1464_v22 = vpop.permute.xlu0 %1463  ;;  %1636 = vmatprep.mubr.f32.mxu1 %v4639_v4  ;;  %1565 = vmatprep.mubr.f32.mxu0 %v4639_v4 }
  0xb1   :  { %3895 = vrot.lane.b32.xlu1 %v4689_v3, %s4647_s21  ;;  %v1482_v2 = vsel %vm1475_vm4, %v1464_v22, %v1466_v13  ;;  %4443 = vmatmul.mubr.msk.f32.vlgmr.msra.gmra.mrb[0].mxu1 %vm83_vm1, %v4441_v20  ;;  %v1481_v0 = vsel %vm1475_vm4, %v1462_v17, %v1464_v22  ;;  %v1484_v26 = vsel %vm1475_vm4, %v1468_v18, %v1470_v21 }
  0xb2   :  { %3893 = vrot.lane.b32.xlu0 %v4677_v1, %s4647_s21  ;;  %1643 = vmatprep.subr.mxu0 %v1481_v0 }
  0xb3   :  { %1715 = vmatpush1.msra.mxu1 %v1482_v2  ;;  %4442 = vmatmul.mubr.msk.f32.vlgmr.msra.gmra.mrb[0].mxu0 %vm83_vm1, %v4441_v20  ;;  %v4462_v2 = vld [vmem:[%s5150_s1 + $0x30] sm:$0xff] }
  0xb4   :  { %1644 = vmatpush1.msra.mxu0 %v1480_v23  ;;  %v1474_v24 = vpop.permute.xlu1 %1473  ;;  %v1472_v25 = vpop.permute.xlu0 %1471  ;;  %1778 = vmatprep.mubr.f32.mxu1 %v4639_v4 }
  0xb5   :  { %3905 = vrot.lane.b32.xlu1 %v4698_v5, %s4647_s21  ;;  %v1486_v3 = vsel %vm1475_vm4, %v1472_v25, %v1474_v24  ;;  %4516 = vmatprep.subr.mxu1 %v4639_v4  ;;  %v1485_v1 = vsel %vm1475_vm4, %v1470_v21, %v1472_v25 }
  0xb6   :  { %3891 = vrot.lane.b32.xlu0 %v4703_v6, %s4647_s21  ;;  %1707 = vmatprep.mubr.f32.mxu0 %v4639_v4 }
  0xb7   :  { %4445 = vmatmul.mubr.msk.f32.vlgmr.msra.gmra.mrb[2].mxu1 %vm83_vm1, %v4441_v20  ;;  %1785 = vmatprep.subr.mxu0 %v1485_v1 }
  0xb8   :  { %4517 = vmatpush3.msra.mxu1 %v1486_v3  ;;  %4444 = vmatmul.mubr.msk.f32.vlgmr.msra.gmra.mrb[2].mxu0 %vm83_vm1, %v4441_v20  ;;  %v1948_v5 = vpop.permute.xlu1 %1947  ;;  %v1946_v27 = vpop.permute.xlu0 %1945 }
  0xb9   :  { %3901 = vrot.lane.b32.xlu1 %v4710_v7, %s4647_s21  ;;  %1786 = vmatpush1.msra.mxu0 %v1484_v26  ;;  %v1967_v28 = vsel %vm1963_vm5, %v1946_v27, %v1948_v5 }
  0xba   :  { %3907 = vrot.lane.b32.xlu0 %v4715_v8, %s4647_s21  ;;  %2060 = vmatprep.subr.mxu1 %v1967_v28  ;;  %v4448_v8 = vld [vmem:[%s5150_s1 + $0x20] sm:$0xff] }
  0xbb   :  { %4518 = vmatprep.mubr.msk.f32.mxu1 %vm4645_vm2, %v4639_v4  ;;  %1849 = vmatprep.mubr.f32.mxu0 %v4639_v4 }
  0xbc   :  { %v1944_v6 = vpop.permute.xlu1 %1943  ;;  %v1942_v29 = vpop.permute.xlu0 %1941  ;;  %4519 = vmatmul.mubr.msk.f32.vlgmr.msra.gmra.mrb[10].mxu1 %vm83_vm1, %v4441_v20  ;;  %4446 = vmatmul.mubr.msk.f32.vlgmr.msra.gmra.mrb[4].mxu0 %vm83_vm1, %v4441_v20 }
  0xbd   :  { %3909 = vrot.lane.b32.xlu1 %v4722_v9, %s4647_s21  ;;  %v1966_v7 = vsel %vm1963_vm5, %v1944_v6, %v1946_v27  ;;  %v1965_v30 = vsel %vm1963_vm5, %v1942_v29, %v1944_v6  ;;  %2124 = vmatprep.mubr.f32.mxu1 %v4639_v4  ;;  %v4648_v9 = vmov 0  }
  0xbe   :  { %3903 = vrot.lane.b32.xlu0 %v4727_v10, %s4647_s21  ;;  %1989 = vmatprep.subr.mxu0 %v1965_v30  ;;  %v4377_v10 = vld [vmem:[%s5151_s2] sm:$0xff] }
  0xbf   :  { %2061 = vmatpush1.msra.mxu1 %v1966_v7  ;;  %2053 = vmatprep.mubr.f32.mxu0 %v4639_v4 }
  0xc0   :  { %v1954_v31 = vpop.permute.xlu1 %1953  ;;  %v1940_v32 = vpop.permute.xlu0 %1939  ;;  %4450 = vmatmul.mubr.msk.f32.vlgmr.msra.gmra.mrb[0].mxu1 %vm83_vm1, %v4448_v8  ;;  %4637 = vset.pattern.permute.xlu0 %v4648_v9 }
  0xc1   :  { %3913 = vrot.lane.b32.xlu1 %v4761_v12, %s4647_s21  ;;  %v1964_v33 = vsel %vm1963_vm5, %v1940_v32, %v1942_v29  ;;  %2266 = vmatprep.mubr.f32.mxu1 %v4639_v4 }
  0xc2   :  { %3911 = vrot.lane.b32.xlu0 %v4734_v11, %s4647_s21  ;;  %1990 = vmatpush1.msra.mxu0 %v1964_v33 }
  0xc3   :  { %4449 = vmatmul.mubr.msk.f32.vlgmr.msra.gmra.mrb[0].mxu0 %vm83_vm1, %v4448_v8 }
  0xc4   :  { %v1950_v34 = vpop.permute.xlu1 %1949  ;;  %v1956_v35 = vpop.permute.xlu0 %1955  ;;  %2195 = vmatprep.mubr.f32.mxu0 %v4639_v4 }
  0xc5   :  { %v1971_v12 = vsel %vm1963_vm5, %v1954_v31, %v1956_v35  ;;  %v1968_v39 = vsel %vm1963_vm5, %v1948_v5, %v1950_v34 }
  0xc6   :  { %2202 = vmatprep.subr.mxu1 %v1971_v12  ;;  %4380 = vperm.xlu0 %4637, %v4377_v10  }
  0xc8   :  { %v1958_v36 = vpop.permute.xlu1 %1957  ;;  %v1952_v37 = vpop.permute.xlu0 %1951 }
  0xc9   :  { %v1970_v38 = vsel %vm1963_vm5, %v1952_v37, %v1954_v31  ;;  %v1969_v11 = vsel %vm1963_vm5, %v1950_v34, %v1952_v37  ;;  %v1972_v44 = vsel %vm1963_vm5, %v1956_v35, %v1958_v36 }
  0xca   :  { %2131 = vmatprep.subr.mxu0 %v1969_v11  ;;  %2203 = vmatpush1.msra.mxu1 %v1970_v38 }
  0xcb   :  { %2132 = vmatpush1.msra.mxu0 %v1968_v39  ;;  %4521 = vmatprep.subr.mxu1 %v4639_v4 }
  0xcc   :  { %v1962_v40 = vpop.permute.xlu1 %1961  ;;  %v1960_v41 = vpop.permute.xlu0 %1959  ;;  %4452 = vmatmul.mubr.msk.f32.vlgmr.msra.gmra.mrb[2].mxu1 %vm83_vm1, %v4448_v8  ;;  %4451 = vmatmul.mubr.msk.f32.vlgmr.msra.gmra.mrb[2].mxu0 %vm83_vm1, %v4448_v8 }
  0xcd   :  { %v1974_v42 = vsel %vm1963_vm5, %v1960_v41, %v1962_v40  ;;  %v1973_v43 = vsel %vm1963_vm5, %v1958_v36, %v1960_v41  ;;  %4523 = vmatprep.mubr.msk.f32.mxu1 %vm4645_vm2, %v4639_v4  ;;  %2337 = vmatprep.mubr.f32.mxu0 %v4639_v4  ;;  %v4469_v36 = vld [vmem:[%s5150_s1 + $0x38] sm:$0xff] }
  0xce   :  { %2273 = vmatprep.subr.mxu0 %v1973_v43  ;;  %4522 = vmatpush3.msra.mxu1 %v1974_v42 }
  0xcf   :  { %2274 = vmatpush1.msra.mxu0 %v1972_v44 }
  0xd0   :  { %v2436_v45 = vpop.permute.xlu1 %2435  ;;  %v2434_v46 = vpop.permute.xlu0 %2433  ;;  %4524 = vmatmul.mubr.msk.f32.vlgmr.msra.gmra.mrb[12].mxu1 %vm83_vm1, %v4448_v8  ;;  %4453 = vmatmul.mubr.msk.f32.vlgmr.msra.gmra.mrb[4].mxu0 %vm83_vm1, %v4448_v8 }
  0xd1   :  { %v2455_v47 = vsel %vm2451_vm6, %v2434_v46, %v2436_v45  ;;  %2612 = vmatprep.mubr.f32.mxu1 %v4639_v4  ;;  %2541 = vmatprep.mubr.f32.mxu0 %v4639_v4 }
  0xd2   :  { %2548 = vmatprep.subr.mxu1 %v2455_v47 }
  0xd4   :  { %v2432_v48 = vpop.permute.xlu1 %2431  ;;  %v2430_v49 = vpop.permute.xlu0 %2429 }
  0xd5   :  { %v2454_v51 = vsel %vm2451_vm6, %v2432_v48, %v2434_v46  ;;  %v2453_v52 = vsel %vm2451_vm6, %v2430_v49, %v2432_v48 }
  0xd6   :  { %2477 = vmatprep.subr.mxu0 %v2453_v52  ;;  %2549 = vmatpush1.msra.mxu1 %v2454_v51 }
  0xd7   :  { %4457 = vmatmul.mubr.msk.f32.vlgmr.msra.gmra.mrb[0].mxu1 %vm83_vm1, %v4455_v50 }
  0xd8   :  { %v2442_v53 = vpop.permute.xlu1 %2441  ;;  %v2428_v54 = vpop.permute.xlu0 %2427  ;;  %2754 = vmatprep.mubr.f32.mxu1 %v4639_v4 }
  0xd9   :  { %v2452_v55 = vsel %vm2451_vm6, %v2428_v54, %v2430_v49 }
  0xda   :  { %2478 = vmatpush1.msra.mxu0 %v2452_v55 }
  0xdb   :  { %4456 = vmatmul.mubr.msk.f32.vlgmr.msra.gmra.mrb[0].mxu0 %vm83_vm1, %v4455_v50 }
  0xdc   :  { %v2438_v56 = vpop.permute.xlu1 %2437  ;;  %v2444_v57 = vpop.permute.xlu0 %2443  ;;  %2683 = vmatprep.mubr.f32.mxu0 %v4639_v4 }
  0xdd   :  { %v2459_v58 = vsel %vm2451_vm6, %v2442_v53, %v2444_v57  ;;  %v2456_v63 = vsel %vm2451_vm6, %v2436_v45, %v2438_v56 }
  0xde   :  { %2690 = vmatprep.subr.mxu1 %v2459_v58  ;;  %v4476_v58 = vld [vmem:[%s5150_s1 + $0x40] sm:$0xff] }
  0xe0   :  { %v2446_v59 = vpop.permute.xlu1 %2445  ;;  %v2440_v60 = vpop.permute.xlu0 %2439 }
  0xe1   :  { %v2458_v61 = vsel %vm2451_vm6, %v2440_v60, %v2442_v53  ;;  %v2457_v62 = vsel %vm2451_vm6, %v2438_v56, %v2440_v60  ;;  %v2460_v17 = vsel %vm2451_vm6, %v2444_v57, %v2446_v59 }
  0xe2   :  { %2619 = vmatprep.subr.mxu0 %v2457_v62  ;;  %2691 = vmatpush1.msra.mxu1 %v2458_v61 }
  0xe3   :  { %2620 = vmatpush1.msra.mxu0 %v2456_v63  ;;  %4459 = vmatmul.mubr.msk.f32.vlgmr.msra.gmra.mrb[2].mxu1 %vm83_vm1, %v4455_v50 }
  0xe4   :  { %v2450_v13 = vpop.permute.xlu1 %2449  ;;  %v2448_v14 = vpop.permute.xlu0 %2447  ;;  %4526 = vmatprep.subr.mxu1 %v4639_v4  ;;  %4528 = vmatprep.mubr.msk.f32.mxu1 %vm4645_vm2, %v4639_v4 }
  0xe5   :  { %v2462_v15 = vsel %vm2451_vm6, %v2448_v14, %v2450_v13  ;;  %v2461_v16 = vsel %vm2451_vm6, %v2446_v59, %v2448_v14  ;;  %4458 = vmatmul.mubr.msk.f32.vlgmr.msra.gmra.mrb[2].mxu0 %vm83_vm1, %v4455_v50 }
  0xe6   :  { %2761 = vmatprep.subr.mxu0 %v2461_v16  ;;  %4527 = vmatpush3.msra.mxu1 %v2462_v15 }
  0xe7   :  { %2762 = vmatpush1.msra.mxu0 %v2460_v17  ;;  %4529 = vmatmul.mubr.msk.f32.vlgmr.msra.gmra.mrb[14].mxu1 %vm83_vm1, %v4455_v50 }
  0xe8   :  { %v2924_v18 = vpop.permute.xlu1 %2923  ;;  %v2922_v19 = vpop.permute.xlu0 %2921  ;;  %2825 = vmatprep.mubr.f32.mxu0 %v4639_v4  ;;  %3100 = vmatprep.mubr.f32.mxu1 %v4639_v4 }
  0xe9   :  { %v2943_v20 = vsel %vm2939_vm7, %v2922_v19, %v2924_v18  ;;  %4460 = vmatmul.mubr.msk.f32.vlgmr.msra.gmra.mrb[4].mxu0 %vm83_vm1, %v4455_v50 }
  0xea   :  { %3036 = vmatprep.subr.mxu1 %v2943_v20  ;;  %3029 = vmatprep.mubr.f32.mxu0 %v4639_v4 }
  0xed   :  { %v2920_v21 = vpop.permute.xlu1 %2919  ;;  %v2918_v22 = vpop.permute.xlu0 %2917 }
  0xee   :  { %v2942_v0 = vsel %vm2939_vm7, %v2920_v21, %v2922_v19  ;;  %v2941_v23 = vsel %vm2939_vm7, %v2918_v22, %v2920_v21 }
  0xef   :  { %2965 = vmatprep.subr.mxu0 %v2941_v23  ;;  %3037 = vmatpush1.msra.mxu1 %v2942_v0 }
  0xf0   :  { %4464 = vmatmul.mubr.msk.f32.vlgmr.msra.gmra.mrb[0].mxu1 %vm83_vm1, %v4462_v2 }
  0xf1   :  { %v2930_v24 = vpop.permute.xlu1 %2929  ;;  %v2916_v25 = vpop.permute.xlu0 %2915  ;;  %3242 = vmatprep.mubr.f32.mxu1 %v4639_v4 }
  0xf2   :  { %v2940_v3 = vsel %vm2939_vm7, %v2916_v25, %v2918_v22 }
  0xf3   :  { %2966 = vmatpush1.msra.mxu0 %v2940_v3 }
  0xf4   :  { %4463 = vmatmul.mubr.msk.f32.vlgmr.msra.gmra.mrb[0].mxu0 %vm83_vm1, %v4462_v2 }
  0xf5   :  { %v2926_v1 = vpop.permute.xlu1 %2925  ;;  %v2932_v26 = vpop.permute.xlu0 %2931  ;;  %3171 = vmatprep.mubr.f32.mxu0 %v4639_v4 }
  0xf6   :  { %v2947_v5 = vsel %vm2939_vm7, %v2930_v24, %v2932_v26  ;;  %v2944_v7 = vsel %vm2939_vm7, %v2924_v18, %v2926_v1 }
  0xf7   :  { %3178 = vmatprep.subr.mxu1 %v2947_v5 }
  0xf9   :  { %v2934_v27 = vpop.permute.xlu1 %2933  ;;  %v2928_v28 = vpop.permute.xlu0 %2927 }
  0xfa   :  { %v2946_v6 = vsel %vm2939_vm7, %v2928_v28, %v2930_v24  ;;  %v2945_v29 = vsel %vm2939_vm7, %v2926_v1, %v2928_v28  ;;  %v2948_v9 = vsel %vm2939_vm7, %v2932_v26, %v2934_v27 }
  0xfb   :  { %3107 = vmatprep.subr.mxu0 %v2945_v29  ;;  %3179 = vmatpush1.msra.mxu1 %v2946_v6 }
  0xfc   :  { %3108 = vmatpush1.msra.mxu0 %v2944_v7  ;;  %4466 = vmatmul.mubr.msk.f32.vlgmr.msra.gmra.mrb[2].mxu1 %vm83_vm1, %v4462_v2 }
  0xfd   :  { %v2938_v30 = vpop.permute.xlu1 %2937  ;;  %v2936_v8 = vpop.permute.xlu0 %2935  ;;  %4531 = vmatprep.subr.mxu1 %v4639_v4  ;;  %4533 = vmatprep.mubr.msk.f32.mxu1 %vm4645_vm2, %v4639_v4 }
  0xfe   :  { %v2950_v31 = vsel %vm2939_vm7, %v2936_v8, %v2938_v30  ;;  %v2949_v32 = vsel %vm2939_vm7, %v2934_v27, %v2936_v8  ;;  %4465 = vmatmul.mubr.msk.f32.vlgmr.msra.gmra.mrb[2].mxu0 %vm83_vm1, %v4462_v2 }
  0xff   :  { %3249 = vmatprep.subr.mxu0 %v2949_v32  ;;  %4532 = vmatpush3.msra.mxu1 %v2950_v31 }
 0x100   :  { %3250 = vmatpush1.msra.mxu0 %v2948_v9  ;;  %4534 = vmatmul.mubr.msk.f32.vlgmr.msra.gmra.mrb[16].mxu1 %vm83_vm1, %v4462_v2 }
 0x101   :  { %v3412_v33 = vpop.permute.xlu1 %3411  ;;  %v3410_v10 = vpop.permute.xlu0 %3409  ;;  %3313 = vmatprep.mubr.f32.mxu0 %v4639_v4  ;;  %3588 = vmatprep.mubr.f32.mxu1 %v4639_v4 }
 0x102   :  { %v3431_v34 = vsel %vm3427_vm8, %v3410_v10, %v3412_v33  ;;  %4467 = vmatmul.mubr.msk.f32.vlgmr.msra.gmra.mrb[4].mxu0 %vm83_vm1, %v4462_v2 }
 0x103   :  { %3524 = vmatprep.subr.mxu1 %v3431_v34  ;;  %3517 = vmatprep.mubr.f32.mxu0 %v4639_v4 }
 0x107   :  { %v3408_v35 = vpop.permute.xlu1 %3407  ;;  %v3406_v12 = vpop.permute.xlu0 %3405 }
 0x108   :  { %v3430_v37 = vsel %vm3427_vm8, %v3408_v35, %v3410_v10  ;;  %v3429_v38 = vsel %vm3427_vm8, %v3406_v12, %v3408_v35 }
 0x109   :  { %3453 = vmatprep.subr.mxu0 %v3429_v38  ;;  %3525 = vmatpush1.msra.mxu1 %v3430_v37 }
 0x10a   :  { %4471 = vmatmul.mubr.msk.f32.vlgmr.msra.gmra.mrb[0].mxu1 %vm83_vm1, %v4469_v36 }
 0x10b   :  { %3730 = vmatprep.mubr.f32.mxu1 %v4639_v4 }
 0x10d   :  { %v3418_v11 = vpop.permute.xlu1 %3417 }
 0x10e   :  { %v3404_v39 = vpop.permute.xlu0 %3403 }
 0x10f   :  { %v3428_v40 = vsel %vm3427_vm8, %v3404_v39, %v3406_v12 }
 0x110   :  { %3454 = vmatpush1.msra.mxu0 %v3428_v40 }
 0x111   :  { %4470 = vmatmul.mubr.msk.f32.vlgmr.msra.gmra.mrb[0].mxu0 %vm83_vm1, %v4469_v36 }
 0x112   :  { %v3414_v41 = vpop.permute.xlu1 %3413  ;;  %v3420_v42 = vpop.permute.xlu0 %3419  ;;  %3659 = vmatprep.mubr.f32.mxu0 %v4639_v4 }
 0x113   :  { %v3435_v43 = vsel %vm3427_vm8, %v3418_v11, %v3420_v42  ;;  %v3432_v48 = vsel %vm3427_vm8, %v3412_v33, %v3414_v41 }
 0x114   :  { %3666 = vmatprep.subr.mxu1 %v3435_v43 }
 0x116   :  { %v3422_v44 = vpop.permute.xlu1 %3421 }
 0x117   :  { %v3416_v45 = vpop.permute.xlu0 %3415  ;;  %v3436_v53 = vsel %vm3427_vm8, %v3420_v42, %v3422_v44 }
 0x118   :  { %v3434_v46 = vsel %vm3427_vm8, %v3416_v45, %v3418_v11  ;;  %v3433_v47 = vsel %vm3427_vm8, %v3414_v41, %v3416_v45 }
 0x119   :  { %3595 = vmatprep.subr.mxu0 %v3433_v47  ;;  %3667 = vmatpush1.msra.mxu1 %v3434_v46 }
 0x11a   :  { %3596 = vmatpush1.msra.mxu0 %v3432_v48  ;;  %4473 = vmatmul.mubr.msk.f32.vlgmr.msra.gmra.mrb[2].mxu1 %vm83_vm1, %v4469_v36 }
 0x11b   :  { %v3426_v49 = vpop.permute.xlu1 %3425  ;;  %4536 = vmatprep.subr.mxu1 %v4639_v4  ;;  %4538 = vmatprep.mubr.msk.f32.mxu1 %vm4645_vm2, %v4639_v4 }
 0x11c   :  { %v3424_v50 = vpop.permute.xlu0 %3423  ;;  %4472 = vmatmul.mubr.msk.f32.vlgmr.msra.gmra.mrb[2].mxu0 %vm83_vm1, %v4469_v36 }
 0x11d   :  { %v3438_v51 = vsel %vm3427_vm8, %v3424_v50, %v3426_v49  ;;  %v3437_v52 = vsel %vm3427_vm8, %v3422_v44, %v3424_v50  ;;  %3801 = vmatprep.mubr.f32.mxu0 %v4639_v4 }
 0x11e   :  { %3737 = vmatprep.subr.mxu0 %v3437_v52  ;;  %4537 = vmatpush3.msra.mxu1 %v3438_v51 }
 0x11f   :  { %3738 = vmatpush1.msra.mxu0 %v3436_v53  ;;  %4539 = vmatmul.mubr.msk.f32.vlgmr.msra.gmra.mrb[18].mxu1 %vm83_vm1, %v4469_v36  ;;  %v3900_v54 = vpop.permute.xlu1 %3899 }
 0x120   :  { %v3898_v55 = vpop.permute.xlu0 %3897  ;;  %4076 = vmatprep.mubr.f32.mxu1 %v4639_v4  ;;  %4474 = vmatmul.mubr.msk.f32.vlgmr.msra.gmra.mrb[4].mxu0 %vm83_vm1, %v4469_v36 }
 0x121   :  { %v3919_v56 = vsel %vm3915_vm9, %v3898_v55, %v3900_v54  ;;  %4005 = vmatprep.mubr.f32.mxu0 %v4639_v4 }
 0x122   :  { %4012 = vmatprep.subr.mxu1 %v3919_v56 }
 0x123   :  { %v3896_v57 = vpop.permute.xlu1 %3895 }
 0x124   :  { %v3918_v59 = vsel %vm3915_vm9, %v3896_v57, %v3898_v55  ;;  %v3894_v60 = vpop.permute.xlu0 %3893 }
 0x125   :  { %v3917_v61 = vsel %vm3915_vm9, %v3894_v60, %v3896_v57  ;;  %4013 = vmatpush1.msra.mxu1 %v3918_v59 }
 0x126   :  { %3941 = vmatprep.subr.mxu0 %v3917_v61  ;;  %4478 = vmatmul.mubr.msk.f32.vlgmr.msra.gmra.mrb[0].mxu1 %vm83_vm1, %v4476_v58 }
 0x127   :  { %v3906_v62 = vpop.permute.xlu1 %3905  ;;  %4218 = vmatprep.mubr.f32.mxu1 %v4639_v4 }
 0x128   :  { %v3892_v63 = vpop.permute.xlu0 %3891 }
 0x129   :  { %v3916_v13 = vsel %vm3915_vm9, %v3892_v63, %v3894_v60 }
 0x12a   :  { %3942 = vmatpush1.msra.mxu0 %v3916_v13 }
 0x12b   :  { %4477 = vmatmul.mubr.msk.f32.vlgmr.msra.gmra.mrb[0].mxu0 %vm83_vm1, %v4476_v58  ;;  %v3902_v14 = vpop.permute.xlu1 %3901 }
 0x12c   :  { %v3908_v15 = vpop.permute.xlu0 %3907  ;;  %4147 = vmatprep.mubr.f32.mxu0 %v4639_v4  ;;  %v3920_v21 = vsel %vm3915_vm9, %v3900_v54, %v3902_v14 }
 0x12d   :  { %v3923_v16 = vsel %vm3915_vm9, %v3906_v62, %v3908_v15 }
 0x12e   :  { %4154 = vmatprep.subr.mxu1 %v3923_v16 }
 0x12f   :  { %v3910_v17 = vpop.permute.xlu1 %3909 }
 0x130   :  { %v3904_v18 = vpop.permute.xlu0 %3903  ;;  %v3924_v24 = vsel %vm3915_vm9, %v3908_v15, %v3910_v17 }
 0x131   :  { %v3922_v19 = vsel %vm3915_vm9, %v3904_v18, %v3906_v62  ;;  %v3921_v20 = vsel %vm3915_vm9, %v3902_v14, %v3904_v18 }
 0x132   :  { %4083 = vmatprep.subr.mxu0 %v3921_v20  ;;  %4155 = vmatpush1.msra.mxu1 %v3922_v19 }
 0x133   :  { %4084 = vmatpush1.msra.mxu0 %v3920_v21  ;;  %4480 = vmatmul.mubr.msk.f32.vlgmr.msra.gmra.mrb[2].mxu1 %vm83_vm1, %v4476_v58  ;;  %v3914_v22 = vpop.permute.xlu1 %3913 }
 0x134   :  { %4479 = vmatmul.mubr.msk.f32.vlgmr.msra.gmra.mrb[2].mxu0 %vm83_vm1, %v4476_v58  ;;  %v3912_v2 = vpop.permute.xlu0 %3911  ;;  %4541 = vmatprep.subr.mxu1 %v4639_v4 }
 0x135   :  { %v3926_v0 = vsel %vm3915_vm9, %v3912_v2, %v3914_v22  ;;  %v3925_v23 = vsel %vm3915_vm9, %v3910_v17, %v3912_v2  ;;  %4543 = vmatprep.mubr.msk.f32.mxu1 %vm4645_vm2, %v4639_v4  ;;  %4289 = vmatprep.mubr.f32.mxu0 %v4639_v4 }
 0x136   :  { %4225 = vmatprep.subr.mxu0 %v3925_v23  ;;  %4542 = vmatpush3.msra.mxu1 %v3926_v0 }
 0x137   :  { %4226 = vmatpush1.msra.mxu0 %v3924_v24  ;;  %4544 = vmatmul.mubr.msk.f32.vlgmr.msra.gmra.mrb[20].mxu1 %vm83_vm1, %v4476_v58 }
 0x138   :  { %4481 = vmatmul.mubr.msk.f32.vlgmr.msra.gmra.mrb[4].mxu0 %vm83_vm1, %v4476_v58 }
 0x145   :  { %v4381_v38 = vpop.permute.xlu0 %4380 }
 0x160   :  { %v508_v25 = vpop.f32.mrb[4].mxu1 }
 0x161   :  { %v4505_v3 = vpop.f32.mrb[5].mxu1 }
 0x170   :  { %v936_v1 = vpop.f32.mrb[6].mxu1 }
 0x171   :  { %v937_v26 = vadd.f32 %v936_v1, %v508_v25  ;;  %v4510_v5 = vpop.f32.mrb[7].mxu1 }
 0x17f   :  { %v1410_v27 = vpop.f32.mrb[8].mxu1 }
 0x180   :  { %v1424_v28 = vadd.f32 %v1410_v27, %v937_v26  ;;  %v4515_v6 = vpop.f32.mrb[9].mxu1 }
 0x18f   :  { %v1922_v29 = vpop.f32.mrb[10].mxu1 }
 0x190   :  { %v1936_v7 = vadd.f32 %v1922_v29, %v1424_v28  ;;  %v4520_v4 = vpop.f32.mrb[11].mxu1 }
 0x1a3   :  { %v2410_v30 = vpop.f32.mrb[12].mxu1 }
 0x1a4   :  { %v2424_v8 = vadd.f32 %v2410_v30, %v1936_v7  ;;  %v4525_v31 = vpop.f32.mrb[13].mxu1 }
 0x1ba   :  { %v2898_v32 = vpop.f32.mrb[14].mxu1 }
 0x1bb   :  { %v2912_v9 = vadd.f32 %v2898_v32, %v2424_v8  ;;  %v4530_v33 = vpop.f32.mrb[15].mxu1 }
 0x1d3   :  { %v3386_v10 = vpop.f32.mrb[16].mxu1 }
 0x1d4   :  { %v3400_v34 = vadd.f32 %v3386_v10, %v2912_v9  ;;  %v4535_v35 = vpop.f32.mrb[17].mxu1 }
 0x1f2   :  { %v3874_v12 = vpop.f32.mrb[18].mxu1 }
 0x1f3   :  { %v3888_v36 = vadd.f32 %v3874_v12, %v3400_v34  ;;  %v4540_v37 = vpop.f32.mrb[19].mxu1 }
 0x1f9   :  { %v4078_v11 = vpop.f32.mrb[0].mxu1 }
 0x1fa   :  { %v4385_v39 = vadd.f32 %v4381_v38, %v4078_v11  ;;  %v4080_v40 = vpop.f32.mrb[1].mxu1 }
 0x1fb   :  { %v4386_v41 = vadd.f32 %v4381_v38, %v4080_v40 }
 0x1fc   :  { %v4396_v42 = vmax.f32 %v4385_v39, 0.0 }
 0x1fd   :  { %v4397_v43 = vmax.f32 %v4386_v41, 0.0 }
 0x1fe   :  { %4407 = vst [vmem:[%s5152_s3 + $0x10] sm:$0xff] %v4396_v42  ;;  %v4007_v44 = vpop.f32.mrb[0].mxu0 }
 0x1ff   :  { %4408 = vst [vmem:[%s5152_s3 + $0x18] sm:$0xff] %v4397_v43  ;;  %v4383_v45 = vadd.f32 %v4381_v38, %v4007_v44  ;;  %v4009_v46 = vpop.f32.mrb[1].mxu0 }
 0x200   :  { %v4384_v47 = vadd.f32 %v4381_v38, %v4009_v46 }
 0x201   :  { %v4394_v48 = vmax.f32 %v4383_v45, 0.0 }
 0x202   :  { %v4395_v49 = vmax.f32 %v4384_v47, 0.0 }
 0x203   :  { %4405 = vst [vmem:[%s5152_s3] sm:$0xff] %v4394_v48 }
 0x204   :  { %4406 = vst [vmem:[%s5152_s3 + $0x8] sm:$0xff] %v4395_v49 }
 0x206   :  { %v4220_v50 = vpop.f32.mrb[2].mxu1 }
 0x207   :  { %v4389_v51 = vadd.f32 %v4381_v38, %v4220_v50  ;;  %v4149_v52 = vpop.f32.mrb[2].mxu0  ;;  %v4222_v53 = vpop.f32.mrb[3].mxu1 }
 0x208   :  { %v4387_v54 = vadd.f32 %v4381_v38, %v4149_v52  ;;  %v4390_v55 = vadd.f32 %v4381_v38, %v4222_v53  ;;  %v4151_v56 = vpop.f32.mrb[3].mxu0 }
 0x209   :  { %v4400_v57 = vmax.f32 %v4389_v51, 0.0  ;;  %v4388_v58 = vadd.f32 %v4381_v38, %v4151_v56 }
 0x20a   :  { %v4398_v59 = vmax.f32 %v4387_v54, 0.0  ;;  %v4401_v60 = vmax.f32 %v4390_v55, 0.0  ;;  %v4362_v61 = vpop.f32.mrb[20].mxu1 }
 0x20b   :  { %4411 = vst [vmem:[%s5152_s3 + $0x30] sm:$0xff] %v4400_v57  ;;  %v4399_v62 = vmax.f32 %v4388_v58, 0.0  ;;  %v4376_v63 = vadd.f32 %v4362_v61, %v3888_v36  ;;  %v4291_v13 = vpop.f32.mrb[4].mxu0  ;;  %v4545_v14 = vpop.f32.mrb[21].mxu1 }
 0x20c   :  { %4409 = vst [vmem:[%s5152_s3 + $0x20] sm:$0xff] %v4398_v59  ;;  %4412 = vst [vmem:[%s5152_s3 + $0x38] sm:$0xff] %v4401_v60  ;;  %v4391_v15 = vadd.f32 %v4381_v38, %v4291_v13  ;;  %v4293_v16 = vpop.f32.mrb[5].mxu0 }
 0x20d   :  { %4410 = vst [vmem:[%s5152_s3 + $0x28] sm:$0xff] %v4399_v62  ;;  %v4393_v17 = vadd.f32 %v4381_v38, %v4376_v63  ;;  %v4392_v18 = vadd.f32 %v4381_v38, %v4293_v16 }
 0x20e   :  { %v4402_v19 = vmax.f32 %v4391_v15, 0.0 }
 0x20f   :  { %v4404_v20 = vmax.f32 %v4393_v17, 0.0  ;;  %v4403_v21 = vmax.f32 %v4392_v18, 0.0 }
 0x210   :  { %4413 = vst [vmem:[%s5152_s3 + $0x40] sm:$0xff] %v4402_v19 }
 0x211   :  { %4416 = vst.msk [vmem:[%s5152_s3 + $0x50] sm:$0xff] %vm4415_vm10, %v4404_v20  ;;  %4414 = vst [vmem:[%s5152_s3 + $0x48] sm:$0xff] %v4403_v21 }

</bundles_post_ra>
